<compile_context>
chip_gen: v5e
topology: v5e:2x2
jax: 0.10.0
libtpu: 0.0.40
codegen_flags: <defaults>
</compile_context>

<pallas_src>
import functools

import jax
import jax.numpy as jnp
from jax.experimental import pallas as pl
from jax.experimental.pallas import tpu as pltpu

CPAD = 128  # lane-padded output-channel width for every kernel


# ----------------------------------------------------------------------------
# Pallas kernels
# ----------------------------------------------------------------------------
def _conv_pool_kernel(p_ref, w_ref, b_ref, o_ref, *, n_offsets):
    """o = relu(max_i(p[i] @ w) + b): conv + bias + ReLU + 2x2 maxpool fused.

    p: [n_offsets, tm, K]   (4 pooling-offset im2col patch matrices)
    w: [K, CPAD]   b: [1, CPAD]   o: [tm, CPAD]   (lane-dense stores)
    """
    w = w_ref[...]
    acc = jnp.dot(p_ref[0], w, preferred_element_type=jnp.float32)
    for i in range(1, n_offsets):
        acc = jnp.maximum(acc, jnp.dot(p_ref[i], w, preferred_element_type=jnp.float32))
    o_ref[...] = jnp.maximum(acc + b_ref[...], 0.0).astype(o_ref.dtype)


def _fc_chain_kernel(x_ref, w1_ref, b1_ref, w2_ref, b2_ref, w3_ref, b3_ref,
                     o_ref, *, n_classes):
    """Fused fc1+relu -> fc2+relu -> fc3+log_softmax; intermediates stay on-chip."""
    h = jnp.dot(x_ref[...], w1_ref[...], preferred_element_type=jnp.float32)
    h = jnp.maximum(h + b1_ref[...], 0.0)
    h = jnp.dot(h, w2_ref[...], preferred_element_type=jnp.float32)
    h = jnp.maximum(h + b2_ref[...], 0.0)
    y = jnp.dot(h, w3_ref[...], preferred_element_type=jnp.float32) + b3_ref[...]
    # Mask the lane-padding "classes" out of the log_softmax.
    col = jax.lax.broadcasted_iota(jnp.int32, y.shape, 1)
    y = jnp.where(col < n_classes, y, -1e30)
    m = jnp.max(y, axis=-1, keepdims=True)
    z = y - m
    lse = jnp.log(jnp.sum(jnp.exp(z), axis=-1, keepdims=True))
    o_ref[...] = (z - lse).astype(o_ref.dtype)


# ----------------------------------------------------------------------------
# Kernel wrappers
# ----------------------------------------------------------------------------
def conv_relu_pool_matmul(patches4, wm, b, tm=256):
    """Row-gridded fused conv+ReLU+pool matmul.

    patches4: [4, M, K], wm: [K, CPAD], b: [1, CPAD]  ->  [M, CPAD].
    tm=256 keeps (patch tile + weight + out tile) * double-buffer well under the
    scoped-VMEM limit on every generation (incl. v7x's 64 MiB physical VMEM).
    """
    n_off, m, k = patches4.shape
    npad = wm.shape[1]
    if m > tm:
        m_pad = pl.cdiv(m, tm) * tm
        if m_pad != m:
            patches4 = jnp.pad(patches4, ((0, 0), (0, m_pad - m), (0, 0)))
    else:
        tm, m_pad = m, m
    out = pl.pallas_call(
        functools.partial(_conv_pool_kernel, n_offsets=n_off),
        out_shape=jax.ShapeDtypeStruct((m_pad, npad), jnp.float32),
        grid=(m_pad // tm,),
        in_specs=[
            pl.BlockSpec((n_off, tm, k), lambda i: (0, i, 0)),
            pl.BlockSpec((k, npad), lambda i: (0, 0)),   # weight pinned
            pl.BlockSpec((1, npad), lambda i: (0, 0)),   # bias pinned
        ],
        out_specs=pl.BlockSpec((tm, npad), lambda i: (i, 0)),
        compiler_params=pltpu.CompilerParams(dimension_semantics=("parallel",)),
    )(patches4, wm, b)
    return out[:m]


def fc_chain(x, pp, n_classes):
    """One pallas_call for the whole FC head. All weights (<2 MB) VMEM-resident."""
    bsz = x.shape[0]
    vmem = pl.BlockSpec(memory_space=pltpu.MemorySpace.VMEM)
    return pl.pallas_call(
        functools.partial(_fc_chain_kernel, n_classes=n_classes),
        out_shape=jax.ShapeDtypeStruct((bsz, CPAD), jnp.float32),
        in_specs=[vmem] * 7,
        out_specs=vmem,
    )(x, pp["wf1"], pp["bf1"], pp["wf2"], pp["bf2"], pp["wf3"], pp["bf3"])


# ----------------------------------------------------------------------------
# Thin XLA glue: im2col patches + the four 2x2-pool offsets
# ----------------------------------------------------------------------------
def _patches(x_nhwc, ksize=5):
    """im2col patches, channels-last; feature order (c, kh, kw) == PyTorch reshape."""
    return jax.lax.conv_general_dilated_patches(
        x_nhwc, (ksize, ksize), (1, 1), "VALID",
        dimension_numbers=("NHWC", "HWIO", "NHWC"),
        precision=jax.lax.Precision.HIGHEST)


def _pool_offsets(patches):
    """[B,Ho,Wo,K] -> [4, B*(Ho//2)*(Wo//2), K]: the four 2x2-pool offsets."""
    sub = [patches[:, di::2, dj::2, :] for di in (0, 1) for dj in (0, 1)]
    s = jnp.stack(sub, axis=0)
    _, bsz, hp, wp, k = s.shape
    return s.reshape(4, bsz * hp * wp, k)


# ----------------------------------------------------------------------------
# One-time parameter re-layout (PyTorch layout -> kernel layout)
# ----------------------------------------------------------------------------
def prepare_params(p):
    f32 = jnp.float32

    def padn(w, n):   # zero-pad last dim to n
        return jnp.pad(w.astype(f32), ((0, 0),) * (w.ndim - 1) + ((0, n - w.shape[-1]),))

    def padb(b, n):   # bias -> [1, n]
        return jnp.pad(b.astype(f32), (0, n - b.shape[0])).reshape(1, n)

    w1m = padn(p["w1"].reshape(6, 25).T, CPAD)        # [25, 128]
    w3m = padn(p["w3"].reshape(16, 150).T, CPAD)      # [150, 128]

    # fc1 rows are (c, h, w) in PyTorch flatten order; reorder to (h, w, c) and
    # pad c -> CPAD so the FC input is just the conv2 output reshaped (no slice,
    # no transpose).  Padded rows/cols are zero, padded activations are zero.
    wf1 = p["wf1"].astype(f32).reshape(16, 5, 5, 120).transpose(1, 2, 0, 3)
    wf1 = jnp.pad(wf1, ((0, 0), (0, 0), (0, CPAD - 16), (0, 0))).reshape(25 * CPAD, 120)
    wf1 = padn(wf1, CPAD)                                                   # [3200, 128]
    wf2 = padn(jnp.pad(p["wf2"].astype(f32), ((0, CPAD - 120), (0, 0))), CPAD)  # [128, 128]
    wf3 = padn(jnp.pad(p["wf3"].astype(f32), ((0, CPAD - 84), (0, 0))), CPAD)   # [128, 128]

    return {
        "w1m": w1m, "b1": padb(p["b1"], CPAD),
        "w3m": w3m, "b3": padb(p["b3"], CPAD),
        "wf1": wf1, "bf1": padb(p["bf1"], CPAD),
        "wf2": wf2, "bf2": padb(p["bf2"], CPAD),
        "wf3": wf3, "bf3": padb(p["bf3"], CPAD),
    }


# ----------------------------------------------------------------------------
# Forward pass
# ----------------------------------------------------------------------------
def lenet5_forward(x_nchw, pp, n_classes=5):
    bsz = x_nchw.shape[0]
    x = jnp.transpose(x_nchw.astype(jnp.float32), (0, 2, 3, 1))  # NCHW->NHWC (Cin=1: free)

    # conv1 + ReLU + 2x2 maxpool (fused):  [B,32,32,1] -> [B*14*14, 128]
    p1 = _pool_offsets(_patches(x))                   # [4, B*196, 25]
    y1 = conv_relu_pool_matmul(p1, pp["w1m"], pp["b1"])

    # conv3 + ReLU + 2x2 maxpool (fused):  -> [B*5*5, 128]
    img1 = y1.reshape(bsz, 14, 14, CPAD)[..., :6]     # real channels only for im2col
    p2 = _pool_offsets(_patches(img1))                # [4, B*25, 150]
    y2 = conv_relu_pool_matmul(p2, pp["w3m"], pp["b3"])

    # fc1+relu -> fc2+relu -> fc3+log_softmax, one kernel
    flat = y2.reshape(bsz, 25 * CPAD)                 # (h, w, cpad) flatten; wf1 pre-permuted
    out = fc_chain(flat, pp, n_classes)               # [B, 128] lane-dense
    return out[:, :n_classes]


# ----------------------------------------------------------------------------
# Params + pure-JAX reference (correctness check)
# ----------------------------------------------------------------------------
def init_params(key, n_classes=5):
    ks = jax.random.split(key, 10)

    def u(k, shape, fan_in):
        bound = 1.0 / float(fan_in) ** 0.5
        return jax.random.uniform(k, shape, jnp.float32, -bound, bound)

    return {
        "w1": u(ks[0], (6, 1, 5, 5), 25),     "b1": u(ks[1], (6,), 25),
        "w3": u(ks[2], (16, 6, 5, 5), 150),   "b3": u(ks[3], (16,), 150),
        "wf1": u(ks[4], (400, 120), 400),     "bf1": u(ks[5], (120,), 400),
        "wf2": u(ks[6], (120, 84), 120),      "bf2": u(ks[7], (84,), 120),
        "wf3": u(ks[8], (84, n_classes), 84), "bf3": u(ks[9], (n_classes,), 84),
    }


def lenet5_reference(x, p):
    def conv(x, w, b):
        y = jax.lax.conv_general_dilated(
            x, w, window_strides=(1, 1), padding="VALID",
            dimension_numbers=("NCHW", "OIHW", "NCHW"))
        return y + b[None, :, None, None]

    def pool(x):
        return jax.lax.reduce_window(
            x, -jnp.inf, jax.lax.max, (1, 1, 2, 2), (1, 1, 2, 2), "VALID")

    y = pool(jax.nn.relu(conv(x, p["w1"], p["b1"])))
    y = pool(jax.nn.relu(conv(y, p["w3"], p["b3"])))
    y = y.reshape(y.shape[0], -1)
    y = jax.nn.relu(y @ p["wf1"] + p["bf1"])
    y = jax.nn.relu(y @ p["wf2"] + p["bf2"])
    return jax.nn.log_softmax(y @ p["wf3"] + p["bf3"], axis=1)


if __name__ == "__main__":
    key = jax.random.PRNGKey(0)
    k_x, k_p = jax.random.split(key)

    # LeNet-5 input: batch=2, 1 channel, 32x32 (so flatten == 16*5*5).
    x = jax.random.normal(k_x, (2, 1, 32, 32), dtype=jnp.float32)
    params = init_params(k_p, n_classes=5)
    pp = prepare_params(params)   # one-time re-layout, outside the hot path

    fwd = jax.jit(functools.partial(lenet5_forward, n_classes=5))
    out = jax.block_until_ready(fwd(x, pp))

    ref = jax.block_until_ready(jax.jit(lenet5_reference)(x, params))
    assert out.shape == (2, 5), out.shape
    assert jnp.allclose(out, ref, atol=1e-3, rtol=1e-3), (
        f"Pallas output mismatch vs reference, max abs err = "
        f"{jnp.max(jnp.abs(out - ref))}")

    print("KERNEL_OK")
</pallas_src>

<mosaic_0001>
module attributes {stable_mosaic.version = 11 : i64} {
  func.func @_conv_pool_kernel(%arg0: i32, %arg1: memref<4x256x25xf32, #tpu.memory_space<vmem>>, %arg2: memref<25x128xf32, #tpu.memory_space<vmem>>, %arg3: memref<1x128xf32, #tpu.memory_space<vmem>>, %arg4: memref<256x128xf32, #tpu.memory_space<vmem>>) attributes {dimension_semantics = [#tpu.dimension_semantics<parallel>], iteration_bounds = array<i64: 2>, scalar_prefetch = 0 : i64, scratch_operands = 0 : i64, tpu.core_type = #tpu.core_type<tc>, window_params = [{transform_indices = @transform_0, window_bounds = array<i64: 4, 256, 25>}, {pipeline_mode = #tpu.pipeline_mode<synchronous>, transform_indices = @transform_1, window_bounds = array<i64: 25, 128>}, {pipeline_mode = #tpu.pipeline_mode<synchronous>, transform_indices = @transform_2, window_bounds = array<i64: 1, 128>}, {transform_indices = @transform_3, window_bounds = array<i64: 256, 128>}]} {
    %c0 = arith.constant 0 : index
    %c0_0 = arith.constant 0 : index
    %0 = vector.load %arg2[%c0, %c0_0] : memref<25x128xf32, #tpu.memory_space<vmem>>, vector<25x128xf32>
    %c0_1 = arith.constant 0 : index
    %c0_2 = arith.constant 0 : index
    %c0_3 = arith.constant 0 : index
    %1 = vector.load %arg1[%c0_1, %c0_2, %c0_3] : memref<4x256x25xf32, #tpu.memory_space<vmem>>, vector<1x256x25xf32>
    %2 = vector.shape_cast %1 : vector<1x256x25xf32> to vector<256x25xf32>
    %cst = arith.constant dense<0.000000e+00> : vector<256x128xf32>
    %3 = tpu.matmul %2, %0, %cst {dimension_numbers = #tpu.dot_dimension_numbers<[1], [0], [0], [1], [0, 0, 1, 1], [], []>} : vector<256x25xf32>, vector<25x128xf32>, vector<256x128xf32> -> vector<256x128xf32>
    %c1 = arith.constant 1 : index
    %c0_4 = arith.constant 0 : index
    %c0_5 = arith.constant 0 : index
    %4 = vector.load %arg1[%c1, %c0_4, %c0_5] : memref<4x256x25xf32, #tpu.memory_space<vmem>>, vector<1x256x25xf32>
    %5 = vector.shape_cast %4 : vector<1x256x25xf32> to vector<256x25xf32>
    %cst_6 = arith.constant dense<0.000000e+00> : vector<256x128xf32>
    %6 = tpu.matmul %5, %0, %cst_6 {dimension_numbers = #tpu.dot_dimension_numbers<[1], [0], [0], [1], [0, 0, 1, 1], [], []>} : vector<256x25xf32>, vector<25x128xf32>, vector<256x128xf32> -> vector<256x128xf32>
    %7 = arith.maximumf %3, %6 : vector<256x128xf32>
    %c2 = arith.constant 2 : index
    %c0_7 = arith.constant 0 : index
    %c0_8 = arith.constant 0 : index
    %8 = vector.load %arg1[%c2, %c0_7, %c0_8] : memref<4x256x25xf32, #tpu.memory_space<vmem>>, vector<1x256x25xf32>
    %9 = vector.shape_cast %8 : vector<1x256x25xf32> to vector<256x25xf32>
    %cst_9 = arith.constant dense<0.000000e+00> : vector<256x128xf32>
    %10 = tpu.matmul %9, %0, %cst_9 {dimension_numbers = #tpu.dot_dimension_numbers<[1], [0], [0], [1], [0, 0, 1, 1], [], []>} : vector<256x25xf32>, vector<25x128xf32>, vector<256x128xf32> -> vector<256x128xf32>
    %11 = arith.maximumf %7, %10 : vector<256x128xf32>
    %c3 = arith.constant 3 : index
    %c0_10 = arith.constant 0 : index
    %c0_11 = arith.constant 0 : index
    %12 = vector.load %arg1[%c3, %c0_10, %c0_11] : memref<4x256x25xf32, #tpu.memory_space<vmem>>, vector<1x256x25xf32>
    %13 = vector.shape_cast %12 : vector<1x256x25xf32> to vector<256x25xf32>
    %cst_12 = arith.constant dense<0.000000e+00> : vector<256x128xf32>
    %14 = tpu.matmul %13, %0, %cst_12 {dimension_numbers = #tpu.dot_dimension_numbers<[1], [0], [0], [1], [0, 0, 1, 1], [], []>} : vector<256x25xf32>, vector<25x128xf32>, vector<256x128xf32> -> vector<256x128xf32>
    %15 = arith.maximumf %11, %14 : vector<256x128xf32>
    %c0_13 = arith.constant 0 : index
    %c0_14 = arith.constant 0 : index
    %16 = vector.load %arg3[%c0_13, %c0_14] : memref<1x128xf32, #tpu.memory_space<vmem>>, vector<1x128xf32>
    %17 = vector.broadcast %16 : vector<1x128xf32> to vector<256x128xf32>
    %18 = arith.addf %15, %17 : vector<256x128xf32>
    %cst_15 = arith.constant 0.000000e+00 : f32
    %19 = vector.broadcast %cst_15 : f32 to vector<256x128xf32>
    %20 = arith.maximumf %18, %19 : vector<256x128xf32>
    %c0_16 = arith.constant 0 : index
    %c0_17 = arith.constant 0 : index
    %21 = vector.load %arg4[%c0_16, %c0_17] : memref<256x128xf32, #tpu.memory_space<vmem>>, vector<256x128xf32>
    tpu.vector_store %arg4[%c0_16, %c0_17], %20 {strides = array<i32>} : memref<256x128xf32, #tpu.memory_space<vmem>>, vector<256x128xf32>,
    return
  }
  func.func @transform_0(%arg0: i32) -> (i32, i32, i32) {
    %c0_i32 = arith.constant 0 : i32
    %c0_i32_0 = arith.constant 0 : i32
    %c0_i32_1 = arith.constant 0 : i32
    return %c0_i32, %arg0, %c0_i32_0 : i32, i32, i32
  }
  func.func @transform_1(%arg0: i32) -> (i32, i32) {
    %c0_i32 = arith.constant 0 : i32
    %c0_i32_0 = arith.constant 0 : i32
    %c0_i32_1 = arith.constant 0 : i32
    return %c0_i32, %c0_i32_0 : i32, i32
  }
  func.func @transform_2(%arg0: i32) -> (i32, i32) {
    %c0_i32 = arith.constant 0 : i32
    %c0_i32_0 = arith.constant 0 : i32
    %c0_i32_1 = arith.constant 0 : i32
    return %c0_i32, %c0_i32_0 : i32, i32
  }
  func.func @transform_3(%arg0: i32) -> (i32, i32) {
    %c0_i32 = arith.constant 0 : i32
    %c0_i32_0 = arith.constant 0 : i32
    return %arg0, %c0_i32 : i32, i32
  }
}

module attributes {stable_mosaic.version = 11 : i64} {
  func.func @_conv_pool_kernel(%arg0: i32, %arg1: memref<4x50x150xf32, #tpu.memory_space<vmem>>, %arg2: memref<150x128xf32, #tpu.memory_space<vmem>>, %arg3: memref<1x128xf32, #tpu.memory_space<vmem>>, %arg4: memref<50x128xf32, #tpu.memory_space<vmem>>) attributes {dimension_semantics = [#tpu.dimension_semantics<parallel>], iteration_bounds = array<i64: 1>, scalar_prefetch = 0 : i64, scratch_operands = 0 : i64, tpu.core_type = #tpu.core_type<tc>, window_params = [{transform_indices = @transform_0, window_bounds = array<i64: 4, 50, 150>}, {pipeline_mode = #tpu.pipeline_mode<synchronous>, transform_indices = @transform_1, window_bounds = array<i64: 150, 128>}, {pipeline_mode = #tpu.pipeline_mode<synchronous>, transform_indices = @transform_2, window_bounds = array<i64: 1, 128>}, {transform_indices = @transform_3, window_bounds = array<i64: 50, 128>}]} {
    %c0 = arith.constant 0 : index
    %c0_0 = arith.constant 0 : index
    %0 = vector.load %arg2[%c0, %c0_0] : memref<150x128xf32, #tpu.memory_space<vmem>>, vector<150x128xf32>
    %c0_1 = arith.constant 0 : index
    %c0_2 = arith.constant 0 : index
    %c0_3 = arith.constant 0 : index
    %1 = vector.load %arg1[%c0_1, %c0_2, %c0_3] : memref<4x50x150xf32, #tpu.memory_space<vmem>>, vector<1x50x150xf32>
    %2 = vector.shape_cast %1 : vector<1x50x150xf32> to vector<50x150xf32>
    %cst = arith.constant dense<0.000000e+00> : vector<50x128xf32>
    %3 = tpu.matmul %2, %0, %cst {dimension_numbers = #tpu.dot_dimension_numbers<[1], [0], [0], [1], [0, 0, 1, 1], [], []>} : vector<50x150xf32>, vector<150x128xf32>, vector<50x128xf32> -> vector<50x128xf32>
    %c1 = arith.constant 1 : index
    %c0_4 = arith.constant 0 : index
    %c0_5 = arith.constant 0 : index
    %4 = vector.load %arg1[%c1, %c0_4, %c0_5] : memref<4x50x150xf32, #tpu.memory_space<vmem>>, vector<1x50x150xf32>
    %5 = vector.shape_cast %4 : vector<1x50x150xf32> to vector<50x150xf32>
    %cst_6 = arith.constant dense<0.000000e+00> : vector<50x128xf32>
    %6 = tpu.matmul %5, %0, %cst_6 {dimension_numbers = #tpu.dot_dimension_numbers<[1], [0], [0], [1], [0, 0, 1, 1], [], []>} : vector<50x150xf32>, vector<150x128xf32>, vector<50x128xf32> -> vector<50x128xf32>
    %7 = arith.maximumf %3, %6 : vector<50x128xf32>
    %c2 = arith.constant 2 : index
    %c0_7 = arith.constant 0 : index
    %c0_8 = arith.constant 0 : index
    %8 = vector.load %arg1[%c2, %c0_7, %c0_8] : memref<4x50x150xf32, #tpu.memory_space<vmem>>, vector<1x50x150xf32>
    %9 = vector.shape_cast %8 : vector<1x50x150xf32> to vector<50x150xf32>
    %cst_9 = arith.constant dense<0.000000e+00> : vector<50x128xf32>
    %10 = tpu.matmul %9, %0, %cst_9 {dimension_numbers = #tpu.dot_dimension_numbers<[1], [0], [0], [1], [0, 0, 1, 1], [], []>} : vector<50x150xf32>, vector<150x128xf32>, vector<50x128xf32> -> vector<50x128xf32>
    %11 = arith.maximumf %7, %10 : vector<50x128xf32>
    %c3 = arith.constant 3 : index
    %c0_10 = arith.constant 0 : index
    %c0_11 = arith.constant 0 : index
    %12 = vector.load %arg1[%c3, %c0_10, %c0_11] : memref<4x50x150xf32, #tpu.memory_space<vmem>>, vector<1x50x150xf32>
    %13 = vector.shape_cast %12 : vector<1x50x150xf32> to vector<50x150xf32>
    %cst_12 = arith.constant dense<0.000000e+00> : vector<50x128xf32>
    %14 = tpu.matmul %13, %0, %cst_12 {dimension_numbers = #tpu.dot_dimension_numbers<[1], [0], [0], [1], [0, 0, 1, 1], [], []>} : vector<50x150xf32>, vector<150x128xf32>, vector<50x128xf32> -> vector<50x128xf32>
    %15 = arith.maximumf %11, %14 : vector<50x128xf32>
    %c0_13 = arith.constant 0 : index
    %c0_14 = arith.constant 0 : index
    %16 = vector.load %arg3[%c0_13, %c0_14] : memref<1x128xf32, #tpu.memory_space<vmem>>, vector<1x128xf32>
    %17 = vector.broadcast %16 : vector<1x128xf32> to vector<50x128xf32>
    %18 = arith.addf %15, %17 : vector<50x128xf32>
    %cst_15 = arith.constant 0.000000e+00 : f32
    %19 = vector.broadcast %cst_15 : f32 to vector<50x128xf32>
    %20 = arith.maximumf %18, %19 : vector<50x128xf32>
    %c0_16 = arith.constant 0 : index
    %c0_17 = arith.constant 0 : index
    %21 = vector.load %arg4[%c0_16, %c0_17] : memref<50x128xf32, #tpu.memory_space<vmem>>, vector<50x128xf32>
    tpu.vector_store %arg4[%c0_16, %c0_17], %20 {strides = array<i32>} : memref<50x128xf32, #tpu.memory_space<vmem>>, vector<50x128xf32>,
    return
  }
  func.func @transform_0(%arg0: i32) -> (i32, i32, i32) {
    %c0_i32 = arith.constant 0 : i32
    %c0_i32_0 = arith.constant 0 : i32
    %c0_i32_1 = arith.constant 0 : i32
    return %c0_i32, %arg0, %c0_i32_0 : i32, i32, i32
  }
  func.func @transform_1(%arg0: i32) -> (i32, i32) {
    %c0_i32 = arith.constant 0 : i32
    %c0_i32_0 = arith.constant 0 : i32
    %c0_i32_1 = arith.constant 0 : i32
    return %c0_i32, %c0_i32_0 : i32, i32
  }
  func.func @transform_2(%arg0: i32) -> (i32, i32) {
    %c0_i32 = arith.constant 0 : i32
    %c0_i32_0 = arith.constant 0 : i32
    %c0_i32_1 = arith.constant 0 : i32
    return %c0_i32, %c0_i32_0 : i32, i32
  }
  func.func @transform_3(%arg0: i32) -> (i32, i32) {
    %c0_i32 = arith.constant 0 : i32
    %c0_i32_0 = arith.constant 0 : i32
    return %arg0, %c0_i32 : i32, i32
  }
}

module attributes {stable_mosaic.version = 11 : i64} {
  func.func @_fc_chain_kernel(%arg0: memref<2x3200xf32, #tpu.memory_space<vmem>>, %arg1: memref<3200x128xf32, #tpu.memory_space<vmem>>, %arg2: memref<1x128xf32, #tpu.memory_space<vmem>>, %arg3: memref<128x128xf32, #tpu.memory_space<vmem>>, %arg4: memref<1x128xf32, #tpu.memory_space<vmem>>, %arg5: memref<128x128xf32, #tpu.memory_space<vmem>>, %arg6: memref<1x128xf32, #tpu.memory_space<vmem>>, %arg7: memref<2x128xf32, #tpu.memory_space<vmem>>) attributes {dimension_semantics = [], scalar_prefetch = 0 : i64, scratch_operands = 0 : i64, tpu.core_type = #tpu.core_type<tc>} {
    %c0 = arith.constant 0 : index
    %c0_0 = arith.constant 0 : index
    %0 = vector.load %arg0[%c0, %c0_0] : memref<2x3200xf32, #tpu.memory_space<vmem>>, vector<2x3200xf32>
    %c0_1 = arith.constant 0 : index
    %c0_2 = arith.constant 0 : index
    %1 = vector.load %arg1[%c0_1, %c0_2] : memref<3200x128xf32, #tpu.memory_space<vmem>>, vector<3200x128xf32>
    %cst = arith.constant dense<0.000000e+00> : vector<2x128xf32>
    %2 = tpu.matmul %0, %1, %cst {dimension_numbers = #tpu.dot_dimension_numbers<[1], [0], [0], [1], [0, 0, 1, 1], [], []>} : vector<2x3200xf32>, vector<3200x128xf32>, vector<2x128xf32> -> vector<2x128xf32>
    %c0_3 = arith.constant 0 : index
    %c0_4 = arith.constant 0 : index
    %3 = vector.load %arg2[%c0_3, %c0_4] : memref<1x128xf32, #tpu.memory_space<vmem>>, vector<1x128xf32>
    %4 = vector.broadcast %3 : vector<1x128xf32> to vector<2x128xf32>
    %5 = arith.addf %2, %4 : vector<2x128xf32>
    %cst_5 = arith.constant 0.000000e+00 : f32
    %6 = vector.broadcast %cst_5 : f32 to vector<2x128xf32>
    %7 = arith.maximumf %5, %6 : vector<2x128xf32>
    %c0_6 = arith.constant 0 : index
    %c0_7 = arith.constant 0 : index
    %8 = vector.load %arg3[%c0_6, %c0_7] : memref<128x128xf32, #tpu.memory_space<vmem>>, vector<128x128xf32>
    %cst_8 = arith.constant dense<0.000000e+00> : vector<2x128xf32>
    %9 = tpu.matmul %7, %8, %cst_8 {dimension_numbers = #tpu.dot_dimension_numbers<[1], [0], [0], [1], [0, 0, 1, 1], [], []>} : vector<2x128xf32>, vector<128x128xf32>, vector<2x128xf32> -> vector<2x128xf32>
    %c0_9 = arith.constant 0 : index
    %c0_10 = arith.constant 0 : index
    %10 = vector.load %arg4[%c0_9, %c0_10] : memref<1x128xf32, #tpu.memory_space<vmem>>, vector<1x128xf32>
    %11 = vector.broadcast %10 : vector<1x128xf32> to vector<2x128xf32>
    %12 = arith.addf %9, %11 : vector<2x128xf32>
    %cst_11 = arith.constant 0.000000e+00 : f32
    %13 = vector.broadcast %cst_11 : f32 to vector<2x128xf32>
    %14 = arith.maximumf %12, %13 : vector<2x128xf32>
    %c0_12 = arith.constant 0 : index
    %c0_13 = arith.constant 0 : index
    %15 = vector.load %arg5[%c0_12, %c0_13] : memref<128x128xf32, #tpu.memory_space<vmem>>, vector<128x128xf32>
    %cst_14 = arith.constant dense<0.000000e+00> : vector<2x128xf32>
    %16 = tpu.matmul %14, %15, %cst_14 {dimension_numbers = #tpu.dot_dimension_numbers<[1], [0], [0], [1], [0, 0, 1, 1], [], []>} : vector<2x128xf32>, vector<128x128xf32>, vector<2x128xf32> -> vector<2x128xf32>
    %c0_15 = arith.constant 0 : index
    %c0_16 = arith.constant 0 : index
    %17 = vector.load %arg6[%c0_15, %c0_16] : memref<1x128xf32, #tpu.memory_space<vmem>>, vector<1x128xf32>
    %18 = vector.broadcast %17 : vector<1x128xf32> to vector<2x128xf32>
    %19 = arith.addf %16, %18 : vector<2x128xf32>
    %20 = tpu.iota {dimensions = array<i32: 1>} : vector<2x128xi32>
    %c5_i32 = arith.constant 5 : i32
    %21 = vector.broadcast %c5_i32 : i32 to vector<2x128xi32>
    %22 = arith.cmpi slt, %20, %21 : vector<2x128xi32>
    %cst_17 = arith.constant -1.000000e+30 : f32
    %23 = vector.broadcast %cst_17 : f32 to vector<2x128xf32>
    %24 = arith.select %22, %19, %23 : vector<2x128xi1>, vector<2x128xf32>
    %cst_18 = arith.constant dense<0xFF800000> : vector<2xf32>
    %25 = vector.multi_reduction <maximumf>, %24, %cst_18 [1] : vector<2x128xf32> to vector<2xf32>
    %26 = vector.shape_cast %25 : vector<2xf32> to vector<2x1xf32>
    %27 = vector.broadcast %26 : vector<2x1xf32> to vector<2x128xf32>
    %28 = arith.subf %24, %27 : vector<2x128xf32>
    %29 = math.exp %28 : vector<2x128xf32>
    %cst_19 = arith.constant dense<0.000000e+00> : vector<2xf32>
    %30 = vector.multi_reduction <add>, %29, %cst_19 [1] : vector<2x128xf32> to vector<2xf32>
    %31 = vector.shape_cast %30 : vector<2xf32> to vector<2x1xf32>
    %32 = math.log %31 : vector<2x1xf32>
    %33 = vector.broadcast %32 : vector<2x1xf32> to vector<2x128xf32>
    %34 = arith.subf %28, %33 : vector<2x128xf32>
    %c0_20 = arith.constant 0 : index
    %c0_21 = arith.constant 0 : index
    %35 = vector.load %arg7[%c0_20, %c0_21] : memref<2x128xf32, #tpu.memory_space<vmem>>, vector<2x128xf32>
    tpu.vector_store %arg7[%c0_20, %c0_21], %34 {strides = array<i32>} : memref<2x128xf32, #tpu.memory_space<vmem>>, vector<2x128xf32>,
    return
  }
}

</mosaic_0001>

<bundles_post_ra>
// kernel: lenet5_forward.3
= control target key start
LH: loop header
LB: loop body
LE: loop exit
PB: predicated region body
PF: predicated region fallthrough
CT: control target
= control target key end

     0   :  { %s2262_s12 = smov 0   ;;  %s2264_s13 = smov 0   ;;  %s2915_s0 = inlined_call_operand.vmem [shape: f32[4,512,25], index: 0, kind: input, shape index: {}]   ;;  %s2916_s1 = inlined_call_operand.vmem [shape: f32[25,128], index: 1, kind: input, shape index: {}]   ;;  %s2917_s2 = inlined_call_operand.vmem [shape: f32[1,128], index: 2, kind: input, shape index: {}]   ;;  %s2918_s3 = inlined_call_operand.vmem [shape: f32[512,128], index: 3, kind: output, shape index: {}]  }
   0x1   :  { %s2266_s14 = smov 0  }
   0x2 LB: > { %s1951_s15 = sadd.s32 4294967295, %s2240_s14   ;;  %s2279_s16 = sadd.s32 1, %s2240_s14   ;;  %s2240_s14 = sphi %s2266_s14, %s2921_s14   ;;  %s2236_s13 = sphi %s2264_s13, %s2920_s13   ;;  %s2232_s12 = sphi %s2262_s12, %s2919_s12  }
   0x3   : > { %s17_s17 = ssub.s32 %s2240_s14, %s2279_s16  ;;  %s20_s18 = sadd.s32 1, %s2236_s13 }
   0x4   : > { %p18_p0 = scmp.eq.s32.totalorder %s17_s17, 0  ;;  %p27_p1 = scmp.ne.s32.totalorder %s2236_s13, %s2232_s12 }
   0x5   : > { %p28_p2 = scmp.eq.s32.totalorder %s2240_s14, 0  ;;  %p1954_p4 = scmp.ge.s32.totalorder %s2240_s14, 2 }
   0x6   : > { %s2288_s19 = scalar_select %p18_p0, %s2236_s13, %s20_s18  }
   0x7   : > { %p29_p3 = por %p28_p2, %p27_p1  ;;  %127 = sbr.rel (%p1954_p4) target bundleno = 144 (0x90), region = 24 }
   0xc   : > { %130 = sbr.rel (!%p29_p3) target bundleno = 144 (0x90), region = 28  ;;  %s132_s20 = sand.u32 (%p29_p3), 1, %s2236_s13  }
   0xd   : > { %s2192_s21 = sshll.u32 (%p29_p3), %s2240_s14, 8  ;;  %s1955_s22 = sshll.u32 (%p29_p3), %s132_s20, 10 }
   0xe   : > { %s2296_s25 = scalar_lea.vmem (%p29_p3), %s2915_s0, %s2192_s21  ;;  %s2301_s26 = scalar_lea.vmem (%p29_p3), [#allocation2], %s1955_s22 }
   0xf   : > { %v420_v0 = vld [vmem:[%s2296_s25] sm:$0xff] (%p29_p3)  ;;  %v422_v1 = vld [vmem:[%s2296_s25 + $0x8] sm:$0xff] (%p29_p3)  ;;  %v424_v2 = vld [vmem:[%s2296_s25 + $0x10] sm:$0xff] (%p29_p3) }
  0x10   : > { %421 = vst [vmem:[%s2301_s26] sm:$0xff] (%p29_p3), %v420_v0  ;;  %v426_v3 = vld [vmem:[%s2296_s25 + $0x18] sm:$0xff] (%p29_p3)  ;;  %v428_v4 = vld [vmem:[%s2296_s25 + $0x20] sm:$0xff] (%p29_p3)  ;;  %v430_v5 = vld [vmem:[%s2296_s25 + $0x28] sm:$0xff] (%p29_p3) }
  0x11   : > { %423 = vst [vmem:[%s2301_s26 + $0x8] sm:$0xff] %v422_v1  ;;  %v432_v6 = vld [vmem:[%s2296_s25 + $0x30] sm:$0xff]  ;;  %v434_v7 = vld [vmem:[%s2296_s25 + $0x38] sm:$0xff]  ;;  %v436_v8 = vld [vmem:[%s2296_s25 + $0x40] sm:$0xff] }
  0x12   : > { %425 = vst [vmem:[%s2301_s26 + $0x10] sm:$0xff] %v424_v2  ;;  %v438_v9 = vld [vmem:[%s2296_s25 + $0x48] sm:$0xff]  ;;  %v440_v10 = vld [vmem:[%s2296_s25 + $0x50] sm:$0xff]  ;;  %v442_v11 = vld [vmem:[%s2296_s25 + $0x58] sm:$0xff] }
  0x13   : > { %427 = vst [vmem:[%s2301_s26 + $0x18] sm:$0xff] %v426_v3  ;;  %v444_v12 = vld [vmem:[%s2296_s25 + $0x60] sm:$0xff]  ;;  %v446_v13 = vld [vmem:[%s2296_s25 + $0x68] sm:$0xff]  ;;  %v448_v14 = vld [vmem:[%s2296_s25 + $0x70] sm:$0xff] }
  0x14   : > { %429 = vst [vmem:[%s2301_s26 + $0x20] sm:$0xff] %v428_v4  ;;  %v450_v15 = vld [vmem:[%s2296_s25 + $0x78] sm:$0xff]  ;;  %v452_v16 = vld [vmem:[%s2296_s25 + $0x80] sm:$0xff]  ;;  %v454_v17 = vld [vmem:[%s2296_s25 + $0x88] sm:$0xff] }
  0x15   : > { %431 = vst [vmem:[%s2301_s26 + $0x28] sm:$0xff] %v430_v5  ;;  %v456_v18 = vld [vmem:[%s2296_s25 + $0x90] sm:$0xff]  ;;  %v458_v19 = vld [vmem:[%s2296_s25 + $0x98] sm:$0xff]  ;;  %v460_v20 = vld [vmem:[%s2296_s25 + $0xa0] sm:$0xff] }
  0x16   : > { %433 = vst [vmem:[%s2301_s26 + $0x30] sm:$0xff] %v432_v6  ;;  %v462_v21 = vld [vmem:[%s2296_s25 + $0xa8] sm:$0xff]  ;;  %v464_v22 = vld [vmem:[%s2296_s25 + $0xb0] sm:$0xff]  ;;  %v466_v23 = vld [vmem:[%s2296_s25 + $0xb8] sm:$0xff] }
  0x17   : > { %435 = vst [vmem:[%s2301_s26 + $0x38] sm:$0xff] %v434_v7  ;;  %v468_v24 = vld [vmem:[%s2296_s25 + $0xc0] sm:$0xff]  ;;  %v470_v25 = vld [vmem:[%s2296_s25 + $0xc8] sm:$0xff]  ;;  %v472_v26 = vld [vmem:[%s2296_s25 + $0xd0] sm:$0xff] }
  0x18   : > { %437 = vst [vmem:[%s2301_s26 + $0x40] sm:$0xff] %v436_v8  ;;  %v474_v27 = vld [vmem:[%s2296_s25 + $0xd8] sm:$0xff]  ;;  %v476_v28 = vld [vmem:[%s2296_s25 + $0xe0] sm:$0xff]  ;;  %v478_v29 = vld [vmem:[%s2296_s25 + $0xe8] sm:$0xff] }
  0x19   : > { %439 = vst [vmem:[%s2301_s26 + $0x48] sm:$0xff] %v438_v9  ;;  %v480_v30 = vld [vmem:[%s2296_s25 + $0xf0] sm:$0xff]  ;;  %v482_v31 = vld [vmem:[%s2296_s25 + $0xf8] sm:$0xff]  ;;  %v484_v32 = vld [vmem:[%s2296_s25 + $0x200] sm:$0xff] }
  0x1a   : > { %441 = vst [vmem:[%s2301_s26 + $0x50] sm:$0xff] %v440_v10  ;;  %v486_v33 = vld [vmem:[%s2296_s25 + $0x208] sm:$0xff]  ;;  %v488_v34 = vld [vmem:[%s2296_s25 + $0x210] sm:$0xff]  ;;  %v490_v35 = vld [vmem:[%s2296_s25 + $0x218] sm:$0xff] }
  0x1b   : > { %443 = vst [vmem:[%s2301_s26 + $0x58] sm:$0xff] %v442_v11  ;;  %v492_v36 = vld [vmem:[%s2296_s25 + $0x220] sm:$0xff]  ;;  %v494_v37 = vld [vmem:[%s2296_s25 + $0x228] sm:$0xff]  ;;  %v496_v38 = vld [vmem:[%s2296_s25 + $0x230] sm:$0xff] }
  0x1c   : > { %445 = vst [vmem:[%s2301_s26 + $0x60] sm:$0xff] %v444_v12  ;;  %v498_v39 = vld [vmem:[%s2296_s25 + $0x238] sm:$0xff]  ;;  %v500_v40 = vld [vmem:[%s2296_s25 + $0x240] sm:$0xff]  ;;  %v502_v41 = vld [vmem:[%s2296_s25 + $0x248] sm:$0xff] }
  0x1d   : > { %447 = vst [vmem:[%s2301_s26 + $0x68] sm:$0xff] %v446_v13  ;;  %v504_v42 = vld [vmem:[%s2296_s25 + $0x250] sm:$0xff]  ;;  %v506_v43 = vld [vmem:[%s2296_s25 + $0x258] sm:$0xff]  ;;  %v508_v44 = vld [vmem:[%s2296_s25 + $0x260] sm:$0xff] }
  0x1e   : > { %449 = vst [vmem:[%s2301_s26 + $0x70] sm:$0xff] %v448_v14  ;;  %v510_v45 = vld [vmem:[%s2296_s25 + $0x268] sm:$0xff]  ;;  %v512_v46 = vld [vmem:[%s2296_s25 + $0x270] sm:$0xff]  ;;  %v514_v47 = vld [vmem:[%s2296_s25 + $0x278] sm:$0xff] }
  0x1f   : > { %451 = vst [vmem:[%s2301_s26 + $0x78] sm:$0xff] %v450_v15  ;;  %v516_v48 = vld [vmem:[%s2296_s25 + $0x280] sm:$0xff]  ;;  %v518_v49 = vld [vmem:[%s2296_s25 + $0x288] sm:$0xff]  ;;  %v520_v50 = vld [vmem:[%s2296_s25 + $0x290] sm:$0xff] }
  0x20   : > { %453 = vst [vmem:[%s2301_s26 + $0x80] sm:$0xff] %v452_v16  ;;  %v522_v51 = vld [vmem:[%s2296_s25 + $0x298] sm:$0xff]  ;;  %v524_v52 = vld [vmem:[%s2296_s25 + $0x2a0] sm:$0xff]  ;;  %v526_v53 = vld [vmem:[%s2296_s25 + $0x2a8] sm:$0xff] }
  0x21   : > { %455 = vst [vmem:[%s2301_s26 + $0x88] sm:$0xff] %v454_v17  ;;  %v528_v54 = vld [vmem:[%s2296_s25 + $0x2b0] sm:$0xff]  ;;  %v530_v55 = vld [vmem:[%s2296_s25 + $0x2b8] sm:$0xff]  ;;  %v532_v56 = vld [vmem:[%s2296_s25 + $0x2c0] sm:$0xff] }
  0x22   : > { %457 = vst [vmem:[%s2301_s26 + $0x90] sm:$0xff] %v456_v18  ;;  %v534_v57 = vld [vmem:[%s2296_s25 + $0x2c8] sm:$0xff]  ;;  %v536_v58 = vld [vmem:[%s2296_s25 + $0x2d0] sm:$0xff]  ;;  %v538_v59 = vld [vmem:[%s2296_s25 + $0x2d8] sm:$0xff] }
  0x23   : > { %459 = vst [vmem:[%s2301_s26 + $0x98] sm:$0xff] %v458_v19  ;;  %v540_v60 = vld [vmem:[%s2296_s25 + $0x2e0] sm:$0xff]  ;;  %v542_v61 = vld [vmem:[%s2296_s25 + $0x2e8] sm:$0xff]  ;;  %v544_v62 = vld [vmem:[%s2296_s25 + $0x2f0] sm:$0xff] }
  0x24   : > { %461 = vst [vmem:[%s2301_s26 + $0xa0] sm:$0xff] %v460_v20  ;;  %v546_v63 = vld [vmem:[%s2296_s25 + $0x2f8] sm:$0xff]  ;;  %v548_v0 = vld [vmem:[%s2296_s25 + $0x400] sm:$0xff]  ;;  %v550_v1 = vld [vmem:[%s2296_s25 + $0x408] sm:$0xff] }
  0x25   : > { %463 = vst [vmem:[%s2301_s26 + $0xa8] sm:$0xff] %v462_v21  ;;  %v552_v2 = vld [vmem:[%s2296_s25 + $0x410] sm:$0xff]  ;;  %v554_v3 = vld [vmem:[%s2296_s25 + $0x418] sm:$0xff]  ;;  %v556_v4 = vld [vmem:[%s2296_s25 + $0x420] sm:$0xff] }
  0x26   : > { %465 = vst [vmem:[%s2301_s26 + $0xb0] sm:$0xff] %v464_v22  ;;  %v558_v5 = vld [vmem:[%s2296_s25 + $0x428] sm:$0xff]  ;;  %v560_v6 = vld [vmem:[%s2296_s25 + $0x430] sm:$0xff]  ;;  %v562_v7 = vld [vmem:[%s2296_s25 + $0x438] sm:$0xff] }
  0x27   : > { %467 = vst [vmem:[%s2301_s26 + $0xb8] sm:$0xff] %v466_v23  ;;  %v564_v8 = vld [vmem:[%s2296_s25 + $0x440] sm:$0xff]  ;;  %v566_v9 = vld [vmem:[%s2296_s25 + $0x448] sm:$0xff]  ;;  %v568_v10 = vld [vmem:[%s2296_s25 + $0x450] sm:$0xff] }
  0x28   : > { %469 = vst [vmem:[%s2301_s26 + $0xc0] sm:$0xff] %v468_v24  ;;  %v570_v11 = vld [vmem:[%s2296_s25 + $0x458] sm:$0xff]  ;;  %v572_v12 = vld [vmem:[%s2296_s25 + $0x460] sm:$0xff]  ;;  %v574_v13 = vld [vmem:[%s2296_s25 + $0x468] sm:$0xff] }
  0x29   : > { %471 = vst [vmem:[%s2301_s26 + $0xc8] sm:$0xff] %v470_v25  ;;  %v576_v14 = vld [vmem:[%s2296_s25 + $0x470] sm:$0xff]  ;;  %v578_v15 = vld [vmem:[%s2296_s25 + $0x478] sm:$0xff]  ;;  %v580_v16 = vld [vmem:[%s2296_s25 + $0x480] sm:$0xff] }
  0x2a   : > { %473 = vst [vmem:[%s2301_s26 + $0xd0] sm:$0xff] %v472_v26  ;;  %v582_v17 = vld [vmem:[%s2296_s25 + $0x488] sm:$0xff]  ;;  %v584_v18 = vld [vmem:[%s2296_s25 + $0x490] sm:$0xff]  ;;  %v586_v19 = vld [vmem:[%s2296_s25 + $0x498] sm:$0xff] }
  0x2b   : > { %475 = vst [vmem:[%s2301_s26 + $0xd8] sm:$0xff] %v474_v27  ;;  %v588_v20 = vld [vmem:[%s2296_s25 + $0x4a0] sm:$0xff]  ;;  %v590_v21 = vld [vmem:[%s2296_s25 + $0x4a8] sm:$0xff]  ;;  %v592_v22 = vld [vmem:[%s2296_s25 + $0x4b0] sm:$0xff] }
  0x2c   : > { %477 = vst [vmem:[%s2301_s26 + $0xe0] sm:$0xff] %v476_v28  ;;  %v594_v23 = vld [vmem:[%s2296_s25 + $0x4b8] sm:$0xff]  ;;  %v596_v24 = vld [vmem:[%s2296_s25 + $0x4c0] sm:$0xff]  ;;  %v598_v25 = vld [vmem:[%s2296_s25 + $0x4c8] sm:$0xff] }
  0x2d   : > { %479 = vst [vmem:[%s2301_s26 + $0xe8] sm:$0xff] %v478_v29  ;;  %v600_v26 = vld [vmem:[%s2296_s25 + $0x4d0] sm:$0xff]  ;;  %v602_v27 = vld [vmem:[%s2296_s25 + $0x4d8] sm:$0xff]  ;;  %v604_v28 = vld [vmem:[%s2296_s25 + $0x4e0] sm:$0xff] }
  0x2e   : > { %481 = vst [vmem:[%s2301_s26 + $0xf0] sm:$0xff] %v480_v30  ;;  %v606_v29 = vld [vmem:[%s2296_s25 + $0x4e8] sm:$0xff]  ;;  %v608_v30 = vld [vmem:[%s2296_s25 + $0x4f0] sm:$0xff] }
  0x2f   : > { %483 = vst [vmem:[%s2301_s26 + $0xf8] sm:$0xff] %v482_v31  ;;  %v610_v31 = vld [vmem:[%s2296_s25 + $0x4f8] sm:$0xff] }
  0x30   : > { %485 = vst [vmem:[%s2301_s26 + $0x100] sm:$0xff] %v484_v32  ;;  %v612_v32 = vld [vmem:[%s2296_s25 + $0x600] sm:$0xff] }
  0x31   : > { %487 = vst [vmem:[%s2301_s26 + $0x108] sm:$0xff] %v486_v33  ;;  %v614_v33 = vld [vmem:[%s2296_s25 + $0x608] sm:$0xff] }
  0x32   : > { %489 = vst [vmem:[%s2301_s26 + $0x110] sm:$0xff] %v488_v34  ;;  %v616_v34 = vld [vmem:[%s2296_s25 + $0x610] sm:$0xff] }
  0x33   : > { %491 = vst [vmem:[%s2301_s26 + $0x118] sm:$0xff] %v490_v35  ;;  %v618_v35 = vld [vmem:[%s2296_s25 + $0x618] sm:$0xff] }
  0x34   : > { %493 = vst [vmem:[%s2301_s26 + $0x120] sm:$0xff] %v492_v36  ;;  %v620_v36 = vld [vmem:[%s2296_s25 + $0x620] sm:$0xff] }
  0x35   : > { %495 = vst [vmem:[%s2301_s26 + $0x128] sm:$0xff] %v494_v37  ;;  %v622_v37 = vld [vmem:[%s2296_s25 + $0x628] sm:$0xff] }
  0x36   : > { %497 = vst [vmem:[%s2301_s26 + $0x130] sm:$0xff] %v496_v38  ;;  %v624_v38 = vld [vmem:[%s2296_s25 + $0x630] sm:$0xff] }
  0x37   : > { %499 = vst [vmem:[%s2301_s26 + $0x138] sm:$0xff] %v498_v39  ;;  %v626_v39 = vld [vmem:[%s2296_s25 + $0x638] sm:$0xff] }
  0x38   : > { %501 = vst [vmem:[%s2301_s26 + $0x140] sm:$0xff] %v500_v40  ;;  %v628_v40 = vld [vmem:[%s2296_s25 + $0x640] sm:$0xff] }
  0x39   : > { %503 = vst [vmem:[%s2301_s26 + $0x148] sm:$0xff] %v502_v41  ;;  %v630_v41 = vld [vmem:[%s2296_s25 + $0x648] sm:$0xff] }
  0x3a   : > { %505 = vst [vmem:[%s2301_s26 + $0x150] sm:$0xff] %v504_v42  ;;  %v632_v42 = vld [vmem:[%s2296_s25 + $0x650] sm:$0xff] }
  0x3b   : > { %507 = vst [vmem:[%s2301_s26 + $0x158] sm:$0xff] %v506_v43  ;;  %v634_v43 = vld [vmem:[%s2296_s25 + $0x658] sm:$0xff] }
  0x3c   : > { %509 = vst [vmem:[%s2301_s26 + $0x160] sm:$0xff] %v508_v44  ;;  %v636_v44 = vld [vmem:[%s2296_s25 + $0x660] sm:$0xff] }
  0x3d   : > { %511 = vst [vmem:[%s2301_s26 + $0x168] sm:$0xff] %v510_v45  ;;  %v638_v45 = vld [vmem:[%s2296_s25 + $0x668] sm:$0xff] }
  0x3e   : > { %513 = vst [vmem:[%s2301_s26 + $0x170] sm:$0xff] %v512_v46  ;;  %v640_v46 = vld [vmem:[%s2296_s25 + $0x670] sm:$0xff] }
  0x3f   : > { %515 = vst [vmem:[%s2301_s26 + $0x178] sm:$0xff] %v514_v47  ;;  %v642_v47 = vld [vmem:[%s2296_s25 + $0x678] sm:$0xff] }
  0x40   : > { %517 = vst [vmem:[%s2301_s26 + $0x180] sm:$0xff] %v516_v48  ;;  %v644_v48 = vld [vmem:[%s2296_s25 + $0x680] sm:$0xff] }
  0x41   : > { %519 = vst [vmem:[%s2301_s26 + $0x188] sm:$0xff] %v518_v49  ;;  %v646_v49 = vld [vmem:[%s2296_s25 + $0x688] sm:$0xff] }
  0x42   : > { %521 = vst [vmem:[%s2301_s26 + $0x190] sm:$0xff] %v520_v50  ;;  %v648_v50 = vld [vmem:[%s2296_s25 + $0x690] sm:$0xff] }
  0x43   : > { %523 = vst [vmem:[%s2301_s26 + $0x198] sm:$0xff] %v522_v51  ;;  %v650_v51 = vld [vmem:[%s2296_s25 + $0x698] sm:$0xff] }
  0x44   : > { %525 = vst [vmem:[%s2301_s26 + $0x1a0] sm:$0xff] %v524_v52  ;;  %v652_v52 = vld [vmem:[%s2296_s25 + $0x6a0] sm:$0xff] }
  0x45   : > { %527 = vst [vmem:[%s2301_s26 + $0x1a8] sm:$0xff] %v526_v53  ;;  %v654_v53 = vld [vmem:[%s2296_s25 + $0x6a8] sm:$0xff] }
  0x46   : > { %529 = vst [vmem:[%s2301_s26 + $0x1b0] sm:$0xff] %v528_v54  ;;  %v656_v54 = vld [vmem:[%s2296_s25 + $0x6b0] sm:$0xff] }
  0x47   : > { %531 = vst [vmem:[%s2301_s26 + $0x1b8] sm:$0xff] %v530_v55  ;;  %v658_v55 = vld [vmem:[%s2296_s25 + $0x6b8] sm:$0xff] }
  0x48   : > { %533 = vst [vmem:[%s2301_s26 + $0x1c0] sm:$0xff] %v532_v56  ;;  %v660_v56 = vld [vmem:[%s2296_s25 + $0x6c0] sm:$0xff] }
  0x49   : > { %535 = vst [vmem:[%s2301_s26 + $0x1c8] sm:$0xff] %v534_v57  ;;  %v662_v57 = vld [vmem:[%s2296_s25 + $0x6c8] sm:$0xff] }
  0x4a   : > { %537 = vst [vmem:[%s2301_s26 + $0x1d0] sm:$0xff] %v536_v58  ;;  %v664_v58 = vld [vmem:[%s2296_s25 + $0x6d0] sm:$0xff] }
  0x4b   : > { %539 = vst [vmem:[%s2301_s26 + $0x1d8] sm:$0xff] %v538_v59  ;;  %v666_v59 = vld [vmem:[%s2296_s25 + $0x6d8] sm:$0xff] }
  0x4c   : > { %541 = vst [vmem:[%s2301_s26 + $0x1e0] sm:$0xff] %v540_v60  ;;  %v668_v60 = vld [vmem:[%s2296_s25 + $0x6e0] sm:$0xff] }
  0x4d   : > { %543 = vst [vmem:[%s2301_s26 + $0x1e8] sm:$0xff] %v542_v61  ;;  %v670_v61 = vld [vmem:[%s2296_s25 + $0x6e8] sm:$0xff] }
  0x4e   : > { %545 = vst [vmem:[%s2301_s26 + $0x1f0] sm:$0xff] %v544_v62  ;;  %v672_v62 = vld [vmem:[%s2296_s25 + $0x6f0] sm:$0xff] }
  0x4f   : > { %547 = vst [vmem:[%s2301_s26 + $0x1f8] sm:$0xff] %v546_v63  ;;  %v674_v63 = vld [vmem:[%s2296_s25 + $0x6f8] sm:$0xff] }
  0x50   : > { %549 = vst [vmem:[%s2301_s26 + $0x200] sm:$0xff] %v548_v0 }
  0x51   : > { %551 = vst [vmem:[%s2301_s26 + $0x208] sm:$0xff] %v550_v1 }
  0x52   : > { %553 = vst [vmem:[%s2301_s26 + $0x210] sm:$0xff] %v552_v2 }
  0x53   : > { %555 = vst [vmem:[%s2301_s26 + $0x218] sm:$0xff] %v554_v3 }
  0x54   : > { %557 = vst [vmem:[%s2301_s26 + $0x220] sm:$0xff] %v556_v4 }
  0x55   : > { %559 = vst [vmem:[%s2301_s26 + $0x228] sm:$0xff] %v558_v5 }
  0x56   : > { %561 = vst [vmem:[%s2301_s26 + $0x230] sm:$0xff] %v560_v6 }
  0x57   : > { %563 = vst [vmem:[%s2301_s26 + $0x238] sm:$0xff] %v562_v7 }
  0x58   : > { %565 = vst [vmem:[%s2301_s26 + $0x240] sm:$0xff] %v564_v8 }
  0x59   : > { %567 = vst [vmem:[%s2301_s26 + $0x248] sm:$0xff] %v566_v9 }
  0x5a   : > { %569 = vst [vmem:[%s2301_s26 + $0x250] sm:$0xff] %v568_v10 }
  0x5b   : > { %571 = vst [vmem:[%s2301_s26 + $0x258] sm:$0xff] %v570_v11 }
  0x5c   : > { %573 = vst [vmem:[%s2301_s26 + $0x260] sm:$0xff] %v572_v12 }
  0x5d   : > { %575 = vst [vmem:[%s2301_s26 + $0x268] sm:$0xff] %v574_v13 }
  0x5e   : > { %577 = vst [vmem:[%s2301_s26 + $0x270] sm:$0xff] %v576_v14 }
  0x5f   : > { %579 = vst [vmem:[%s2301_s26 + $0x278] sm:$0xff] %v578_v15 }
  0x60   : > { %581 = vst [vmem:[%s2301_s26 + $0x280] sm:$0xff] %v580_v16 }
  0x61   : > { %583 = vst [vmem:[%s2301_s26 + $0x288] sm:$0xff] %v582_v17 }
  0x62   : > { %585 = vst [vmem:[%s2301_s26 + $0x290] sm:$0xff] %v584_v18 }
  0x63   : > { %587 = vst [vmem:[%s2301_s26 + $0x298] sm:$0xff] %v586_v19 }
  0x64   : > { %589 = vst [vmem:[%s2301_s26 + $0x2a0] sm:$0xff] %v588_v20 }
  0x65   : > { %591 = vst [vmem:[%s2301_s26 + $0x2a8] sm:$0xff] %v590_v21 }
  0x66   : > { %593 = vst [vmem:[%s2301_s26 + $0x2b0] sm:$0xff] %v592_v22 }
  0x67   : > { %595 = vst [vmem:[%s2301_s26 + $0x2b8] sm:$0xff] %v594_v23 }
  0x68   : > { %597 = vst [vmem:[%s2301_s26 + $0x2c0] sm:$0xff] %v596_v24 }
  0x69   : > { %599 = vst [vmem:[%s2301_s26 + $0x2c8] sm:$0xff] %v598_v25 }
  0x6a   : > { %601 = vst [vmem:[%s2301_s26 + $0x2d0] sm:$0xff] %v600_v26 }
  0x6b   : > { %603 = vst [vmem:[%s2301_s26 + $0x2d8] sm:$0xff] %v602_v27 }
  0x6c   : > { %605 = vst [vmem:[%s2301_s26 + $0x2e0] sm:$0xff] %v604_v28 }
  0x6d   : > { %607 = vst [vmem:[%s2301_s26 + $0x2e8] sm:$0xff] %v606_v29 }
  0x6e   : > { %609 = vst [vmem:[%s2301_s26 + $0x2f0] sm:$0xff] %v608_v30 }
  0x6f   : > { %611 = vst [vmem:[%s2301_s26 + $0x2f8] sm:$0xff] %v610_v31 }
  0x70   : > { %613 = vst [vmem:[%s2301_s26 + $0x300] sm:$0xff] %v612_v32 }
  0x71   : > { %615 = vst [vmem:[%s2301_s26 + $0x308] sm:$0xff] %v614_v33 }
  0x72   : > { %617 = vst [vmem:[%s2301_s26 + $0x310] sm:$0xff] %v616_v34 }
  0x73   : > { %619 = vst [vmem:[%s2301_s26 + $0x318] sm:$0xff] %v618_v35 }
  0x74   : > { %621 = vst [vmem:[%s2301_s26 + $0x320] sm:$0xff] %v620_v36 }
  0x75   : > { %623 = vst [vmem:[%s2301_s26 + $0x328] sm:$0xff] %v622_v37 }
  0x76   : > { %625 = vst [vmem:[%s2301_s26 + $0x330] sm:$0xff] %v624_v38 }
  0x77   : > { %627 = vst [vmem:[%s2301_s26 + $0x338] sm:$0xff] %v626_v39 }
  0x78   : > { %629 = vst [vmem:[%s2301_s26 + $0x340] sm:$0xff] %v628_v40 }
  0x79   : > { %631 = vst [vmem:[%s2301_s26 + $0x348] sm:$0xff] %v630_v41 }
  0x7a   : > { %633 = vst [vmem:[%s2301_s26 + $0x350] sm:$0xff] %v632_v42 }
  0x7b   : > { %635 = vst [vmem:[%s2301_s26 + $0x358] sm:$0xff] %v634_v43 }
  0x7c   : > { %637 = vst [vmem:[%s2301_s26 + $0x360] sm:$0xff] %v636_v44 }
  0x7d   : > { %639 = vst [vmem:[%s2301_s26 + $0x368] sm:$0xff] %v638_v45 }
  0x7e   : > { %641 = vst [vmem:[%s2301_s26 + $0x370] sm:$0xff] %v640_v46 }
  0x7f   : > { %643 = vst [vmem:[%s2301_s26 + $0x378] sm:$0xff] %v642_v47 }
  0x80   : > { %645 = vst [vmem:[%s2301_s26 + $0x380] sm:$0xff] %v644_v48 }
  0x81   : > { %647 = vst [vmem:[%s2301_s26 + $0x388] sm:$0xff] %v646_v49 }
  0x82   : > { %649 = vst [vmem:[%s2301_s26 + $0x390] sm:$0xff] %v648_v50 }
  0x83   : > { %651 = vst [vmem:[%s2301_s26 + $0x398] sm:$0xff] %v650_v51 }
  0x84   : > { %653 = vst [vmem:[%s2301_s26 + $0x3a0] sm:$0xff] %v652_v52 }
  0x85   : > { %655 = vst [vmem:[%s2301_s26 + $0x3a8] sm:$0xff] %v654_v53 }
  0x86   : > { %657 = vst [vmem:[%s2301_s26 + $0x3b0] sm:$0xff] %v656_v54 }
  0x87   : > { %659 = vst [vmem:[%s2301_s26 + $0x3b8] sm:$0xff] %v658_v55 }
  0x88   : > { %661 = vst [vmem:[%s2301_s26 + $0x3c0] sm:$0xff] %v660_v56 }
  0x89   : > { %663 = vst [vmem:[%s2301_s26 + $0x3c8] sm:$0xff] %v662_v57 }
  0x8a   : > { %665 = vst [vmem:[%s2301_s26 + $0x3d0] sm:$0xff] %v664_v58 }
  0x8b   : > { %667 = vst [vmem:[%s2301_s26 + $0x3d8] sm:$0xff] %v666_v59 }
  0x8c   : > { %669 = vst [vmem:[%s2301_s26 + $0x3e0] sm:$0xff] %v668_v60 }
  0x8d   : > { %671 = vst [vmem:[%s2301_s26 + $0x3e8] sm:$0xff] %v670_v61 }
  0x8e   : > { %673 = vst [vmem:[%s2301_s26 + $0x3f0] sm:$0xff] %v672_v62 }
  0x8f   : > { %675 = vst [vmem:[%s2301_s26 + $0x3f8] sm:$0xff] %v674_v63 }
  0x90 PF: > { %p1958_p5 = scmp.ge.s32.totalorder %s2240_s14, 1  ;;  %p680_p6 = scmp.lt.s32.totalorder %s2240_s14, 3 }
  0x92   : > { %p681_p7 = pnand %p1958_p5, %p680_p6 }
  0x93   : > { %s687_s4 = sand.u32 (!%p681_p7), 1, %s2232_s12   ;;  %s1960_s11 = sshll.u32 (!%p681_p7), %s1951_s15, 5 }
  0x94   : > { %684 = sbr.rel (%p681_p7) target bundleno = 550 (0x226), region = 66  ;;  %s1959_s5 = sshll.u32 (!%p681_p7), %s687_s4, 10 }
  0x95   : > { %s2571_s10 = scalar_lea.vmem (!%p681_p7), [#allocation2], %s1959_s5  ;;  %p712_p8 = scmp.lt.s32.totalorder (!%p681_p7), %s1960_s11, 63 }
  0x99   : > { %v720_v0 = vld [vmem:[%s2916_s1 + $0x18] sm:$0x1]  ;;  %vm850_vm0 = vcmask 1040384   ;;  %v719_v1 = vld [vmem:[%s2916_s1 + $0x10] sm:$0xff]  ;;  %v718_v2 = vld [vmem:[%s2916_s1 + $0x8] sm:$0xff]  ;;  %vm753_vm1 = vcmask 203776  }
  0x9a   : > { %2092 = vmatpush.msk.msra.mxu2 %vm850_vm0, %v720_v0  ;;  %2157 = vmatpush.msk.msra.mxu3 %vm850_vm0, %v720_v0  ;;  %v717_v3 = vld [vmem:[%s2916_s1] sm:$0xff]  ;;  %v2061_v8 = vld [vmem:[%s2571_s10 + $0x208] sm:$0xff]  ;;  %v2062_v12 = vld [vmem:[%s2571_s10 + $0x210] sm:$0xff]  ;;  %s2923_s11 = smov (!%p712_p8, %s1960_s11), 63 }
  0x9b   : > { %1962 = vmatpush.msk.msra.mxu0 %vm850_vm0, %v720_v0  ;;  %2027 = vmatpush.msk.msra.mxu1 %vm850_vm0, %v720_v0  ;;  %v2060_v4 = vld [vmem:[%s2571_s10 + $0x200] sm:$0xff]  ;;  %v2126_v9 = vld [vmem:[%s2571_s10 + $0x308] sm:$0xff]  ;;  %v2127_v13 = vld [vmem:[%s2571_s10 + $0x310] sm:$0xff]  ;;  %s1961_s15 = sshll.u32 %s2923_s11, 3 }
  0x9c   : > { %1383 = vmatpush.msra.mxu2 %v719_v1  ;;  %1657 = vmatpush.msra.mxu3 %v719_v1  ;;  %v2125_v5 = vld [vmem:[%s2571_s10 + $0x300] sm:$0xff]  ;;  %v722_v10 = vld [vmem:[%s2571_s10 + $0x8] sm:$0xff]  ;;  %v723_v14 = vld [vmem:[%s2571_s10 + $0x10] sm:$0xff]  ;;  %s2726_s20 = scalar_lea.vmem %s2918_s3, %s1961_s15 }
  0x9d   : > { %867 = vmatpush.msra.mxu0 %v719_v1  ;;  %1109 = vmatpush.msra.mxu1 %v719_v1  ;;  %v721_v6 = vld [vmem:[%s2571_s10] sm:$0xff]  ;;  %v1996_v11 = vld [vmem:[%s2571_s10 + $0x108] sm:$0xff]  ;;  %v1997_v15 = vld [vmem:[%s2571_s10 + $0x110] sm:$0xff] }
  0x9e   : > { %1384 = vmatpush.msra.mxu2 %v718_v2  ;;  %1658 = vmatpush.msra.mxu3 %v718_v2  ;;  %v1995_v7 = vld [vmem:[%s2571_s10 + $0x100] sm:$0xff]  ;;  %v2063_v16 = vld [vmem:[%s2571_s10 + $0x218] sm:$0xff]  ;;  %v2065_v24 = vld [vmem:[%s2571_s10 + $0x228] sm:$0xff] }
  0x9f   : > { %868 = vmatpush.msra.mxu0 %v718_v2  ;;  %1110 = vmatpush.msra.mxu1 %v718_v2  ;;  %v2128_v17 = vld [vmem:[%s2571_s10 + $0x318] sm:$0xff]  ;;  %v2064_v20 = vld [vmem:[%s2571_s10 + $0x220] sm:$0xff]  ;;  %v2130_v25 = vld [vmem:[%s2571_s10 + $0x328] sm:$0xff] }
  0xa0   : > { %1385 = vmatpush.msra.mxu2 %v717_v3  ;;  %1659 = vmatpush.msra.mxu3 %v717_v3  ;;  %v724_v18 = vld [vmem:[%s2571_s10 + $0x18] sm:$0xff]  ;;  %v2129_v21 = vld [vmem:[%s2571_s10 + $0x320] sm:$0xff]  ;;  %v726_v26 = vld [vmem:[%s2571_s10 + $0x28] sm:$0xff] }
  0xa1   : > { %2093 = vmatmul.msk.f32.vlgmr.msra.gmra.mxu2 %vm753_vm1, %v2060_v4  ;;  %2158 = vmatmul.msk.f32.vlgmr.msra.gmra.mxu3 %vm753_vm1, %v2125_v5  ;;  %v1998_v19 = vld [vmem:[%s2571_s10 + $0x118] sm:$0xff]  ;;  %v725_v22 = vld [vmem:[%s2571_s10 + $0x20] sm:$0xff]  ;;  %v2000_v27 = vld [vmem:[%s2571_s10 + $0x128] sm:$0xff] }
  0xa2   : > { %869 = vmatpush.msra.mxu0 %v717_v3  ;;  %1111 = vmatpush.msra.mxu1 %v717_v3  ;;  %v1999_v23 = vld [vmem:[%s2571_s10 + $0x120] sm:$0xff]  ;;  %v2066_v28 = vld [vmem:[%s2571_s10 + $0x230] sm:$0xff]  ;;  %v2067_v32 = vld [vmem:[%s2571_s10 + $0x238] sm:$0xff] }
  0xa3   : > { %1963 = vmatmul.msk.f32.vlgmr.msra.gmra.mxu0 %vm753_vm1, %v721_v6  ;;  %2028 = vmatmul.msk.f32.vlgmr.msra.gmra.mxu1 %vm753_vm1, %v1995_v7  ;;  %v2131_v29 = vld [vmem:[%s2571_s10 + $0x330] sm:$0xff]  ;;  %v2132_v33 = vld [vmem:[%s2571_s10 + $0x338] sm:$0xff]  ;;  %v2068_v36 = vld [vmem:[%s2571_s10 + $0x240] sm:$0xff] }
  0xa4   : > { %v727_v30 = vld [vmem:[%s2571_s10 + $0x30] sm:$0xff]  ;;  %v728_v34 = vld [vmem:[%s2571_s10 + $0x38] sm:$0xff]  ;;  %v2133_v37 = vld [vmem:[%s2571_s10 + $0x340] sm:$0xff] }
  0xa5   : > { %v2001_v31 = vld [vmem:[%s2571_s10 + $0x130] sm:$0xff]  ;;  %v2002_v35 = vld [vmem:[%s2571_s10 + $0x138] sm:$0xff]  ;;  %v729_v38 = vld [vmem:[%s2571_s10 + $0x40] sm:$0xff] }
  0xa6   : > { %v2003_v39 = vld [vmem:[%s2571_s10 + $0x140] sm:$0xff]  ;;  %v2069_v40 = vld [vmem:[%s2571_s10 + $0x248] sm:$0xff]  ;;  %v2070_v44 = vld [vmem:[%s2571_s10 + $0x250] sm:$0xff] }
  0xa7   : > { %v2134_v41 = vld [vmem:[%s2571_s10 + $0x348] sm:$0xff]  ;;  %v2135_v45 = vld [vmem:[%s2571_s10 + $0x350] sm:$0xff]  ;;  %v2071_v48 = vld [vmem:[%s2571_s10 + $0x258] sm:$0xff] }
  0xa8   : > { %v730_v42 = vld [vmem:[%s2571_s10 + $0x48] sm:$0xff]  ;;  %v731_v46 = vld [vmem:[%s2571_s10 + $0x50] sm:$0xff]  ;;  %v2136_v49 = vld [vmem:[%s2571_s10 + $0x358] sm:$0xff] }
  0xa9   : > { %2094 = vmatmul.msk.f32.gmra.mxu2 %vm753_vm1, %v2061_v8  ;;  %2159 = vmatmul.msk.f32.gmra.mxu3 %vm753_vm1, %v2126_v9  ;;  %v2004_v43 = vld [vmem:[%s2571_s10 + $0x148] sm:$0xff]  ;;  %v2005_v47 = vld [vmem:[%s2571_s10 + $0x150] sm:$0xff]  ;;  %v732_v50 = vld [vmem:[%s2571_s10 + $0x58] sm:$0xff] }
  0xaa   : > { %v2006_v51 = vld [vmem:[%s2571_s10 + $0x158] sm:$0xff]  ;;  %v2072_v52 = vld [vmem:[%s2571_s10 + $0x260] sm:$0xff]  ;;  %v2073_v56 = vld [vmem:[%s2571_s10 + $0x268] sm:$0xff] }
  0xab   : > { %1964 = vmatmul.msk.f32.gmra.mxu0 %vm753_vm1, %v722_v10  ;;  %2029 = vmatmul.msk.f32.gmra.mxu1 %vm753_vm1, %v1996_v11  ;;  %v2137_v53 = vld [vmem:[%s2571_s10 + $0x360] sm:$0xff]  ;;  %v2138_v57 = vld [vmem:[%s2571_s10 + $0x368] sm:$0xff]  ;;  %v2074_v60 = vld [vmem:[%s2571_s10 + $0x270] sm:$0xff] }
  0xac   : > { %v733_v54 = vld [vmem:[%s2571_s10 + $0x60] sm:$0xff]  ;;  %v734_v58 = vld [vmem:[%s2571_s10 + $0x68] sm:$0xff]  ;;  %v2139_v61 = vld [vmem:[%s2571_s10 + $0x370] sm:$0xff] }
  0xad   : > { %v2007_v55 = vld [vmem:[%s2571_s10 + $0x160] sm:$0xff]  ;;  %v2008_v59 = vld [vmem:[%s2571_s10 + $0x168] sm:$0xff]  ;;  %v735_v62 = vld [vmem:[%s2571_s10 + $0x70] sm:$0xff] }
  0xae   : > { %v2009_v63 = vld [vmem:[%s2571_s10 + $0x170] sm:$0xff]  ;;  %v2075_v0 = vld [vmem:[%s2571_s10 + $0x278] sm:$0xff]  ;;  %v2076_v4 = vld [vmem:[%s2571_s10 + $0x280] sm:$0xff] }
  0xaf   : > { %v2140_v1 = vld [vmem:[%s2571_s10 + $0x378] sm:$0xff]  ;;  %v2141_v5 = vld [vmem:[%s2571_s10 + $0x380] sm:$0xff] }
  0xb0   : > { %v736_v2 = vld [vmem:[%s2571_s10 + $0x78] sm:$0xff]  ;;  %v737_v8 = vld [vmem:[%s2571_s10 + $0x80] sm:$0xff] }
  0xb1   : > { %2095 = vmatmul.msk.f32.gmra.mxu2 %vm753_vm1, %v2062_v12  ;;  %2160 = vmatmul.msk.f32.gmra.mxu3 %vm753_vm1, %v2127_v13  ;;  %v2010_v3 = vld [vmem:[%s2571_s10 + $0x178] sm:$0xff]  ;;  %v2011_v9 = vld [vmem:[%s2571_s10 + $0x180] sm:$0xff] }
  0xb3   : > { %1965 = vmatmul.msk.f32.gmra.mxu0 %vm753_vm1, %v723_v14  ;;  %2030 = vmatmul.msk.f32.gmra.mxu1 %vm753_vm1, %v1997_v15  ;;  %v2714_v14 = vld [vmem:[%s2917_s2] ss:$0 sm:$0xff]  ;;  %v2077_v15 = vld [vmem:[%s2571_s10 + $0x288] sm:$0xff] }
  0xb9   : > { %2096 = vmatmul.msk.f32.gmra.mxu2 %vm753_vm1, %v2063_v16  ;;  %2161 = vmatmul.msk.f32.gmra.mxu3 %vm753_vm1, %v2128_v17  ;;  %v2142_v16 = vld [vmem:[%s2571_s10 + $0x388] sm:$0xff] }
  0xbb   : > { %1966 = vmatmul.msk.f32.gmra.mxu0 %vm753_vm1, %v724_v18  ;;  %2031 = vmatmul.msk.f32.gmra.mxu1 %vm753_vm1, %v1998_v19 }
  0xc1   : > { %2097 = vmatmul.msk.f32.gmra.mxu2 %vm753_vm1, %v2064_v20  ;;  %2162 = vmatmul.msk.f32.gmra.mxu3 %vm753_vm1, %v2129_v21  ;;  %v738_v20 = vld [vmem:[%s2571_s10 + $0x88] sm:$0xff] }
  0xc2   : > { %v2012_v21 = vld [vmem:[%s2571_s10 + $0x188] sm:$0xff] }
  0xc3   : > { %1967 = vmatmul.msk.f32.gmra.mxu0 %vm753_vm1, %v725_v22  ;;  %2032 = vmatmul.msk.f32.gmra.mxu1 %vm753_vm1, %v1999_v23 }
  0xc9   : > { %2098 = vmatmul.msk.f32.gmra.mxu2 %vm753_vm1, %v2065_v24  ;;  %2163 = vmatmul.msk.f32.gmra.mxu3 %vm753_vm1, %v2130_v25 }
  0xcb   : > { %1968 = vmatmul.msk.f32.gmra.mxu0 %vm753_vm1, %v726_v26  ;;  %2033 = vmatmul.msk.f32.gmra.mxu1 %vm753_vm1, %v2000_v27 }
  0xd1   : > { %2099 = vmatmul.msk.f32.gmra.mxu2 %vm753_vm1, %v2066_v28  ;;  %2164 = vmatmul.msk.f32.gmra.mxu3 %vm753_vm1, %v2131_v29  ;;  %v2078_v28 = vld [vmem:[%s2571_s10 + $0x290] sm:$0xff] }
  0xd2   : > { %v2143_v29 = vld [vmem:[%s2571_s10 + $0x390] sm:$0xff] }
  0xd3   : > { %1969 = vmatmul.msk.f32.gmra.mxu0 %vm753_vm1, %v727_v30  ;;  %2034 = vmatmul.msk.f32.gmra.mxu1 %vm753_vm1, %v2001_v31 }
  0xd9   : > { %2100 = vmatmul.msk.f32.gmra.mxu2 %vm753_vm1, %v2067_v32  ;;  %2165 = vmatmul.msk.f32.gmra.mxu3 %vm753_vm1, %v2132_v33  ;;  %v739_v33 = vld [vmem:[%s2571_s10 + $0x90] sm:$0xff] }
  0xdb   : > { %1970 = vmatmul.msk.f32.gmra.mxu0 %vm753_vm1, %v728_v34  ;;  %2035 = vmatmul.msk.f32.gmra.mxu1 %vm753_vm1, %v2002_v35  ;;  %v2013_v34 = vld [vmem:[%s2571_s10 + $0x190] sm:$0xff] }
  0xe1   : > { %2101 = vmatmul.msk.f32.gmra.mxu2 %vm753_vm1, %v2068_v36  ;;  %2166 = vmatmul.msk.f32.gmra.mxu3 %vm753_vm1, %v2133_v37 }
  0xe3   : > { %1971 = vmatmul.msk.f32.gmra.mxu0 %vm753_vm1, %v729_v38  ;;  %2036 = vmatmul.msk.f32.gmra.mxu1 %vm753_vm1, %v2003_v39 }
  0xe9   : > { %2102 = vmatmul.msk.f32.gmra.mxu2 %vm753_vm1, %v2069_v40  ;;  %2167 = vmatmul.msk.f32.gmra.mxu3 %vm753_vm1, %v2134_v41  ;;  %v2079_v41 = vld [vmem:[%s2571_s10 + $0x298] sm:$0xff] }
  0xeb   : > { %1972 = vmatmul.msk.f32.gmra.mxu0 %vm753_vm1, %v730_v42  ;;  %2037 = vmatmul.msk.f32.gmra.mxu1 %vm753_vm1, %v2004_v43  ;;  %v2144_v42 = vld [vmem:[%s2571_s10 + $0x398] sm:$0xff] }
  0xf1   : > { %2103 = vmatmul.msk.f32.gmra.mxu2 %vm753_vm1, %v2070_v44  ;;  %2168 = vmatmul.msk.f32.gmra.mxu3 %vm753_vm1, %v2135_v45 }
  0xf3   : > { %1973 = vmatmul.msk.f32.gmra.mxu0 %vm753_vm1, %v731_v46  ;;  %2038 = vmatmul.msk.f32.gmra.mxu1 %vm753_vm1, %v2005_v47  ;;  %v740_v46 = vld [vmem:[%s2571_s10 + $0x98] sm:$0xff] }
  0xf4   : > { %v2014_v47 = vld [vmem:[%s2571_s10 + $0x198] sm:$0xff] }
  0xf9   : > { %2104 = vmatmul.msk.f32.gmra.mxu2 %vm753_vm1, %v2071_v48  ;;  %2169 = vmatmul.msk.f32.gmra.mxu3 %vm753_vm1, %v2136_v49 }
  0xfb   : > { %1974 = vmatmul.msk.f32.gmra.mxu0 %vm753_vm1, %v732_v50  ;;  %2039 = vmatmul.msk.f32.gmra.mxu1 %vm753_vm1, %v2006_v51 }
 0x101   : > { %2105 = vmatmul.msk.f32.gmra.mxu2 %vm753_vm1, %v2072_v52  ;;  %2170 = vmatmul.msk.f32.gmra.mxu3 %vm753_vm1, %v2137_v53 }
 0x103   : > { %1975 = vmatmul.msk.f32.gmra.mxu0 %vm753_vm1, %v733_v54  ;;  %2040 = vmatmul.msk.f32.gmra.mxu1 %vm753_vm1, %v2007_v55  ;;  %v2080_v54 = vld [vmem:[%s2571_s10 + $0x2a0] sm:$0xff] }
 0x104   : > { %v2145_v55 = vld [vmem:[%s2571_s10 + $0x3a0] sm:$0xff] }
 0x109   : > { %2106 = vmatmul.msk.f32.gmra.mxu2 %vm753_vm1, %v2073_v56  ;;  %2171 = vmatmul.msk.f32.gmra.mxu3 %vm753_vm1, %v2138_v57 }
 0x10b   : > { %1976 = vmatmul.msk.f32.gmra.mxu0 %vm753_vm1, %v734_v58  ;;  %2041 = vmatmul.msk.f32.gmra.mxu1 %vm753_vm1, %v2008_v59  ;;  %v741_v59 = vld [vmem:[%s2571_s10 + $0xa0] sm:$0xff] }
 0x111   : > { %2107 = vmatmul.msk.f32.gmra.mxu2 %vm753_vm1, %v2074_v60  ;;  %2172 = vmatmul.msk.f32.gmra.mxu3 %vm753_vm1, %v2139_v61  ;;  %v2015_v60 = vld [vmem:[%s2571_s10 + $0x1a0] sm:$0xff] }
 0x113   : > { %1977 = vmatmul.msk.f32.gmra.mxu0 %vm753_vm1, %v735_v62  ;;  %2042 = vmatmul.msk.f32.gmra.mxu1 %vm753_vm1, %v2009_v63 }
 0x119   : > { %2108 = vmatmul.msk.f32.gmra.mxu2 %vm753_vm1, %v2075_v0  ;;  %2173 = vmatmul.msk.f32.gmra.mxu3 %vm753_vm1, %v2140_v1 }
 0x11b   : > { %1978 = vmatmul.msk.f32.gmra.mxu0 %vm753_vm1, %v736_v2  ;;  %2043 = vmatmul.msk.f32.gmra.mxu1 %vm753_vm1, %v2010_v3  ;;  %v2081_v3 = vld [vmem:[%s2571_s10 + $0x2a8] sm:$0xff] }
 0x120   : > { %v871_v6 = vpop.f32.mrf.mxu0  ;;  %v1113_v7 = vpop.f32.mrf.mxu1 }
 0x121   : > { %2109 = vmatmul.msk.f32.gmra.mxu2 %vm753_vm1, %v2076_v4  ;;  %v1209_v10 = vmax.f32 %v871_v6, %v1113_v7  ;;  %2174 = vmatmul.msk.f32.gmra.mxu3 %vm753_vm1, %v2141_v5  ;;  %v2146_v4 = vld [vmem:[%s2571_s10 + $0x3a8] sm:$0xff] }
 0x123   : > { %1979 = vmatmul.msk.f32.gmra.mxu0 %vm753_vm1, %v737_v8  ;;  %2044 = vmatmul.msk.f32.gmra.mxu1 %vm753_vm1, %v2011_v9  ;;  %v742_v8 = vld [vmem:[%s2571_s10 + $0xa8] sm:$0xff] }
 0x124   : > { %v1387_v11 = vpop.f32.mrf.mxu2  ;;  %v1661_v12 = vpop.f32.mrf.mxu3  ;;  %v2016_v9 = vld [vmem:[%s2571_s10 + $0x1a8] sm:$0xff] }
 0x125   : > { %v1483_v13 = vmax.f32 %v1209_v10, %v1387_v11 }
 0x127   : > { %v1757_v17 = vmax.f32 %v1483_v13, %v1661_v12 }
 0x128   : > { %v874_v18 = vpop.f32.mrf.mxu0  ;;  %v1116_v19 = vpop.f32.mrf.mxu1 }
 0x129   : > { %v1793_v22 = vadd.f32 %v2714_v14, %v1757_v17  ;;  %2110 = vmatmul.msk.f32.gmra.mxu2 %vm753_vm1, %v2077_v15  ;;  %v1210_v23 = vmax.f32 %v874_v18, %v1116_v19  ;;  %2175 = vmatmul.msk.f32.gmra.mxu3 %vm753_vm1, %v2142_v16  ;;  %v2082_v17 = vld [vmem:[%s2571_s10 + $0x2b0] sm:$0xff] }
 0x12a   : > { %v2147_v18 = vld [vmem:[%s2571_s10 + $0x3b0] sm:$0xff] }
 0x12b   : > { %v1825_v24 = vmax.f32 %v1793_v22, 0.0  ;;  %1980 = vmatmul.msk.f32.gmra.mxu0 %vm753_vm1, %v738_v20  ;;  %2045 = vmatmul.msk.f32.gmra.mxu1 %vm753_vm1, %v2012_v21  ;;  %v743_v22 = vld [vmem:[%s2571_s10 + $0xb0] sm:$0xff] }
 0x12c   : > { %v1390_v25 = vpop.f32.mrf.mxu2  ;;  %v1664_v26 = vpop.f32.mrf.mxu3 }
 0x12d   : > { %1857 = vst [vmem:[%s2726_s20] sm:$0xff] %v1825_v24  ;;  %v1484_v27 = vmax.f32 %v1210_v23, %v1390_v25  ;;  %v2017_v23 = vld [vmem:[%s2571_s10 + $0x1b0] sm:$0xff] }
 0x12f   : > { %v1758_v30 = vmax.f32 %v1484_v27, %v1664_v26 }
 0x130   : > { %v877_v31 = vpop.f32.mrf.mxu0  ;;  %v1119_v32 = vpop.f32.mrf.mxu1 }
 0x131   : > { %v1794_v35 = vadd.f32 %v2714_v14, %v1758_v30  ;;  %2111 = vmatmul.msk.f32.gmra.mxu2 %vm753_vm1, %v2078_v28  ;;  %v1211_v36 = vmax.f32 %v877_v31, %v1119_v32  ;;  %2176 = vmatmul.msk.f32.gmra.mxu3 %vm753_vm1, %v2143_v29  ;;  %v2083_v30 = vld [vmem:[%s2571_s10 + $0x2b8] sm:$0xff] }
 0x132   : > { %v2148_v31 = vld [vmem:[%s2571_s10 + $0x3b8] sm:$0xff] }
 0x133   : > { %v1826_v37 = vmax.f32 %v1794_v35, 0.0  ;;  %1981 = vmatmul.msk.f32.gmra.mxu0 %vm753_vm1, %v739_v33  ;;  %2046 = vmatmul.msk.f32.gmra.mxu1 %vm753_vm1, %v2013_v34  ;;  %v744_v35 = vld [vmem:[%s2571_s10 + $0xb8] sm:$0xff] }
 0x134   : > { %v1393_v38 = vpop.f32.mrf.mxu2  ;;  %v1667_v39 = vpop.f32.mrf.mxu3 }
 0x135   : > { %1858 = vst [vmem:[%s2726_s20 + $0x8] sm:$0xff] %v1826_v37  ;;  %v1485_v40 = vmax.f32 %v1211_v36, %v1393_v38  ;;  %v2018_v36 = vld [vmem:[%s2571_s10 + $0x1b8] sm:$0xff] }
 0x137   : > { %v1759_v43 = vmax.f32 %v1485_v40, %v1667_v39 }
 0x138   : > { %v880_v44 = vpop.f32.mrf.mxu0  ;;  %v1122_v45 = vpop.f32.mrf.mxu1 }
 0x139   : > { %v1795_v48 = vadd.f32 %v2714_v14, %v1759_v43  ;;  %2112 = vmatmul.msk.f32.gmra.mxu2 %vm753_vm1, %v2079_v41  ;;  %v1212_v49 = vmax.f32 %v880_v44, %v1122_v45  ;;  %2177 = vmatmul.msk.f32.gmra.mxu3 %vm753_vm1, %v2144_v42  ;;  %v2084_v43 = vld [vmem:[%s2571_s10 + $0x2c0] sm:$0xff] }
 0x13a   : > { %v2149_v44 = vld [vmem:[%s2571_s10 + $0x3c0] sm:$0xff] }
 0x13b   : > { %v1827_v50 = vmax.f32 %v1795_v48, 0.0  ;;  %1982 = vmatmul.msk.f32.gmra.mxu0 %vm753_vm1, %v740_v46  ;;  %2047 = vmatmul.msk.f32.gmra.mxu1 %vm753_vm1, %v2014_v47  ;;  %v745_v48 = vld [vmem:[%s2571_s10 + $0xc0] sm:$0xff] }
 0x13c   : > { %v1396_v51 = vpop.f32.mrf.mxu2  ;;  %v1670_v52 = vpop.f32.mrf.mxu3 }
 0x13d   : > { %1859 = vst [vmem:[%s2726_s20 + $0x10] sm:$0xff] %v1827_v50  ;;  %v1486_v53 = vmax.f32 %v1212_v49, %v1396_v51  ;;  %v2019_v49 = vld [vmem:[%s2571_s10 + $0x1c0] sm:$0xff] }
 0x13f   : > { %v1760_v56 = vmax.f32 %v1486_v53, %v1670_v52 }
 0x140   : > { %v883_v57 = vpop.f32.mrf.mxu0  ;;  %v1125_v58 = vpop.f32.mrf.mxu1 }
 0x141   : > { %v1796_v61 = vadd.f32 %v2714_v14, %v1760_v56  ;;  %2113 = vmatmul.msk.f32.gmra.mxu2 %vm753_vm1, %v2080_v54  ;;  %v1213_v62 = vmax.f32 %v883_v57, %v1125_v58  ;;  %2178 = vmatmul.msk.f32.gmra.mxu3 %vm753_vm1, %v2145_v55  ;;  %v2085_v56 = vld [vmem:[%s2571_s10 + $0x2c8] sm:$0xff] }
 0x142   : > { %v2150_v57 = vld [vmem:[%s2571_s10 + $0x3c8] sm:$0xff] }
 0x143   : > { %v1828_v63 = vmax.f32 %v1796_v61, 0.0  ;;  %1983 = vmatmul.msk.f32.gmra.mxu0 %vm753_vm1, %v741_v59  ;;  %2048 = vmatmul.msk.f32.gmra.mxu1 %vm753_vm1, %v2015_v60  ;;  %v746_v61 = vld [vmem:[%s2571_s10 + $0xc8] sm:$0xff] }
 0x144   : > { %v1399_v0 = vpop.f32.mrf.mxu2  ;;  %v1673_v1 = vpop.f32.mrf.mxu3 }
 0x145   : > { %1860 = vst [vmem:[%s2726_s20 + $0x18] sm:$0xff] %v1828_v63  ;;  %v1487_v2 = vmax.f32 %v1213_v62, %v1399_v0  ;;  %v2020_v62 = vld [vmem:[%s2571_s10 + $0x1c8] sm:$0xff] }
 0x147   : > { %v1761_v5 = vmax.f32 %v1487_v2, %v1673_v1 }
 0x148   : > { %v886_v6 = vpop.f32.mrf.mxu0  ;;  %v1128_v7 = vpop.f32.mrf.mxu1 }
 0x149   : > { %v1797_v10 = vadd.f32 %v2714_v14, %v1761_v5  ;;  %2114 = vmatmul.msk.f32.gmra.mxu2 %vm753_vm1, %v2081_v3  ;;  %v1214_v11 = vmax.f32 %v886_v6, %v1128_v7  ;;  %2179 = vmatmul.msk.f32.gmra.mxu3 %vm753_vm1, %v2146_v4  ;;  %v2086_v5 = vld [vmem:[%s2571_s10 + $0x2d0] sm:$0xff] }
 0x14a   : > { %v2151_v6 = vld [vmem:[%s2571_s10 + $0x3d0] sm:$0xff] }
 0x14b   : > { %v1829_v12 = vmax.f32 %v1797_v10, 0.0  ;;  %1984 = vmatmul.msk.f32.gmra.mxu0 %vm753_vm1, %v742_v8  ;;  %2049 = vmatmul.msk.f32.gmra.mxu1 %vm753_vm1, %v2016_v9  ;;  %v747_v10 = vld [vmem:[%s2571_s10 + $0xd0] sm:$0xff] }
 0x14c   : > { %v1402_v13 = vpop.f32.mrf.mxu2  ;;  %v1676_v15 = vpop.f32.mrf.mxu3 }
 0x14d   : > { %1861 = vst [vmem:[%s2726_s20 + $0x20] sm:$0xff] %v1829_v12  ;;  %v1488_v16 = vmax.f32 %v1214_v11, %v1402_v13  ;;  %v2021_v11 = vld [vmem:[%s2571_s10 + $0x1d0] sm:$0xff] }
 0x14f   : > { %v1762_v19 = vmax.f32 %v1488_v16, %v1676_v15 }
 0x150   : > { %v889_v20 = vpop.f32.mrf.mxu0  ;;  %v1131_v21 = vpop.f32.mrf.mxu1 }
 0x151   : > { %v1798_v24 = vadd.f32 %v2714_v14, %v1762_v19  ;;  %2115 = vmatmul.msk.f32.gmra.mxu2 %vm753_vm1, %v2082_v17  ;;  %v1215_v25 = vmax.f32 %v889_v20, %v1131_v21  ;;  %2180 = vmatmul.msk.f32.gmra.mxu3 %vm753_vm1, %v2147_v18  ;;  %v2087_v19 = vld [vmem:[%s2571_s10 + $0x2d8] sm:$0xff] }
 0x152   : > { %v2152_v20 = vld [vmem:[%s2571_s10 + $0x3d8] sm:$0xff] }
 0x153   : > { %v1830_v26 = vmax.f32 %v1798_v24, 0.0  ;;  %1985 = vmatmul.msk.f32.gmra.mxu0 %vm753_vm1, %v743_v22  ;;  %2050 = vmatmul.msk.f32.gmra.mxu1 %vm753_vm1, %v2017_v23  ;;  %v748_v24 = vld [vmem:[%s2571_s10 + $0xd8] sm:$0xff] }
 0x154   : > { %v1405_v27 = vpop.f32.mrf.mxu2  ;;  %v1679_v28 = vpop.f32.mrf.mxu3 }
 0x155   : > { %1862 = vst [vmem:[%s2726_s20 + $0x28] sm:$0xff] %v1830_v26  ;;  %v1489_v29 = vmax.f32 %v1215_v25, %v1405_v27  ;;  %v2022_v25 = vld [vmem:[%s2571_s10 + $0x1d8] sm:$0xff] }
 0x157   : > { %v1763_v32 = vmax.f32 %v1489_v29, %v1679_v28 }
 0x158   : > { %v892_v33 = vpop.f32.mrf.mxu0  ;;  %v1134_v34 = vpop.f32.mrf.mxu1 }
 0x159   : > { %v1799_v37 = vadd.f32 %v2714_v14, %v1763_v32  ;;  %2116 = vmatmul.msk.f32.gmra.mxu2 %vm753_vm1, %v2083_v30  ;;  %v1216_v38 = vmax.f32 %v892_v33, %v1134_v34  ;;  %2181 = vmatmul.msk.f32.gmra.mxu3 %vm753_vm1, %v2148_v31  ;;  %v2088_v32 = vld [vmem:[%s2571_s10 + $0x2e0] sm:$0xff] }
 0x15a   : > { %v2153_v33 = vld [vmem:[%s2571_s10 + $0x3e0] sm:$0xff] }
 0x15b   : > { %v1831_v39 = vmax.f32 %v1799_v37, 0.0  ;;  %1986 = vmatmul.msk.f32.gmra.mxu0 %vm753_vm1, %v744_v35  ;;  %2051 = vmatmul.msk.f32.gmra.mxu1 %vm753_vm1, %v2018_v36  ;;  %v749_v37 = vld [vmem:[%s2571_s10 + $0xe0] sm:$0xff] }
 0x15c   : > { %v1408_v40 = vpop.f32.mrf.mxu2  ;;  %v1682_v41 = vpop.f32.mrf.mxu3 }
 0x15d   : > { %1863 = vst [vmem:[%s2726_s20 + $0x30] sm:$0xff] %v1831_v39  ;;  %v1490_v42 = vmax.f32 %v1216_v38, %v1408_v40  ;;  %v2023_v38 = vld [vmem:[%s2571_s10 + $0x1e0] sm:$0xff] }
 0x15f   : > { %v1764_v45 = vmax.f32 %v1490_v42, %v1682_v41 }
 0x160   : > { %v895_v46 = vpop.f32.mrf.mxu0  ;;  %v1137_v47 = vpop.f32.mrf.mxu1 }
 0x161   : > { %v1800_v50 = vadd.f32 %v2714_v14, %v1764_v45  ;;  %2117 = vmatmul.msk.f32.gmra.mxu2 %vm753_vm1, %v2084_v43  ;;  %v1217_v51 = vmax.f32 %v895_v46, %v1137_v47  ;;  %2182 = vmatmul.msk.f32.gmra.mxu3 %vm753_vm1, %v2149_v44  ;;  %v2089_v45 = vld [vmem:[%s2571_s10 + $0x2e8] sm:$0xff] }
 0x162   : > { %v2154_v46 = vld [vmem:[%s2571_s10 + $0x3e8] sm:$0xff] }
 0x163   : > { %v1832_v52 = vmax.f32 %v1800_v50, 0.0  ;;  %1987 = vmatmul.msk.f32.gmra.mxu0 %vm753_vm1, %v745_v48  ;;  %2052 = vmatmul.msk.f32.gmra.mxu1 %vm753_vm1, %v2019_v49  ;;  %v750_v50 = vld [vmem:[%s2571_s10 + $0xe8] sm:$0xff] }
 0x164   : > { %v1411_v53 = vpop.f32.mrf.mxu2  ;;  %v1685_v54 = vpop.f32.mrf.mxu3 }
 0x165   : > { %1864 = vst [vmem:[%s2726_s20 + $0x38] sm:$0xff] %v1832_v52  ;;  %v1491_v55 = vmax.f32 %v1217_v51, %v1411_v53  ;;  %v2024_v51 = vld [vmem:[%s2571_s10 + $0x1e8] sm:$0xff] }
 0x167   : > { %v1765_v58 = vmax.f32 %v1491_v55, %v1685_v54 }
 0x168   : > { %v898_v59 = vpop.f32.mrf.mxu0  ;;  %v1140_v60 = vpop.f32.mrf.mxu1 }
 0x169   : > { %v1801_v63 = vadd.f32 %v2714_v14, %v1765_v58  ;;  %2118 = vmatmul.msk.f32.gmra.mxu2 %vm753_vm1, %v2085_v56  ;;  %v1218_v0 = vmax.f32 %v898_v59, %v1140_v60  ;;  %2183 = vmatmul.msk.f32.gmra.mxu3 %vm753_vm1, %v2150_v57  ;;  %v2090_v58 = vld [vmem:[%s2571_s10 + $0x2f0] sm:$0xff] }
 0x16a   : > { %v2155_v59 = vld [vmem:[%s2571_s10 + $0x3f0] sm:$0xff] }
 0x16b   : > { %v1833_v1 = vmax.f32 %v1801_v63, 0.0  ;;  %1988 = vmatmul.msk.f32.gmra.mxu0 %vm753_vm1, %v746_v61  ;;  %2053 = vmatmul.msk.f32.gmra.mxu1 %vm753_vm1, %v2020_v62  ;;  %v751_v63 = vld [vmem:[%s2571_s10 + $0xf0] sm:$0xff] }
 0x16c   : > { %v1414_v2 = vpop.f32.mrf.mxu2  ;;  %v1688_v3 = vpop.f32.mrf.mxu3 }
 0x16d   : > { %1865 = vst [vmem:[%s2726_s20 + $0x40] sm:$0xff] %v1833_v1  ;;  %v1492_v4 = vmax.f32 %v1218_v0, %v1414_v2  ;;  %v2025_v0 = vld [vmem:[%s2571_s10 + $0x1f0] sm:$0xff] }
 0x16f   : > { %v1766_v7 = vmax.f32 %v1492_v4, %v1688_v3 }
 0x170   : > { %v901_v8 = vpop.f32.mrf.mxu0  ;;  %v1143_v9 = vpop.f32.mrf.mxu1 }
 0x171   : > { %v1802_v12 = vadd.f32 %v2714_v14, %v1766_v7  ;;  %2119 = vmatmul.msk.f32.gmra.mxu2 %vm753_vm1, %v2086_v5  ;;  %v1219_v13 = vmax.f32 %v901_v8, %v1143_v9  ;;  %2184 = vmatmul.msk.f32.gmra.mxu3 %vm753_vm1, %v2151_v6  ;;  %v2091_v7 = vld [vmem:[%s2571_s10 + $0x2f8] sm:$0xff] }
 0x172   : > { %v2156_v8 = vld [vmem:[%s2571_s10 + $0x3f8] sm:$0xff] }
 0x173   : > { %v1834_v15 = vmax.f32 %v1802_v12, 0.0  ;;  %1989 = vmatmul.msk.f32.gmra.mxu0 %vm753_vm1, %v747_v10  ;;  %2054 = vmatmul.msk.f32.gmra.mxu1 %vm753_vm1, %v2021_v11  ;;  %v752_v12 = vld [vmem:[%s2571_s10 + $0xf8] sm:$0xff] }
 0x174   : > { %v1417_v16 = vpop.f32.mrf.mxu2  ;;  %v1691_v17 = vpop.f32.mrf.mxu3 }
 0x175   : > { %1866 = vst [vmem:[%s2726_s20 + $0x48] sm:$0xff] %v1834_v15  ;;  %v1493_v18 = vmax.f32 %v1219_v13, %v1417_v16  ;;  %v2026_v13 = vld [vmem:[%s2571_s10 + $0x1f8] sm:$0xff] }
 0x177   : > { %v1767_v21 = vmax.f32 %v1493_v18, %v1691_v17 }
 0x178   : > { %v904_v22 = vpop.f32.mrf.mxu0  ;;  %v1146_v23 = vpop.f32.mrf.mxu1 }
 0x179   : > { %v1803_v26 = vadd.f32 %v2714_v14, %v1767_v21  ;;  %2120 = vmatmul.msk.f32.gmra.mxu2 %vm753_vm1, %v2087_v19  ;;  %v1220_v27 = vmax.f32 %v904_v22, %v1146_v23  ;;  %2185 = vmatmul.msk.f32.gmra.mxu3 %vm753_vm1, %v2152_v20 }
 0x17b   : > { %v1835_v28 = vmax.f32 %v1803_v26, 0.0  ;;  %1990 = vmatmul.msk.f32.gmra.mxu0 %vm753_vm1, %v748_v24  ;;  %2055 = vmatmul.msk.f32.gmra.mxu1 %vm753_vm1, %v2022_v25 }
 0x17c   : > { %v1420_v29 = vpop.f32.mrf.mxu2  ;;  %v1694_v30 = vpop.f32.mrf.mxu3 }
 0x17d   : > { %1867 = vst [vmem:[%s2726_s20 + $0x50] sm:$0xff] %v1835_v28  ;;  %v1494_v31 = vmax.f32 %v1220_v27, %v1420_v29 }
 0x17f   : > { %v1768_v34 = vmax.f32 %v1494_v31, %v1694_v30 }
 0x180   : > { %v907_v35 = vpop.f32.mrf.mxu0  ;;  %v1149_v36 = vpop.f32.mrf.mxu1 }
 0x181   : > { %v1804_v39 = vadd.f32 %v2714_v14, %v1768_v34  ;;  %2121 = vmatmul.msk.f32.gmra.mxu2 %vm753_vm1, %v2088_v32  ;;  %v1221_v40 = vmax.f32 %v907_v35, %v1149_v36  ;;  %2186 = vmatmul.msk.f32.gmra.mxu3 %vm753_vm1, %v2153_v33 }
 0x183   : > { %v1836_v41 = vmax.f32 %v1804_v39, 0.0  ;;  %1991 = vmatmul.msk.f32.gmra.mxu0 %vm753_vm1, %v749_v37  ;;  %2056 = vmatmul.msk.f32.gmra.mxu1 %vm753_vm1, %v2023_v38 }
 0x184   : > { %v1423_v42 = vpop.f32.mrf.mxu2  ;;  %v1697_v43 = vpop.f32.mrf.mxu3 }
 0x185   : > { %1868 = vst [vmem:[%s2726_s20 + $0x58] sm:$0xff] %v1836_v41  ;;  %v1495_v44 = vmax.f32 %v1221_v40, %v1423_v42 }
 0x187   : > { %v1769_v47 = vmax.f32 %v1495_v44, %v1697_v43 }
 0x188   : > { %v910_v48 = vpop.f32.mrf.mxu0  ;;  %v1152_v49 = vpop.f32.mrf.mxu1 }
 0x189   : > { %v1805_v52 = vadd.f32 %v2714_v14, %v1769_v47  ;;  %2122 = vmatmul.msk.f32.gmra.mxu2 %vm753_vm1, %v2089_v45  ;;  %v1222_v53 = vmax.f32 %v910_v48, %v1152_v49  ;;  %2187 = vmatmul.msk.f32.gmra.mxu3 %vm753_vm1, %v2154_v46 }
 0x18b   : > { %v1837_v54 = vmax.f32 %v1805_v52, 0.0  ;;  %1992 = vmatmul.msk.f32.gmra.mxu0 %vm753_vm1, %v750_v50  ;;  %2057 = vmatmul.msk.f32.gmra.mxu1 %vm753_vm1, %v2024_v51 }
 0x18c   : > { %v1426_v55 = vpop.f32.mrf.mxu2  ;;  %v1700_v56 = vpop.f32.mrf.mxu3 }
 0x18d   : > { %1869 = vst [vmem:[%s2726_s20 + $0x60] sm:$0xff] %v1837_v54  ;;  %v1496_v57 = vmax.f32 %v1222_v53, %v1426_v55 }
 0x18f   : > { %v1770_v60 = vmax.f32 %v1496_v57, %v1700_v56 }
 0x190   : > { %v913_v61 = vpop.f32.mrf.mxu0  ;;  %v1155_v62 = vpop.f32.mrf.mxu1 }
 0x191   : > { %v1806_v1 = vadd.f32 %v2714_v14, %v1770_v60  ;;  %2123 = vmatmul.msk.f32.gmra.mxu2 %vm753_vm1, %v2090_v58  ;;  %v1223_v2 = vmax.f32 %v913_v61, %v1155_v62  ;;  %2188 = vmatmul.msk.f32.gmra.mxu3 %vm753_vm1, %v2155_v59 }
 0x193   : > { %v1838_v3 = vmax.f32 %v1806_v1, 0.0  ;;  %1993 = vmatmul.msk.f32.gmra.mxu0 %vm753_vm1, %v751_v63  ;;  %2058 = vmatmul.msk.f32.gmra.mxu1 %vm753_vm1, %v2025_v0 }
 0x194   : > { %v1429_v4 = vpop.f32.mrf.mxu2  ;;  %v1703_v5 = vpop.f32.mrf.mxu3 }
 0x195   : > { %1870 = vst [vmem:[%s2726_s20 + $0x68] sm:$0xff] %v1838_v3  ;;  %v1497_v6 = vmax.f32 %v1223_v2, %v1429_v4 }
 0x197   : > { %v1771_v9 = vmax.f32 %v1497_v6, %v1703_v5 }
 0x198   : > { %v916_v10 = vpop.f32.mrf.mxu0  ;;  %v1158_v11 = vpop.f32.mrf.mxu1 }
 0x199   : > { %v1807_v15 = vadd.f32 %v2714_v14, %v1771_v9  ;;  %2124 = vmatmul.msk.f32.gmra.mxu2 %vm753_vm1, %v2091_v7  ;;  %v1224_v16 = vmax.f32 %v916_v10, %v1158_v11  ;;  %2189 = vmatmul.msk.f32.gmra.mxu3 %vm753_vm1, %v2156_v8 }
 0x19b   : > { %v1839_v17 = vmax.f32 %v1807_v15, 0.0  ;;  %1994 = vmatmul.msk.f32.gmra.mxu0 %vm753_vm1, %v752_v12  ;;  %2059 = vmatmul.msk.f32.gmra.mxu1 %vm753_vm1, %v2026_v13 }
 0x19c   : > { %v1432_v18 = vpop.f32.mrf.mxu2  ;;  %v1706_v19 = vpop.f32.mrf.mxu3 }
 0x19d   : > { %1871 = vst [vmem:[%s2726_s20 + $0x70] sm:$0xff] %v1839_v17  ;;  %v1498_v20 = vmax.f32 %v1224_v16, %v1432_v18 }
 0x19f   : > { %v1772_v21 = vmax.f32 %v1498_v20, %v1706_v19 }
 0x1a0   : > { %v919_v22 = vpop.f32.mrf.mxu0  ;;  %v1161_v23 = vpop.f32.mrf.mxu1 }
 0x1a1   : > { %v1808_v24 = vadd.f32 %v2714_v14, %v1772_v21  ;;  %v1225_v25 = vmax.f32 %v919_v22, %v1161_v23 }
 0x1a3   : > { %v1840_v26 = vmax.f32 %v1808_v24, 0.0 }
 0x1a4   : > { %v1435_v27 = vpop.f32.mrf.mxu2  ;;  %v1709_v28 = vpop.f32.mrf.mxu3 }
 0x1a5   : > { %1872 = vst [vmem:[%s2726_s20 + $0x78] sm:$0xff] %v1840_v26  ;;  %v1499_v29 = vmax.f32 %v1225_v25, %v1435_v27 }
 0x1a7   : > { %v1773_v30 = vmax.f32 %v1499_v29, %v1709_v28 }
 0x1a8   : > { %v922_v31 = vpop.f32.mrf.mxu0  ;;  %v1164_v32 = vpop.f32.mrf.mxu1 }
 0x1a9   : > { %v1809_v33 = vadd.f32 %v2714_v14, %v1773_v30  ;;  %v1226_v34 = vmax.f32 %v922_v31, %v1164_v32 }
 0x1ab   : > { %v1841_v35 = vmax.f32 %v1809_v33, 0.0 }
 0x1ac   : > { %v1438_v36 = vpop.f32.mrf.mxu2  ;;  %v1712_v37 = vpop.f32.mrf.mxu3 }
 0x1ad   : > { %1873 = vst [vmem:[%s2726_s20 + $0x80] sm:$0xff] %v1841_v35  ;;  %v1500_v38 = vmax.f32 %v1226_v34, %v1438_v36 }
 0x1af   : > { %v1774_v39 = vmax.f32 %v1500_v38, %v1712_v37 }
 0x1b0   : > { %v925_v40 = vpop.f32.mrf.mxu0  ;;  %v1167_v41 = vpop.f32.mrf.mxu1 }
 0x1b1   : > { %v1810_v42 = vadd.f32 %v2714_v14, %v1774_v39  ;;  %v1227_v43 = vmax.f32 %v925_v40, %v1167_v41 }
 0x1b3   : > { %v1842_v44 = vmax.f32 %v1810_v42, 0.0 }
 0x1b4   : > { %v1441_v45 = vpop.f32.mrf.mxu2  ;;  %v1715_v46 = vpop.f32.mrf.mxu3 }
 0x1b5   : > { %1874 = vst [vmem:[%s2726_s20 + $0x88] sm:$0xff] %v1842_v44  ;;  %v1501_v47 = vmax.f32 %v1227_v43, %v1441_v45 }
 0x1b7   : > { %v1775_v48 = vmax.f32 %v1501_v47, %v1715_v46 }
 0x1b8   : > { %v928_v49 = vpop.f32.mrf.mxu0  ;;  %v1170_v50 = vpop.f32.mrf.mxu1 }
 0x1b9   : > { %v1811_v51 = vadd.f32 %v2714_v14, %v1775_v48  ;;  %v1228_v52 = vmax.f32 %v928_v49, %v1170_v50 }
 0x1bb   : > { %v1843_v53 = vmax.f32 %v1811_v51, 0.0 }
 0x1bc   : > { %v1444_v54 = vpop.f32.mrf.mxu2  ;;  %v1718_v55 = vpop.f32.mrf.mxu3 }
 0x1bd   : > { %1875 = vst [vmem:[%s2726_s20 + $0x90] sm:$0xff] %v1843_v53  ;;  %v1502_v56 = vmax.f32 %v1228_v52, %v1444_v54 }
 0x1bf   : > { %v1776_v57 = vmax.f32 %v1502_v56, %v1718_v55 }
 0x1c0   : > { %v931_v58 = vpop.f32.mrf.mxu0  ;;  %v1173_v59 = vpop.f32.mrf.mxu1 }
 0x1c1   : > { %v1812_v60 = vadd.f32 %v2714_v14, %v1776_v57  ;;  %v1229_v61 = vmax.f32 %v931_v58, %v1173_v59 }
 0x1c3   : > { %v1844_v62 = vmax.f32 %v1812_v60, 0.0 }
 0x1c4   : > { %v1447_v63 = vpop.f32.mrf.mxu2  ;;  %v1721_v0 = vpop.f32.mrf.mxu3 }
 0x1c5   : > { %1876 = vst [vmem:[%s2726_s20 + $0x98] sm:$0xff] %v1844_v62  ;;  %v1503_v1 = vmax.f32 %v1229_v61, %v1447_v63 }
 0x1c7   : > { %v1777_v2 = vmax.f32 %v1503_v1, %v1721_v0 }
 0x1c8   : > { %v934_v3 = vpop.f32.mrf.mxu0  ;;  %v1176_v4 = vpop.f32.mrf.mxu1 }
 0x1c9   : > { %v1813_v5 = vadd.f32 %v2714_v14, %v1777_v2  ;;  %v1230_v6 = vmax.f32 %v934_v3, %v1176_v4 }
 0x1cb   : > { %v1845_v7 = vmax.f32 %v1813_v5, 0.0 }
 0x1cc   : > { %v1450_v8 = vpop.f32.mrf.mxu2  ;;  %v1724_v9 = vpop.f32.mrf.mxu3 }
 0x1cd   : > { %1877 = vst [vmem:[%s2726_s20 + $0xa0] sm:$0xff] %v1845_v7  ;;  %v1504_v10 = vmax.f32 %v1230_v6, %v1450_v8 }
 0x1cf   : > { %v1778_v11 = vmax.f32 %v1504_v10, %v1724_v9 }
 0x1d0   : > { %v937_v12 = vpop.f32.mrf.mxu0  ;;  %v1179_v13 = vpop.f32.mrf.mxu1 }
 0x1d1   : > { %v1814_v15 = vadd.f32 %v2714_v14, %v1778_v11  ;;  %v1231_v16 = vmax.f32 %v937_v12, %v1179_v13 }
 0x1d3   : > { %v1846_v17 = vmax.f32 %v1814_v15, 0.0 }
 0x1d4   : > { %v1453_v18 = vpop.f32.mrf.mxu2  ;;  %v1727_v19 = vpop.f32.mrf.mxu3 }
 0x1d5   : > { %1878 = vst [vmem:[%s2726_s20 + $0xa8] sm:$0xff] %v1846_v17  ;;  %v1505_v20 = vmax.f32 %v1231_v16, %v1453_v18 }
 0x1d7   : > { %v1779_v21 = vmax.f32 %v1505_v20, %v1727_v19 }
 0x1d8   : > { %v940_v22 = vpop.f32.mrf.mxu0  ;;  %v1182_v23 = vpop.f32.mrf.mxu1 }
 0x1d9   : > { %v1815_v24 = vadd.f32 %v2714_v14, %v1779_v21  ;;  %v1232_v25 = vmax.f32 %v940_v22, %v1182_v23 }
 0x1db   : > { %v1847_v26 = vmax.f32 %v1815_v24, 0.0 }
 0x1dc   : > { %v1456_v27 = vpop.f32.mrf.mxu2  ;;  %v1730_v28 = vpop.f32.mrf.mxu3 }
 0x1dd   : > { %1879 = vst [vmem:[%s2726_s20 + $0xb0] sm:$0xff] %v1847_v26  ;;  %v1506_v29 = vmax.f32 %v1232_v25, %v1456_v27 }
 0x1df   : > { %v1780_v30 = vmax.f32 %v1506_v29, %v1730_v28 }
 0x1e0   : > { %v943_v31 = vpop.f32.mrf.mxu0  ;;  %v1185_v32 = vpop.f32.mrf.mxu1 }
 0x1e1   : > { %v1816_v33 = vadd.f32 %v2714_v14, %v1780_v30  ;;  %v1233_v34 = vmax.f32 %v943_v31, %v1185_v32 }
 0x1e3   : > { %v1848_v35 = vmax.f32 %v1816_v33, 0.0 }
 0x1e4   : > { %v1459_v36 = vpop.f32.mrf.mxu2  ;;  %v1733_v37 = vpop.f32.mrf.mxu3 }
 0x1e5   : > { %1880 = vst [vmem:[%s2726_s20 + $0xb8] sm:$0xff] %v1848_v35  ;;  %v1507_v38 = vmax.f32 %v1233_v34, %v1459_v36 }
 0x1e7   : > { %v1781_v39 = vmax.f32 %v1507_v38, %v1733_v37 }
 0x1e8   : > { %v946_v40 = vpop.f32.mrf.mxu0  ;;  %v1188_v41 = vpop.f32.mrf.mxu1 }
 0x1e9   : > { %v1817_v42 = vadd.f32 %v2714_v14, %v1781_v39  ;;  %v1234_v43 = vmax.f32 %v946_v40, %v1188_v41 }
 0x1eb   : > { %v1849_v44 = vmax.f32 %v1817_v42, 0.0 }
 0x1ec   : > { %v1462_v45 = vpop.f32.mrf.mxu2  ;;  %v1736_v46 = vpop.f32.mrf.mxu3 }
 0x1ed   : > { %1881 = vst [vmem:[%s2726_s20 + $0xc0] sm:$0xff] %v1849_v44  ;;  %v1508_v47 = vmax.f32 %v1234_v43, %v1462_v45 }
 0x1ef   : > { %v1782_v48 = vmax.f32 %v1508_v47, %v1736_v46 }
 0x1f0   : > { %v949_v49 = vpop.f32.mrf.mxu0  ;;  %v1191_v50 = vpop.f32.mrf.mxu1 }
 0x1f1   : > { %v1818_v51 = vadd.f32 %v2714_v14, %v1782_v48  ;;  %v1235_v52 = vmax.f32 %v949_v49, %v1191_v50 }
 0x1f3   : > { %v1850_v53 = vmax.f32 %v1818_v51, 0.0 }
 0x1f4   : > { %v1465_v54 = vpop.f32.mrf.mxu2  ;;  %v1739_v55 = vpop.f32.mrf.mxu3 }
 0x1f5   : > { %1882 = vst [vmem:[%s2726_s20 + $0xc8] sm:$0xff] %v1850_v53  ;;  %v1509_v56 = vmax.f32 %v1235_v52, %v1465_v54 }
 0x1f7   : > { %v1783_v57 = vmax.f32 %v1509_v56, %v1739_v55 }
 0x1f8   : > { %v952_v58 = vpop.f32.mrf.mxu0  ;;  %v1194_v59 = vpop.f32.mrf.mxu1 }
 0x1f9   : > { %v1819_v60 = vadd.f32 %v2714_v14, %v1783_v57  ;;  %v1236_v61 = vmax.f32 %v952_v58, %v1194_v59 }
 0x1fb   : > { %v1851_v62 = vmax.f32 %v1819_v60, 0.0 }
 0x1fc   : > { %v1468_v63 = vpop.f32.mrf.mxu2  ;;  %v1742_v0 = vpop.f32.mrf.mxu3 }
 0x1fd   : > { %1883 = vst [vmem:[%s2726_s20 + $0xd0] sm:$0xff] %v1851_v62  ;;  %v1510_v1 = vmax.f32 %v1236_v61, %v1468_v63 }
 0x1ff   : > { %v1784_v2 = vmax.f32 %v1510_v1, %v1742_v0 }
 0x200   : > { %v955_v3 = vpop.f32.mrf.mxu0  ;;  %v1197_v4 = vpop.f32.mrf.mxu1 }
 0x201   : > { %v1820_v5 = vadd.f32 %v2714_v14, %v1784_v2  ;;  %v1237_v6 = vmax.f32 %v955_v3, %v1197_v4 }
 0x203   : > { %v1852_v7 = vmax.f32 %v1820_v5, 0.0 }
 0x204   : > { %v1471_v8 = vpop.f32.mrf.mxu2  ;;  %v1745_v9 = vpop.f32.mrf.mxu3 }
 0x205   : > { %1884 = vst [vmem:[%s2726_s20 + $0xd8] sm:$0xff] %v1852_v7  ;;  %v1511_v10 = vmax.f32 %v1237_v6, %v1471_v8 }
 0x207   : > { %v1785_v11 = vmax.f32 %v1511_v10, %v1745_v9 }
 0x208   : > { %v958_v12 = vpop.f32.mrf.mxu0  ;;  %v1200_v13 = vpop.f32.mrf.mxu1 }
 0x209   : > { %v1821_v15 = vadd.f32 %v2714_v14, %v1785_v11  ;;  %v1238_v16 = vmax.f32 %v958_v12, %v1200_v13 }
 0x20b   : > { %v1853_v17 = vmax.f32 %v1821_v15, 0.0 }
 0x20c   : > { %v1474_v18 = vpop.f32.mrf.mxu2  ;;  %v1748_v19 = vpop.f32.mrf.mxu3 }
 0x20d   : > { %1885 = vst [vmem:[%s2726_s20 + $0xe0] sm:$0xff] %v1853_v17  ;;  %v1512_v20 = vmax.f32 %v1238_v16, %v1474_v18 }
 0x20f   : > { %v1786_v21 = vmax.f32 %v1512_v20, %v1748_v19 }
 0x210   : > { %v961_v22 = vpop.f32.mrf.mxu0  ;;  %v1203_v23 = vpop.f32.mrf.mxu1 }
 0x211   : > { %v1822_v24 = vadd.f32 %v2714_v14, %v1786_v21  ;;  %v1239_v25 = vmax.f32 %v961_v22, %v1203_v23 }
 0x213   : > { %v1854_v26 = vmax.f32 %v1822_v24, 0.0 }
 0x214   : > { %v1477_v27 = vpop.f32.mrf.mxu2  ;;  %v1751_v28 = vpop.f32.mrf.mxu3 }
 0x215   : > { %1886 = vst [vmem:[%s2726_s20 + $0xe8] sm:$0xff] %v1854_v26  ;;  %v1513_v29 = vmax.f32 %v1239_v25, %v1477_v27 }
 0x217   : > { %v1787_v30 = vmax.f32 %v1513_v29, %v1751_v28 }
 0x218   : > { %v964_v31 = vpop.f32.mrf.mxu0  ;;  %v1206_v32 = vpop.f32.mrf.mxu1 }
 0x219   : > { %v1823_v33 = vadd.f32 %v2714_v14, %v1787_v30  ;;  %v1240_v34 = vmax.f32 %v964_v31, %v1206_v32 }
 0x21b   : > { %v1855_v35 = vmax.f32 %v1823_v33, 0.0 }
 0x21c   : > { %v1480_v36 = vpop.f32.mrf.mxu2  ;;  %v1754_v37 = vpop.f32.mrf.mxu3 }
 0x21d   : > { %1887 = vst [vmem:[%s2726_s20 + $0xf0] sm:$0xff] %v1855_v35  ;;  %v1514_v38 = vmax.f32 %v1240_v34, %v1480_v36 }
 0x21f   : > { %v1788_v39 = vmax.f32 %v1514_v38, %v1754_v37 }
 0x221   : > { %v1824_v40 = vadd.f32 %v2714_v14, %v1788_v39 }
 0x223   : > { %v1856_v41 = vmax.f32 %v1824_v40, 0.0 }
 0x225   : > { %1888 = vst [vmem:[%s2726_s20 + $0xf8] sm:$0xff] %v1856_v41 }
 0x226 PF: > { %p10_p9 = scmp.ge.s32.totalorder %s2279_s16, 4   ;;  %s2919_s12 = smov %s2236_s13 }
 0x227   : > { %s2920_s13 = smov %s2288_s19  ;;  %s2921_s14 = smov %s2279_s16 }
 0x228   :  { %12 = sbr.rel (!%p10_p9) target bundleno = 2 (0x2), region = 108 }

// kernel: lenet5_forward.4
= control target key start
LH: loop header
LB: loop body
LE: loop exit
PB: predicated region body
PF: predicated region fallthrough
CT: control target
= control target key end

     0   :  { %vm69_vm0 = vcmask 1045504   ;;  %vm47_vm1 = vcmask 179200   ;;  %s1094_s1 = inlined_call_operand.vmem [shape: f32[150,128], index: 1, kind: input, shape index: {}]   ;;  %s1095_s0 = inlined_call_operand.vmem [shape: f32[4,50,150], index: 0, kind: input, shape index: {}]   ;;  %s1096_s2 = inlined_call_operand.vmem [shape: f32[1,128], index: 2, kind: input, shape index: {}]   ;;  %s1097_s3 = inlined_call_operand.vmem [shape: f32[50,128], index: 3, kind: output, shape index: {}]  }
   0x1   :  { %v652_v0 = vld [vmem:[%s1094_s1 + $0x78] sm:$0xff]  ;;  %v657_v1 = vld [vmem:[%s1094_s1 + $0x90] sm:$0x3f]  ;;  %v669_v3 = vld [vmem:[%s1094_s1 + $0x88] sm:$0xff] }
   0x2   :  { %v662_v2 = vld [vmem:[%s1094_s1 + $0x70] sm:$0xff]  ;;  %73 = vmatpush.msra.mxu0 %v652_v0  ;;  %185 = vmatpush.msra.mxu2 %v652_v0  ;;  %v676_v4 = vld [vmem:[%s1094_s1 + $0x68] sm:$0xff]  ;;  %v685_v5 = vld [vmem:[%s1094_s1 + $0x80] sm:$0xff] }
   0x3   :  { %557 = vmatpush.msk.msra.mxu3 %vm69_vm0, %v657_v1  ;;  %535 = vmatpush.msk.msra.mxu1 %vm69_vm0, %v657_v1  ;;  %v544_v6 = vld [vmem:[%s1095_s0 + $0x78] sm:$0xff]  ;;  %v694_v7 = vld [vmem:[%s1094_s1 + $0x60] sm:$0xff]  ;;  %v34_v8 = vld [vmem:[%s1095_s0 + $0x8] sm:$0xff] }
   0x4   :  { %74 = vmatpush.msra.mxu0 %v662_v2  ;;  %186 = vmatpush.msra.mxu2 %v662_v2  ;;  %v706_v9 = vld [vmem:[%s1094_s1 + $0x58] sm:$0xff]  ;;  %v715_v10 = vld [vmem:[%s1094_s1 + $0x50] sm:$0xff]  ;;  %v725_v11 = vld [vmem:[%s1094_s1 + $0x48] sm:$0xff] }
   0x5   :  { %237 = vmatpush.msra.mxu3 %v669_v3  ;;  %125 = vmatpush.msra.mxu1 %v669_v3  ;;  %v546_v12 = vld [vmem:[%s1095_s0 + $0x88] sm:$0xff]  ;;  %v737_v13 = vld [vmem:[%s1094_s1 + $0x40] sm:$0xff]  ;;  %v36_v14 = vld [vmem:[%s1095_s0 + $0x18] sm:$0xff] }
   0x6   :  { %75 = vmatpush.msra.mxu0 %v676_v4  ;;  %187 = vmatpush.msra.mxu2 %v676_v4  ;;  %v749_v15 = vld [vmem:[%s1094_s1 + $0x38] sm:$0xff]  ;;  %v758_v16 = vld [vmem:[%s1094_s1 + $0x30] sm:$0xff]  ;;  %v767_v17 = vld [vmem:[%s1094_s1 + $0x28] sm:$0xff] }
   0x7   :  { %238 = vmatpush.msra.mxu3 %v685_v5  ;;  %126 = vmatpush.msra.mxu1 %v685_v5  ;;  %v548_v18 = vld [vmem:[%s1095_s0 + $0x98] sm:$0xff]  ;;  %v780_v19 = vld [vmem:[%s1094_s1 + $0x20] sm:$0xff]  ;;  %v38_v20 = vld [vmem:[%s1095_s0 + $0x28] sm:$0xff] }
   0x8   :  { %558 = vmatmul.msk.f32.vlgmr.msra.gmra.mxu3 %vm47_vm1, %v544_v6  ;;  %76 = vmatpush.msra.mxu0 %v694_v7  ;;  %v792_v21 = vld [vmem:[%s1094_s1 + $0x18] sm:$0xff]  ;;  %v801_v22 = vld [vmem:[%s1094_s1 + $0x10] sm:$0xff]  ;;  %v810_v23 = vld [vmem:[%s1094_s1 + $0x8] sm:$0xff] }
   0x9   :  { %188 = vmatpush.msra.mxu2 %v694_v7  ;;  %536 = vmatmul.msk.f32.vlgmr.msra.gmra.mxu1 %vm47_vm1, %v34_v8  ;;  %v550_v24 = vld [vmem:[%s1095_s0 + $0xa8] sm:$0xff]  ;;  %v821_v25 = vld [vmem:[%s1094_s1] sm:$0xff]  ;;  %v543_v27 = vld [vmem:[%s1095_s0 + $0x70] sm:$0xff] }
   0xa   :  { %77 = vmatpush.msra.mxu0 %v706_v9  ;;  %579 = vmatpush.msk.msrb.mxu3 %vm69_vm0, %v657_v1  ;;  %v33_v26 = vld [vmem:[%s1095_s0] sm:$0xff]  ;;  %v40_v28 = vld [vmem:[%s1095_s0 + $0x38] sm:$0xff]  ;;  %v35_v30 = vld [vmem:[%s1095_s0 + $0x10] sm:$0xff] }
   0xb   :  { %189 = vmatpush.msra.mxu2 %v706_v9  ;;  %304 = vmatpush.msrb.mxu1 %v652_v0  ;;  %v552_v29 = vld [vmem:[%s1095_s0 + $0xb8] sm:$0xff]  ;;  %v545_v31 = vld [vmem:[%s1095_s0 + $0x80] sm:$0xff]  ;;  %v42_v32 = vld [vmem:[%s1095_s0 + $0x48] sm:$0xff] }
   0xc   :  { %78 = vmatpush.msra.mxu0 %v715_v10  ;;  %356 = vmatpush.msrb.mxu3 %v669_v3  ;;  %v554_v33 = vld [vmem:[%s1095_s0 + $0xc8] sm:$0xff]  ;;  %v37_v34 = vld [vmem:[%s1095_s0 + $0x20] sm:$0xff]  ;;  %v547_v35 = vld [vmem:[%s1095_s0 + $0x90] sm:$0xff] }
   0xd   :  { %190 = vmatpush.msra.mxu2 %v715_v10  ;;  %305 = vmatpush.msrb.mxu1 %v662_v2  ;;  %v44_v36 = vld [vmem:[%s1095_s0 + $0x58] sm:$0xff]  ;;  %v39_v38 = vld [vmem:[%s1095_s0 + $0x30] sm:$0xff]  ;;  %v549_v39 = vld [vmem:[%s1095_s0 + $0xa0] sm:$0xff] }
   0xe   :  { %79 = vmatpush.msra.mxu0 %v725_v11  ;;  %357 = vmatpush.msrb.mxu3 %v685_v5  ;;  %v556_v37 = vld [vmem:[%s1095_s0 + $0xd8] sm:$0x3]  ;;  %v46_v40 = vld [vmem:[%s1095_s0 + $0x68] sm:$0x3]  ;;  %v41_v42 = vld [vmem:[%s1095_s0 + $0x40] sm:$0xff] }
   0xf   :  { %191 = vmatpush.msra.mxu2 %v725_v11  ;;  %306 = vmatpush.msrb.mxu1 %v676_v4  ;;  %v566_v41 = vld [vmem:[%s1095_s0 + $0xe8] sm:$0xff]  ;;  %v551_v43 = vld [vmem:[%s1095_s0 + $0xb0] sm:$0xff]  ;;  %v565_v44 = vld [vmem:[%s1095_s0 + $0xe0] sm:$0xff] }
  0x10   :  { %559 = vmatmul.msk.f32.gmra.mxu3 %vm47_vm1, %v546_v12  ;;  %80 = vmatpush.msra.mxu0 %v737_v13  ;;  %v568_v45 = vld [vmem:[%s1095_s0 + $0xf8] sm:$0xff]  ;;  %v43_v46 = vld [vmem:[%s1095_s0 + $0x50] sm:$0xff]  ;;  %v553_v47 = vld [vmem:[%s1095_s0 + $0xc0] sm:$0xff] }
  0x11   :  { %192 = vmatpush.msra.mxu2 %v737_v13  ;;  %537 = vmatmul.msk.f32.gmra.mxu1 %vm47_vm1, %v36_v14  ;;  %v567_v48 = vld [vmem:[%s1095_s0 + $0xf0] sm:$0xff]  ;;  %v570_v49 = vld [vmem:[%s1095_s0 + $0x108] sm:$0xff]  ;;  %v45_v50 = vld [vmem:[%s1095_s0 + $0x60] sm:$0x3] }
  0x12   :  { %81 = vmatpush.msra.mxu0 %v749_v15  ;;  %307 = vmatpush.msrb.mxu1 %v694_v7  ;;  %v555_v51 = vld [vmem:[%s1095_s0 + $0xd0] sm:$0x3]  ;;  %v569_v52 = vld [vmem:[%s1095_s0 + $0x100] sm:$0xff]  ;;  %v572_v53 = vld [vmem:[%s1095_s0 + $0x118] sm:$0xff] }
  0x13   :  { %193 = vmatpush.msra.mxu2 %v749_v15  ;;  %625 = vmatpush.msk.msra.mxu3 %vm69_vm0, %v657_v1  ;;  %v587_v54 = vld [vmem:[%s1095_s0 + $0x150] sm:$0xff]  ;;  %v588_v55 = vld [vmem:[%s1095_s0 + $0x158] sm:$0xff]  ;;  %v574_v57 = vld [vmem:[%s1095_s0 + $0x128] sm:$0xff] }
  0x14   :  { %82 = vmatpush.msra.mxu0 %v758_v16  ;;  %308 = vmatpush.msrb.mxu1 %v706_v9  ;;  %v571_v56 = vld [vmem:[%s1095_s0 + $0x110] sm:$0xff]  ;;  %v589_v58 = vld [vmem:[%s1095_s0 + $0x160] sm:$0xff]  ;;  %v590_v59 = vld [vmem:[%s1095_s0 + $0x168] sm:$0xff] }
  0x15   :  { %194 = vmatpush.msra.mxu2 %v758_v16  ;;  %626 = vmatpush.msra.mxu3 %v669_v3  ;;  %v573_v60 = vld [vmem:[%s1095_s0 + $0x120] sm:$0xff]  ;;  %v576_v61 = vld [vmem:[%s1095_s0 + $0x138] sm:$0xff]  ;;  %v591_v62 = vld [vmem:[%s1095_s0 + $0x170] sm:$0xff] }
  0x16   :  { %83 = vmatpush.msra.mxu0 %v767_v17  ;;  %309 = vmatpush.msrb.mxu1 %v715_v10  ;;  %v592_v63 = vld [vmem:[%s1095_s0 + $0x178] sm:$0xff]  ;;  %v595_v6 = vld [vmem:[%s1095_s0 + $0x190] sm:$0xff] }
  0x17   :  { %195 = vmatpush.msra.mxu2 %v767_v17  ;;  %627 = vmatpush.msra.mxu3 %v685_v5  ;;  %v599_v8 = vld [vmem:[%s1095_s0 + $0x1b0] sm:$0x3] }
  0x18   :  { %560 = vmatmul.msk.f32.gmra.mxu3 %vm47_vm1, %v548_v18  ;;  %84 = vmatpush.msra.mxu0 %v780_v19 }
  0x19   :  { %196 = vmatpush.msra.mxu2 %v780_v19  ;;  %538 = vmatmul.msk.f32.gmra.mxu1 %vm47_vm1, %v38_v20 }
  0x1a   :  { %85 = vmatpush.msra.mxu0 %v792_v21  ;;  %310 = vmatpush.msrb.mxu1 %v725_v11 }
  0x1b   :  { %197 = vmatpush.msra.mxu2 %v792_v21 }
  0x1c   :  { %86 = vmatpush.msra.mxu0 %v801_v22  ;;  %311 = vmatpush.msrb.mxu1 %v737_v13 }
  0x1d   :  { %198 = vmatpush.msra.mxu2 %v801_v22 }
  0x1e   :  { %87 = vmatpush.msra.mxu0 %v810_v23  ;;  %312 = vmatpush.msrb.mxu1 %v749_v15 }
  0x1f   :  { %199 = vmatpush.msra.mxu2 %v810_v23 }
  0x20   :  { %561 = vmatmul.msk.f32.gmra.mxu3 %vm47_vm1, %v550_v24  ;;  %88 = vmatpush.msra.mxu0 %v821_v25 }
  0x21   :  { %200 = vmatpush.msra.mxu2 %v821_v25  ;;  %89 = vmatmul.f32.vlgmr.msra.gmra.mxu0 %v33_v26 }
  0x22   :  { %201 = vmatmul.f32.vlgmr.msra.gmra.mxu2 %v543_v27  ;;  %539 = vmatmul.msk.f32.gmra.mxu1 %vm47_vm1, %v40_v28 }
  0x23   :  { %601 = vmatpush.msk.msrb.mxu2 %vm69_vm0, %v657_v1  ;;  %423 = vmatpush.msrb.mxu0 %v652_v0  ;;  %v578_v1 = vld [vmem:[%s1095_s0 + $0x148] sm:$0x3] }
  0x24   :  { %313 = vmatpush.msrb.mxu1 %v758_v16 }
  0x25   :  { %424 = vmatpush.msrb.mxu0 %v662_v2  ;;  %475 = vmatpush.msrb.mxu2 %v669_v3  ;;  %v594_v3 = vld [vmem:[%s1095_s0 + $0x188] sm:$0xff] }
  0x26   :  { %314 = vmatpush.msrb.mxu1 %v767_v17 }
  0x27   :  { %425 = vmatpush.msrb.mxu0 %v676_v4  ;;  %476 = vmatpush.msrb.mxu2 %v685_v5  ;;  %v600_v5 = vld [vmem:[%s1095_s0 + $0x1b8] sm:$0x3] }
  0x28   :  { %562 = vmatmul.msk.f32.gmra.mxu3 %vm47_vm1, %v552_v29  ;;  %315 = vmatpush.msrb.mxu1 %v780_v19 }
  0x29   :  { %92 = vmatmul.f32.gmra.mxu0 %v35_v30 }
  0x2a   :  { %204 = vmatmul.f32.gmra.mxu2 %v545_v31  ;;  %540 = vmatmul.msk.f32.gmra.mxu1 %vm47_vm1, %v42_v32 }
  0x2b   :  { %426 = vmatpush.msrb.mxu0 %v694_v7  ;;  %316 = vmatpush.msrb.mxu1 %v792_v21 }
  0x2d   :  { %427 = vmatpush.msrb.mxu0 %v706_v9  ;;  %317 = vmatpush.msrb.mxu1 %v801_v22 }
  0x2f   :  { %428 = vmatpush.msrb.mxu0 %v715_v10  ;;  %318 = vmatpush.msrb.mxu1 %v810_v23 }
  0x30   :  { %563 = vmatmul.msk.f32.gmra.mxu3 %vm47_vm1, %v554_v33 }
  0x31   :  { %95 = vmatmul.f32.gmra.mxu0 %v37_v34  ;;  %319 = vmatpush.msrb.mxu1 %v821_v25 }
  0x32   :  { %207 = vmatmul.f32.gmra.mxu2 %v547_v35  ;;  %541 = vmatmul.msk.f32.gmra.mxu1 %vm47_vm1, %v44_v36 }
  0x33   :  { %429 = vmatpush.msrb.mxu0 %v725_v11  ;;  %609 = vmatpush.msra.mxu1 %v652_v0  ;;  %v575_v0 = vld [vmem:[%s1095_s0 + $0x130] sm:$0xff] }
  0x35   :  { %430 = vmatpush.msrb.mxu0 %v737_v13  ;;  %610 = vmatpush.msra.mxu1 %v662_v2  ;;  %v593_v2 = vld [vmem:[%s1095_s0 + $0x180] sm:$0xff] }
  0x37   :  { %431 = vmatpush.msrb.mxu0 %v749_v15  ;;  %611 = vmatpush.msra.mxu1 %v676_v4  ;;  %v577_v4 = vld [vmem:[%s1095_s0 + $0x140] sm:$0x3] }
  0x38   :  { %564 = vmatmul.msk.f32.gmra.mxu3 %vm47_vm1, %v556_v37 }
  0x39   :  { %98 = vmatmul.f32.gmra.mxu0 %v39_v38  ;;  %612 = vmatpush.msra.mxu1 %v694_v7  ;;  %v596_v7 = vld [vmem:[%s1095_s0 + $0x198] sm:$0xff] }
  0x3a   :  { %210 = vmatmul.f32.gmra.mxu2 %v549_v39  ;;  %542 = vmatmul.msk.f32.gmra.mxu1 %vm47_vm1, %v46_v40 }
  0x3b   :  { %432 = vmatpush.msrb.mxu0 %v758_v16  ;;  %613 = vmatpush.msra.mxu1 %v706_v9  ;;  %v597_v9 = vld [vmem:[%s1095_s0 + $0x1a0] sm:$0xff] }
  0x3d   :  { %433 = vmatpush.msrb.mxu0 %v767_v17  ;;  %614 = vmatpush.msra.mxu1 %v715_v10  ;;  %v598_v10 = vld [vmem:[%s1095_s0 + $0x1a8] sm:$0xff] }
  0x3f   :  { %434 = vmatpush.msrb.mxu0 %v780_v19  ;;  %615 = vmatpush.msra.mxu1 %v725_v11 }
  0x40   :  { %580 = vmatmul.msk.f32.vlgmr.msrb.gmra.mxu3 %vm47_vm1, %v566_v41 }
  0x41   :  { %101 = vmatmul.f32.gmra.mxu0 %v41_v42  ;;  %616 = vmatpush.msra.mxu1 %v737_v13 }
  0x42   :  { %213 = vmatmul.f32.gmra.mxu2 %v551_v43  ;;  %320 = vmatmul.f32.vlgmr.msrb.gmra.mxu1 %v565_v44 }
  0x43   :  { %435 = vmatpush.msrb.mxu0 %v792_v21  ;;  %617 = vmatpush.msra.mxu1 %v749_v15 }
  0x45   :  { %436 = vmatpush.msrb.mxu0 %v801_v22  ;;  %618 = vmatpush.msra.mxu1 %v758_v16 }
  0x47   :  { %437 = vmatpush.msrb.mxu0 %v810_v23  ;;  %619 = vmatpush.msra.mxu1 %v767_v17 }
  0x48   :  { %581 = vmatmul.msk.f32.gmra.mxu3 %vm47_vm1, %v568_v45 }
  0x49   :  { %104 = vmatmul.f32.gmra.mxu0 %v43_v46  ;;  %620 = vmatpush.msra.mxu1 %v780_v19 }
  0x4a   :  { %216 = vmatmul.f32.gmra.mxu2 %v553_v47  ;;  %323 = vmatmul.f32.gmra.mxu1 %v567_v48 }
  0x4b   :  { %438 = vmatpush.msrb.mxu0 %v821_v25  ;;  %621 = vmatpush.msra.mxu1 %v792_v21 }
  0x4d   :  { %622 = vmatpush.msra.mxu1 %v801_v22 }
  0x4f   :  { %623 = vmatpush.msra.mxu1 %v810_v23 }
  0x50   :  { %582 = vmatmul.msk.f32.gmra.mxu3 %vm47_vm1, %v570_v49 }
  0x51   :  { %107 = vmatmul.f32.gmra.mxu0 %v45_v50  ;;  %624 = vmatpush.msra.mxu1 %v821_v25 }
  0x52   :  { %219 = vmatmul.f32.gmra.mxu2 %v555_v51  ;;  %326 = vmatmul.f32.gmra.mxu1 %v569_v52 }
  0x58   :  { %583 = vmatmul.msk.f32.gmra.mxu3 %vm47_vm1, %v572_v53 }
  0x59   :  { %439 = vmatmul.f32.vlgmr.msrb.gmra.mxu0 %v587_v54 }
  0x5a   :  { %602 = vmatmul.msk.f32.vlgmr.msrb.gmra.mxu2 %vm47_vm1, %v588_v55  ;;  %329 = vmatmul.f32.gmra.mxu1 %v571_v56 }
  0x60   :  { %584 = vmatmul.msk.f32.gmra.mxu3 %vm47_vm1, %v574_v57 }
  0x61   :  { %442 = vmatmul.f32.gmra.mxu0 %v589_v58 }
  0x62   :  { %603 = vmatmul.msk.f32.gmra.mxu2 %vm47_vm1, %v590_v59  ;;  %332 = vmatmul.f32.gmra.mxu1 %v573_v60 }
  0x68   :  { %585 = vmatmul.msk.f32.gmra.mxu3 %vm47_vm1, %v576_v61 }
  0x69   :  { %445 = vmatmul.f32.gmra.mxu0 %v591_v62 }
  0x6a   :  { %604 = vmatmul.msk.f32.gmra.mxu2 %vm47_vm1, %v592_v63  ;;  %335 = vmatmul.f32.gmra.mxu1 %v575_v0 }
  0x70   :  { %586 = vmatmul.msk.f32.gmra.mxu3 %vm47_vm1, %v578_v1 }
  0x71   :  { %448 = vmatmul.f32.gmra.mxu0 %v593_v2 }
  0x72   :  { %605 = vmatmul.msk.f32.gmra.mxu2 %vm47_vm1, %v594_v3  ;;  %338 = vmatmul.f32.gmra.mxu1 %v577_v4 }
  0x78   :  { %608 = vmatmul.msk.f32.vlgmr.msra.gmra.mxu3 %vm47_vm1, %v600_v5 }
  0x79   :  { %451 = vmatmul.f32.gmra.mxu0 %v595_v6  ;;  %v1057_v6 = vld [vmem:[%s1096_s2] ss:$0 sm:$0xff] }
  0x7a   :  { %606 = vmatmul.msk.f32.gmra.mxu2 %vm47_vm1, %v596_v7  ;;  %457 = vmatmul.f32.vlgmr.msra.gmra.mxu1 %v599_v8 }
  0x81   :  { %454 = vmatmul.f32.gmra.mxu0 %v597_v9 }
  0x82   :  { %607 = vmatmul.msk.f32.gmra.mxu2 %vm47_vm1, %v598_v10 }
  0x86   :  { %v128_v11 = vpop.f32.mrf.mxu1 }
  0x8b   :  { %v240_v12 = vpop.f32.mrf.mxu3 }
  0x8e   :  { %v131_v13 = vpop.f32.mrf.mxu1 }
  0x93   :  { %v243_v14 = vpop.f32.mrf.mxu3 }
  0x96   :  { %v134_v15 = vpop.f32.mrf.mxu1 }
  0x9b   :  { %v246_v16 = vpop.f32.mrf.mxu3 }
  0x9e   :  { %v90_v17 = vpop.f32.mrf.mxu0 }
  0x9f   :  { %v137_v18 = vpop.f32.mrf.mxu1  ;;  %v129_v21 = vadd.f32 %v128_v11, %v90_v17 }
  0xa3   :  { %v249_v19 = vpop.f32.mrf.mxu3 }
  0xa5   :  { %v202_v20 = vpop.f32.mrf.mxu2 }
  0xa6   :  { %v241_v22 = vadd.f32 %v240_v12, %v202_v20  ;;  %v93_v23 = vpop.f32.mrf.mxu0 }
  0xa7   :  { %v140_v24 = vpop.f32.mrf.mxu1  ;;  %v132_v28 = vadd.f32 %v131_v13, %v93_v23 }
  0xa8   :  { %v261_v25 = vmax.f32 %v129_v21, %v241_v22 }
  0xab   :  { %v252_v26 = vpop.f32.mrf.mxu3 }
  0xad   :  { %v205_v27 = vpop.f32.mrf.mxu2 }
  0xae   :  { %v244_v29 = vadd.f32 %v243_v14, %v205_v27  ;;  %v96_v30 = vpop.f32.mrf.mxu0 }
  0xaf   :  { %v143_v31 = vpop.f32.mrf.mxu1  ;;  %v135_v35 = vadd.f32 %v134_v15, %v96_v30 }
  0xb0   :  { %v262_v32 = vmax.f32 %v132_v28, %v244_v29 }
  0xb3   :  { %v255_v33 = vpop.f32.mrf.mxu3 }
  0xb5   :  { %v208_v34 = vpop.f32.mrf.mxu2 }
  0xb6   :  { %v247_v36 = vadd.f32 %v246_v16, %v208_v34  ;;  %v99_v37 = vpop.f32.mrf.mxu0 }
  0xb7   :  { %v1040_v38 = vpop.f32.mrf.mxu1  ;;  %v138_v42 = vadd.f32 %v137_v18, %v99_v37 }
  0xb8   :  { %v263_v39 = vmax.f32 %v135_v35, %v247_v36 }
  0xbb   :  { %v258_v40 = vpop.f32.mrf.mxu3 }
  0xbd   :  { %v211_v41 = vpop.f32.mrf.mxu2 }
  0xbe   :  { %v250_v43 = vadd.f32 %v249_v19, %v211_v41  ;;  %v102_v44 = vpop.f32.mrf.mxu0 }
  0xbf   :  { %v321_v45 = vpop.f32.mrf.mxu1  ;;  %v1042_v49 = vadd.f32 %v140_v24, %v102_v44 }
  0xc0   :  { %v264_v46 = vmax.f32 %v138_v42, %v250_v43 }
  0xc3   :  { %v359_v47 = vpop.f32.mrf.mxu3 }
  0xc4   :  { %v360_v1 = vadd.f32 %v359_v47, %v321_v45 }
  0xc5   :  { %v214_v48 = vpop.f32.mrf.mxu2 }
  0xc6   :  { %v1044_v50 = vadd.f32 %v252_v26, %v214_v48  ;;  %v105_v51 = vpop.f32.mrf.mxu0  ;;  %v380_v4 = vmax.f32 %v261_v25, %v360_v1 }
  0xc7   :  { %v324_v52 = vpop.f32.mrf.mxu1  ;;  %v1048_v56 = vadd.f32 %v143_v31, %v105_v51 }
  0xc8   :  { %v265_v53 = vmax.f32 %v1042_v49, %v1044_v50 }
  0xcb   :  { %v362_v54 = vpop.f32.mrf.mxu3 }
  0xcc   :  { %v363_v10 = vadd.f32 %v362_v54, %v324_v52 }
  0xcd   :  { %v217_v55 = vpop.f32.mrf.mxu2 }
  0xce   :  { %v1050_v57 = vadd.f32 %v255_v33, %v217_v55  ;;  %v108_v58 = vpop.f32.mrf.mxu0  ;;  %v381_v15 = vmax.f32 %v262_v32, %v363_v10 }
  0xcf   :  { %v327_v59 = vpop.f32.mrf.mxu1 }
  0xd0   :  { %v266_v60 = vmax.f32 %v1048_v56, %v1050_v57 }
  0xd3   :  { %v365_v61 = vpop.f32.mrf.mxu3 }
  0xd4   :  { %v366_v20 = vadd.f32 %v365_v61, %v327_v59 }
  0xd5   :  { %v220_v62 = vpop.f32.mrf.mxu2 }
  0xd6   :  { %v440_v63 = vpop.f32.mrf.mxu0  ;;  %v382_v25 = vmax.f32 %v263_v39, %v366_v20  ;;  %v259_v35 = vadd.f32 %v258_v40, %v220_v62  ;;  %v147_v39 = vadd.f32 %v1040_v38, %v108_v58 }
  0xd7   :  { %v330_v0 = vpop.f32.mrf.mxu1 }
  0xd8   :  { %v267_v45 = vmax.f32 %v147_v39, %v259_v35 }
  0xdb   :  { %v368_v2 = vpop.f32.mrf.mxu3 }
  0xdc   :  { %v369_v30 = vadd.f32 %v368_v2, %v330_v0 }
  0xdd   :  { %v478_v3 = vpop.f32.mrf.mxu2 }
  0xde   :  { %v479_v5 = vadd.f32 %v478_v3, %v440_v63  ;;  %v443_v7 = vpop.f32.mrf.mxu0  ;;  %v383_v36 = vmax.f32 %v264_v46, %v369_v30 }
  0xdf   :  { %v333_v8 = vpop.f32.mrf.mxu1 }
  0xe0   :  { %v499_v9 = vmax.f32 %v380_v4, %v479_v5 }
  0xe2   :  { %v510_v11 = vadd.f32 %v1057_v6, %v499_v9 }
  0xe3   :  { %v371_v12 = vpop.f32.mrf.mxu3 }
  0xe4   :  { %v517_v13 = vmax.f32 %v510_v11, 0.0  ;;  %v372_v47 = vadd.f32 %v371_v12, %v333_v8 }
  0xe5   :  { %v481_v14 = vpop.f32.mrf.mxu2 }
  0xe6   :  { %524 = vst [vmem:[%s1097_s3] sm:$0xff] %v517_v13  ;;  %v482_v16 = vadd.f32 %v481_v14, %v443_v7  ;;  %v446_v17 = vpop.f32.mrf.mxu0  ;;  %v384_v55 = vmax.f32 %v265_v53, %v372_v47 }
  0xe7   :  { %v336_v18 = vpop.f32.mrf.mxu1 }
  0xe8   :  { %v500_v19 = vmax.f32 %v381_v15, %v482_v16 }
  0xea   :  { %v511_v21 = vadd.f32 %v1057_v6, %v500_v19 }
  0xeb   :  { %v374_v22 = vpop.f32.mrf.mxu3 }
  0xec   :  { %v518_v23 = vmax.f32 %v511_v21, 0.0  ;;  %v375_v62 = vadd.f32 %v374_v22, %v336_v18 }
  0xed   :  { %v484_v24 = vpop.f32.mrf.mxu2 }
  0xee   :  { %525 = vst [vmem:[%s1097_s3 + $0x8] sm:$0xff] %v518_v23  ;;  %v485_v26 = vadd.f32 %v484_v24, %v446_v17  ;;  %v449_v28 = vpop.f32.mrf.mxu0  ;;  %v385_v53 = vmax.f32 %v266_v60, %v375_v62 }
  0xef   :  { %v339_v27 = vpop.f32.mrf.mxu1 }
  0xf0   :  { %v501_v29 = vmax.f32 %v382_v25, %v485_v26 }
  0xf2   :  { %v512_v31 = vadd.f32 %v1057_v6, %v501_v29 }
  0xf3   :  { %v377_v32 = vpop.f32.mrf.mxu3 }
  0xf4   :  { %v519_v33 = vmax.f32 %v512_v31, 0.0  ;;  %v378_v41 = vadd.f32 %v377_v32, %v339_v27 }
  0xf5   :  { %v487_v34 = vpop.f32.mrf.mxu2 }
  0xf6   :  { %526 = vst [vmem:[%s1097_s3 + $0x10] sm:$0xff] %v519_v33  ;;  %v488_v37 = vadd.f32 %v487_v34, %v449_v28  ;;  %v452_v44 = vpop.f32.mrf.mxu0  ;;  %v386_v52 = vmax.f32 %v267_v45, %v378_v41 }
  0xf7   :  { %v458_v43 = vpop.f32.mrf.mxu1 }
  0xf8   :  { %v502_v42 = vmax.f32 %v383_v36, %v488_v37 }
  0xfa   :  { %v513_v48 = vadd.f32 %v1057_v6, %v502_v42 }
  0xfb   :  { %v496_v51 = vpop.f32.mrf.mxu3 }
  0xfc   :  { %v520_v54 = vmax.f32 %v513_v48, 0.0  ;;  %v497_v40 = vadd.f32 %v496_v51, %v458_v43 }
  0xfd   :  { %v490_v46 = vpop.f32.mrf.mxu2 }
  0xfe   :  { %527 = vst [vmem:[%s1097_s3 + $0x18] sm:$0xff] %v520_v54  ;;  %v505_v38 = vmax.f32 %v386_v52, %v497_v40  ;;  %v491_v58 = vadd.f32 %v490_v46, %v452_v44  ;;  %v455_v1 = vpop.f32.mrf.mxu0 }
 0x100   :  { %v516_v59 = vadd.f32 %v1057_v6, %v505_v38  ;;  %v503_v61 = vmax.f32 %v384_v55, %v491_v58 }
 0x102   :  { %v523_v63 = vmax.f32 %v516_v59, 0.0  ;;  %v514_v0 = vadd.f32 %v1057_v6, %v503_v61 }
 0x104   :  { %530 = vst [vmem:[%s1097_s3 + $0x30] sm:$0x3] %v523_v63  ;;  %v521_v49 = vmax.f32 %v514_v0, 0.0 }
 0x105   :  { %v493_v50 = vpop.f32.mrf.mxu2 }
 0x106   :  { %528 = vst [vmem:[%s1097_s3 + $0x20] sm:$0xff] %v521_v49  ;;  %v494_v2 = vadd.f32 %v493_v50, %v455_v1 }
 0x108   :  { %v504_v3 = vmax.f32 %v385_v53, %v494_v2 }
 0x10a   :  { %v515_v4 = vadd.f32 %v1057_v6, %v504_v3 }
 0x10c   :  { %v522_v5 = vmax.f32 %v515_v4, 0.0 }
 0x10e   :  { %529 = vst [vmem:[%s1097_s3 + $0x28] sm:$0xff] %v522_v5 }

// kernel: lenet5_forward.5
= control target key start
LH: loop header
LB: loop body
LE: loop exit
PB: predicated region body
PF: predicated region fallthrough
CT: control target
= control target key end

     0   :  { %s2568_s0 = inlined_call_operand.vmem [shape: f32[2,3200], index: 0, kind: input, shape index: {}]   ;;  %s2569_s1 = inlined_call_operand.vmem [shape: f32[3200,128], index: 1, kind: input, shape index: {}]   ;;  %s2570_s2 = inlined_call_operand.vmem [shape: f32[1,128], index: 2, kind: input, shape index: {}]   ;;  %s2571_s3 = inlined_call_operand.vmem [shape: f32[128,128], index: 3, kind: input, shape index: {}]   ;;  %s2572_s4 = inlined_call_operand.vmem [shape: f32[1,128], index: 4, kind: input, shape index: {}]   ;;  %s2573_s5 = inlined_call_operand.vmem [shape: f32[128,128], index: 5, kind: input, shape index: {}]   ;;  %s2574_s6 = inlined_call_operand.vmem [shape: f32[1,128], index: 6, kind: input, shape index: {}]   ;;  %s2575_s7 = inlined_call_operand.hbm [shape: f32[2,128], index: 7, kind: output, shape index: {}]  }
   0x1   :  { %v49_v0 = vld [vmem:[%s2569_s1 + $0x78] sm:$0xff]  ;;  %v48_v2 = vld [vmem:[%s2569_s1 + $0x70] sm:$0xff]  ;;  %v47_v6 = vld [vmem:[%s2569_s1 + $0x68] sm:$0xff] }
   0x2   :  { %v81_v1 = vld [vmem:[%s2569_s1 + $0x178] sm:$0xff]  ;;  %503 = vmatpush.msra.mxu0 %v49_v0  ;;  %v80_v4 = vld [vmem:[%s2569_s1 + $0x170] sm:$0xff]  ;;  %v79_v8 = vld [vmem:[%s2569_s1 + $0x168] sm:$0xff] }
   0x3   :  { %543 = vmatpush.msra.mxu2 %v81_v1  ;;  %v65_v3 = vld [vmem:[%s2569_s1 + $0xf8] sm:$0xff]  ;;  %v64_v7 = vld [vmem:[%s2569_s1 + $0xf0] sm:$0xff]  ;;  %v63_v10 = vld [vmem:[%s2569_s1 + $0xe8] sm:$0xff] }
   0x4   :  { %v97_v5 = vld [vmem:[%s2569_s1 + $0x1f8] sm:$0xff]  ;;  %523 = vmatpush.msra.mxu1 %v65_v3  ;;  %504 = vmatpush.msra.mxu0 %v48_v2  ;;  %v96_v9 = vld [vmem:[%s2569_s1 + $0x1f0] sm:$0xff]  ;;  %v46_v11 = vld [vmem:[%s2569_s1 + $0x60] sm:$0xff] }
   0x5   :  { %563 = vmatpush.msra.mxu3 %v97_v5  ;;  %544 = vmatpush.msra.mxu2 %v80_v4  ;;  %v78_v12 = vld [vmem:[%s2569_s1 + $0x160] sm:$0xff]  ;;  %v95_v13 = vld [vmem:[%s2569_s1 + $0x1e8] sm:$0xff]  ;;  %v45_v16 = vld [vmem:[%s2569_s1 + $0x58] sm:$0xff] }
   0x6   :  { %524 = vmatpush.msra.mxu1 %v64_v7  ;;  %505 = vmatpush.msra.mxu0 %v47_v6  ;;  %v62_v14 = vld [vmem:[%s2569_s1 + $0xe0] sm:$0xff]  ;;  %v77_v17 = vld [vmem:[%s2569_s1 + $0x158] sm:$0xff]  ;;  %v44_v20 = vld [vmem:[%s2569_s1 + $0x50] sm:$0xff] }
   0x7   :  { %564 = vmatpush.msra.mxu3 %v96_v9  ;;  %545 = vmatpush.msra.mxu2 %v79_v8  ;;  %v94_v15 = vld [vmem:[%s2569_s1 + $0x1e0] sm:$0xff]  ;;  %v61_v18 = vld [vmem:[%s2569_s1 + $0xd8] sm:$0xff]  ;;  %v76_v21 = vld [vmem:[%s2569_s1 + $0x150] sm:$0xff] }
   0x8   :  { %525 = vmatpush.msra.mxu1 %v63_v10  ;;  %506 = vmatpush.msra.mxu0 %v46_v11  ;;  %v93_v19 = vld [vmem:[%s2569_s1 + $0x1d8] sm:$0xff]  ;;  %v60_v22 = vld [vmem:[%s2569_s1 + $0xd0] sm:$0xff]  ;;  %v43_v24 = vld [vmem:[%s2569_s1 + $0x48] sm:$0xff] }
   0x9   :  { %565 = vmatpush.msra.mxu3 %v95_v13  ;;  %546 = vmatpush.msra.mxu2 %v78_v12  ;;  %v92_v23 = vld [vmem:[%s2569_s1 + $0x1d0] sm:$0xff]  ;;  %v75_v25 = vld [vmem:[%s2569_s1 + $0x148] sm:$0xff]  ;;  %v42_v28 = vld [vmem:[%s2569_s1 + $0x40] sm:$0xff] }
   0xa   :  { %526 = vmatpush.msra.mxu1 %v62_v14  ;;  %507 = vmatpush.msra.mxu0 %v45_v16  ;;  %v59_v26 = vld [vmem:[%s2569_s1 + $0xc8] sm:$0xff]  ;;  %v74_v29 = vld [vmem:[%s2569_s1 + $0x140] sm:$0xff]  ;;  %v41_v32 = vld [vmem:[%s2569_s1 + $0x38] sm:$0xff] }
   0xb   :  { %566 = vmatpush.msra.mxu3 %v94_v15  ;;  %547 = vmatpush.msra.mxu2 %v77_v17  ;;  %v91_v27 = vld [vmem:[%s2569_s1 + $0x1c8] sm:$0xff]  ;;  %v58_v30 = vld [vmem:[%s2569_s1 + $0xc0] sm:$0xff]  ;;  %v73_v33 = vld [vmem:[%s2569_s1 + $0x138] sm:$0xff] }
   0xc   :  { %527 = vmatpush.msra.mxu1 %v61_v18  ;;  %508 = vmatpush.msra.mxu0 %v44_v20  ;;  %v90_v31 = vld [vmem:[%s2569_s1 + $0x1c0] sm:$0xff]  ;;  %v57_v34 = vld [vmem:[%s2569_s1 + $0xb8] sm:$0xff]  ;;  %v40_v36 = vld [vmem:[%s2569_s1 + $0x30] sm:$0xff] }
   0xd   :  { %567 = vmatpush.msra.mxu3 %v93_v19  ;;  %548 = vmatpush.msra.mxu2 %v76_v21  ;;  %v89_v35 = vld [vmem:[%s2569_s1 + $0x1b8] sm:$0xff]  ;;  %v72_v37 = vld [vmem:[%s2569_s1 + $0x130] sm:$0xff]  ;;  %v39_v40 = vld [vmem:[%s2569_s1 + $0x28] sm:$0xff] }
   0xe   :  { %528 = vmatpush.msra.mxu1 %v60_v22  ;;  %509 = vmatpush.msra.mxu0 %v43_v24  ;;  %v56_v38 = vld [vmem:[%s2569_s1 + $0xb0] sm:$0xff]  ;;  %v71_v41 = vld [vmem:[%s2569_s1 + $0x128] sm:$0xff]  ;;  %v38_v44 = vld [vmem:[%s2569_s1 + $0x20] sm:$0xff] }
   0xf   :  { %568 = vmatpush.msra.mxu3 %v92_v23  ;;  %549 = vmatpush.msra.mxu2 %v75_v25  ;;  %v88_v39 = vld [vmem:[%s2569_s1 + $0x1b0] sm:$0xff]  ;;  %v55_v42 = vld [vmem:[%s2569_s1 + $0xa8] sm:$0xff]  ;;  %v70_v45 = vld [vmem:[%s2569_s1 + $0x120] sm:$0xff] }
  0x10   :  { %529 = vmatpush.msra.mxu1 %v59_v26  ;;  %510 = vmatpush.msra.mxu0 %v42_v28  ;;  %v87_v43 = vld [vmem:[%s2569_s1 + $0x1a8] sm:$0xff]  ;;  %v54_v46 = vld [vmem:[%s2569_s1 + $0xa0] sm:$0xff]  ;;  %v37_v48 = vld [vmem:[%s2569_s1 + $0x18] sm:$0xff] }
  0x11   :  { %569 = vmatpush.msra.mxu3 %v91_v27  ;;  %550 = vmatpush.msra.mxu2 %v74_v29  ;;  %v86_v47 = vld [vmem:[%s2569_s1 + $0x1a0] sm:$0xff]  ;;  %v69_v49 = vld [vmem:[%s2569_s1 + $0x118] sm:$0xff]  ;;  %v36_v52 = vld [vmem:[%s2569_s1 + $0x10] sm:$0xff] }
  0x12   :  { %530 = vmatpush.msra.mxu1 %v58_v30  ;;  %511 = vmatpush.msra.mxu0 %v41_v32  ;;  %v53_v50 = vld [vmem:[%s2569_s1 + $0x98] sm:$0xff]  ;;  %v68_v53 = vld [vmem:[%s2569_s1 + $0x110] sm:$0xff]  ;;  %v35_v56 = vld [vmem:[%s2569_s1 + $0x8] sm:$0xff] }
  0x13   :  { %570 = vmatpush.msra.mxu3 %v90_v31  ;;  %551 = vmatpush.msra.mxu2 %v73_v33  ;;  %v85_v51 = vld [vmem:[%s2569_s1 + $0x198] sm:$0xff]  ;;  %v52_v54 = vld [vmem:[%s2569_s1 + $0x90] sm:$0xff]  ;;  %v67_v57 = vld [vmem:[%s2569_s1 + $0x108] sm:$0xff] }
  0x14   :  { %531 = vmatpush.msra.mxu1 %v57_v34  ;;  %512 = vmatpush.msra.mxu0 %v40_v36  ;;  %v84_v55 = vld [vmem:[%s2569_s1 + $0x190] sm:$0xff]  ;;  %v51_v58 = vld [vmem:[%s2569_s1 + $0x88] sm:$0xff]  ;;  %v34_v60 = vld [vmem:[%s2569_s1] sm:$0xff] }
  0x15   :  { %571 = vmatpush.msra.mxu3 %v89_v35  ;;  %552 = vmatpush.msra.mxu2 %v72_v37  ;;  %v83_v59 = vld [vmem:[%s2569_s1 + $0x188] sm:$0xff]  ;;  %v66_v61 = vld [vmem:[%s2569_s1 + $0x100] sm:$0xff]  ;;  %v113_v62 = vld [vmem:[%s2569_s1 + $0x278] sm:$0xff] }
  0x16   :  { %532 = vmatpush.msra.mxu1 %v56_v38  ;;  %513 = vmatpush.msra.mxu0 %v39_v40  ;;  %v145_v63 = vld [vmem:[%s2569_s1 + $0x378] sm:$0xff]  ;;  %v50_v0 = vld [vmem:[%s2569_s1 + $0x80] sm:$0xff]  ;;  %v112_v2 = vld [vmem:[%s2569_s1 + $0x270] sm:$0xff] }
  0x17   :  { %572 = vmatpush.msra.mxu3 %v88_v39  ;;  %553 = vmatpush.msra.mxu2 %v71_v41  ;;  %v82_v1 = vld [vmem:[%s2569_s1 + $0x180] sm:$0xff]  ;;  %v129_v3 = vld [vmem:[%s2569_s1 + $0x2f8] sm:$0xff]  ;;  %v144_v4 = vld [vmem:[%s2569_s1 + $0x370] sm:$0xff] }
  0x18   :  { %533 = vmatpush.msra.mxu1 %v55_v42  ;;  %514 = vmatpush.msra.mxu0 %v38_v44  ;;  %v161_v5 = vld [vmem:[%s2569_s1 + $0x3f8] sm:$0xff]  ;;  %v111_v6 = vld [vmem:[%s2569_s1 + $0x268] sm:$0xff]  ;;  %v128_v7 = vld [vmem:[%s2569_s1 + $0x2f0] sm:$0xff] }
  0x19   :  { %573 = vmatpush.msra.mxu3 %v87_v43  ;;  %554 = vmatpush.msra.mxu2 %v70_v45  ;;  %v143_v8 = vld [vmem:[%s2569_s1 + $0x368] sm:$0xff]  ;;  %v160_v9 = vld [vmem:[%s2569_s1 + $0x3f0] sm:$0xff]  ;;  %v110_v10 = vld [vmem:[%s2569_s1 + $0x260] sm:$0xff] }
  0x1a   :  { %534 = vmatpush.msra.mxu1 %v54_v46  ;;  %515 = vmatpush.msra.mxu0 %v37_v48  ;;  %v127_v11 = vld [vmem:[%s2569_s1 + $0x2e8] sm:$0xff]  ;;  %v142_v12 = vld [vmem:[%s2569_s1 + $0x360] sm:$0xff]  ;;  %v109_v14 = vld [vmem:[%s2569_s1 + $0x258] sm:$0xff] }
  0x1b   :  { %574 = vmatpush.msra.mxu3 %v86_v47  ;;  %555 = vmatpush.msra.mxu2 %v69_v49  ;;  %v159_v13 = vld [vmem:[%s2569_s1 + $0x3e8] sm:$0xff]  ;;  %v126_v15 = vld [vmem:[%s2569_s1 + $0x2e0] sm:$0xff]  ;;  %v141_v16 = vld [vmem:[%s2569_s1 + $0x358] sm:$0xff] }
  0x1c   :  { %535 = vmatpush.msra.mxu1 %v53_v50  ;;  %516 = vmatpush.msra.mxu0 %v36_v52  ;;  %v158_v17 = vld [vmem:[%s2569_s1 + $0x3e0] sm:$0xff]  ;;  %v108_v18 = vld [vmem:[%s2569_s1 + $0x250] sm:$0xff]  ;;  %v125_v19 = vld [vmem:[%s2569_s1 + $0x2d8] sm:$0xff] }
  0x1d   :  { %575 = vmatpush.msra.mxu3 %v85_v51  ;;  %556 = vmatpush.msra.mxu2 %v68_v53  ;;  %v140_v20 = vld [vmem:[%s2569_s1 + $0x350] sm:$0xff]  ;;  %v157_v21 = vld [vmem:[%s2569_s1 + $0x3d8] sm:$0xff]  ;;  %v27_v22 = vld [vmem:[%s2568_s0] sm:$0xff] }
  0x1e   :  { %536 = vmatpush.msra.mxu1 %v52_v54  ;;  %517 = vmatpush.msra.mxu0 %v35_v56  ;;  %v107_v23 = vld [vmem:[%s2569_s1 + $0x248] sm:$0xff]  ;;  %v124_v24 = vld [vmem:[%s2569_s1 + $0x2d0] sm:$0xff]  ;;  %445 = vst [vmem:[#allocation1] ss:$4 sm:$0xff] %v27_v22  ;;  %v106_v27 = vld [vmem:[%s2569_s1 + $0x240] sm:$0xff] }
  0x1f   :  { %576 = vmatpush.msra.mxu3 %v84_v55  ;;  %557 = vmatpush.msra.mxu2 %v67_v57  ;;  %v139_v25 = vld [vmem:[%s2569_s1 + $0x348] sm:$0xff]  ;;  %v156_v26 = vld [vmem:[%s2569_s1 + $0x3d0] sm:$0xff]  ;;  %v138_v29 = vld [vmem:[%s2569_s1 + $0x340] sm:$0xff] }
  0x20   :  { %537 = vmatpush.msra.mxu1 %v51_v58  ;;  %518 = vmatpush.msra.mxu0 %v34_v60  ;;  %v123_v28 = vld [vmem:[%s2569_s1 + $0x2c8] sm:$0xff]  ;;  %v105_v31 = vld [vmem:[%s2569_s1 + $0x238] sm:$0xff]  ;;  %v122_v32 = vld [vmem:[%s2569_s1 + $0x2c0] sm:$0xff] }
  0x21   :  { %577 = vmatpush.msra.mxu3 %v83_v59  ;;  %558 = vmatpush.msra.mxu2 %v66_v61  ;;  %v155_v30 = vld [vmem:[%s2569_s1 + $0x3c8] sm:$0xff]  ;;  %v137_v33 = vld [vmem:[%s2569_s1 + $0x338] sm:$0xff]  ;;  %v154_v34 = vld [vmem:[%s2569_s1 + $0x3c0] sm:$0xff] }
  0x22   :  { %583 = vmatpush.msrb.mxu0 %v113_v62  ;;  %538 = vmatpush.msra.mxu1 %v50_v0  ;;  %v104_v35 = vld [vmem:[%s2569_s1 + $0x230] sm:$0xff]  ;;  %v121_v36 = vld [vmem:[%s2569_s1 + $0x2b8] sm:$0xff]  ;;  %v28_v39 = vld [vmem:[%s2568_s0 + $0x8] sm:$0xff] }
  0x23   :  { %623 = vmatpush.msrb.mxu2 %v145_v63  ;;  %578 = vmatpush.msra.mxu3 %v82_v1  ;;  %v136_v37 = vld [vmem:[%s2569_s1 + $0x330] sm:$0xff]  ;;  %v153_v38 = vld [vmem:[%s2569_s1 + $0x3b8] sm:$0xff]  ;;  %v103_v40 = vld [vmem:[%s2569_s1 + $0x228] sm:$0xff]  ;;  %447 = vst [vmem:[#allocation1 + $0x20] ss:$4 sm:$0xff] %v28_v39 }
  0x24   :  { %584 = vmatpush.msrb.mxu0 %v112_v2  ;;  %603 = vmatpush.msrb.mxu1 %v129_v3  ;;  %v120_v41 = vld [vmem:[%s2569_s1 + $0x2b0] sm:$0xff]  ;;  %v135_v43 = vld [vmem:[%s2569_s1 + $0x328] sm:$0xff]  ;;  %v102_v49 = vld [vmem:[%s2569_s1 + $0x220] sm:$0xff] }
  0x25   :  { %624 = vmatpush.msrb.mxu2 %v144_v4  ;;  %643 = vmatpush.msrb.mxu3 %v161_v5  ;;  %v29_v42 = vld [vmem:[%s2568_s0 + $0x10] sm:$0xff]  ;;  %v1518_v45 = vld.sshfl [vmem:[#allocation1] sm:$0xff pattern:$0x73625140]  ;;  %v119_v50 = vld [vmem:[%s2569_s1 + $0x2a8] sm:$0xff] }
  0x26   :  { %585 = vmatpush.msrb.mxu0 %v111_v6  ;;  %604 = vmatpush.msrb.mxu1 %v128_v7  ;;  %v450_v44 = vld.sshfl [vmem:[#allocation1 + $0x10] sm:$0xff pattern:$0x73625140]  ;;  %v1520_v46 = vld.sshfl [vmem:[#allocation1 + $0x18] sm:$0xff pattern:$0x73625140] }
  0x27   :  { %625 = vmatpush.msrb.mxu2 %v143_v8  ;;  %644 = vmatpush.msrb.mxu3 %v160_v9  ;;  %v1522_v47 = vld.sshfl [vmem:[#allocation1 + $0x8] sm:$0xff pattern:$0x73625140]  ;;  %v152_v48 = vld [vmem:[%s2569_s1 + $0x3b0] sm:$0xff]  ;;  %v134_v51 = vld [vmem:[%s2569_s1 + $0x320] sm:$0xff] }
  0x28   :  { %586 = vmatpush.msrb.mxu0 %v110_v10  ;;  %605 = vmatpush.msrb.mxu1 %v127_v11  ;;  %456 = vst [vmem:[#allocation1] ss:$4 sm:$0xff] %v29_v42  ;;  %v151_v52 = vld [vmem:[%s2569_s1 + $0x3a8] sm:$0xff]  ;;  %v101_v53 = vld [vmem:[%s2569_s1 + $0x218] sm:$0xff]  ;;  %v118_v54 = vld [vmem:[%s2569_s1 + $0x2a0] sm:$0xff] }
  0x29   :  { %626 = vmatpush.msrb.mxu2 %v142_v12  ;;  %645 = vmatpush.msrb.mxu3 %v159_v13  ;;  %v133_v55 = vld [vmem:[%s2569_s1 + $0x318] sm:$0xff]  ;;  %v150_v56 = vld [vmem:[%s2569_s1 + $0x3a0] sm:$0xff]  ;;  %v100_v57 = vld [vmem:[%s2569_s1 + $0x210] sm:$0xff] }
  0x2a   :  { %587 = vmatpush.msrb.mxu0 %v109_v14  ;;  %606 = vmatpush.msrb.mxu1 %v126_v15  ;;  %v117_v58 = vld [vmem:[%s2569_s1 + $0x298] sm:$0xff]  ;;  %v1560_v60 = vld.sshfl [vmem:[#allocation1 + $0x30] sm:$0xff pattern:$0x73625140]  ;;  %v99_v2 = vld [vmem:[%s2569_s1 + $0x208] sm:$0xff] }
  0x2b   :  { %627 = vmatpush.msrb.mxu2 %v141_v16  ;;  %646 = vmatpush.msrb.mxu3 %v158_v17  ;;  %v30_v59 = vld [vmem:[%s2568_s0 + $0x18] sm:$0xff]  ;;  %v1562_v61 = vld.sshfl [vmem:[#allocation1 + $0x20] sm:$0xff pattern:$0x73625140]  ;;  %v132_v0 = vld [vmem:[%s2569_s1 + $0x310] sm:$0xff] }
  0x2c   :  { %588 = vmatpush.msrb.mxu0 %v108_v18  ;;  %607 = vmatpush.msrb.mxu1 %v125_v19  ;;  %v1564_v62 = vld.sshfl [vmem:[#allocation1 + $0x38] sm:$0xff pattern:$0x73625140]  ;;  %v1566_v63 = vld.sshfl [vmem:[#allocation1 + $0x28] sm:$0xff pattern:$0x73625140] }
  0x2d   :  { %628 = vmatpush.msrb.mxu2 %v140_v20  ;;  %647 = vmatpush.msrb.mxu3 %v157_v21  ;;  %v149_v1 = vld [vmem:[%s2569_s1 + $0x398] sm:$0xff]  ;;  %457 = vst [vmem:[#allocation1 + $0x20] ss:$4 sm:$0xff] %v30_v59  ;;  %v116_v3 = vld [vmem:[%s2569_s1 + $0x290] sm:$0xff]  ;;  %v131_v4 = vld [vmem:[%s2569_s1 + $0x308] sm:$0xff] }
  0x2e   :  { %589 = vmatpush.msrb.mxu0 %v107_v23  ;;  %608 = vmatpush.msrb.mxu1 %v124_v24  ;;  %v148_v5 = vld [vmem:[%s2569_s1 + $0x390] sm:$0xff]  ;;  %v98_v6 = vld [vmem:[%s2569_s1 + $0x200] sm:$0xff]  ;;  %v115_v7 = vld [vmem:[%s2569_s1 + $0x288] sm:$0xff] }
  0x2f   :  { %629 = vmatpush.msrb.mxu2 %v139_v25  ;;  %648 = vmatpush.msrb.mxu3 %v156_v26  ;;  %v130_v8 = vld [vmem:[%s2569_s1 + $0x300] sm:$0xff]  ;;  %v147_v9 = vld [vmem:[%s2569_s1 + $0x388] sm:$0xff]  ;;  %v177_v10 = vld [vmem:[%s2569_s1 + $0x478] sm:$0xff] }
  0x30   :  { %590 = vmatpush.msrb.mxu0 %v106_v27  ;;  %609 = vmatpush.msrb.mxu1 %v123_v28  ;;  %v209_v11 = vld [vmem:[%s2569_s1 + $0x578] sm:$0xff]  ;;  %v114_v12 = vld [vmem:[%s2569_s1 + $0x280] sm:$0xff]  ;;  %v176_v14 = vld [vmem:[%s2569_s1 + $0x470] sm:$0xff] }
  0x31   :  { %630 = vmatpush.msrb.mxu2 %v138_v29  ;;  %649 = vmatpush.msrb.mxu3 %v155_v30  ;;  %v146_v13 = vld [vmem:[%s2569_s1 + $0x380] sm:$0xff]  ;;  %v193_v15 = vld [vmem:[%s2569_s1 + $0x4f8] sm:$0xff]  ;;  %v208_v16 = vld [vmem:[%s2569_s1 + $0x570] sm:$0xff] }
  0x32   :  { %591 = vmatpush.msrb.mxu0 %v105_v31  ;;  %610 = vmatpush.msrb.mxu1 %v122_v32  ;;  %v225_v17 = vld [vmem:[%s2569_s1 + $0x5f8] sm:$0xff]  ;;  %v175_v18 = vld [vmem:[%s2569_s1 + $0x468] sm:$0xff]  ;;  %v192_v19 = vld [vmem:[%s2569_s1 + $0x4f0] sm:$0xff] }
  0x33   :  { %631 = vmatpush.msrb.mxu2 %v137_v33  ;;  %650 = vmatpush.msrb.mxu3 %v154_v34  ;;  %v207_v20 = vld [vmem:[%s2569_s1 + $0x568] sm:$0xff]  ;;  %v224_v21 = vld [vmem:[%s2569_s1 + $0x5f0] sm:$0xff]  ;;  %v174_v22 = vld [vmem:[%s2569_s1 + $0x460] sm:$0xff] }
  0x34   :  { %592 = vmatpush.msrb.mxu0 %v104_v35  ;;  %611 = vmatpush.msrb.mxu1 %v121_v36  ;;  %v191_v23 = vld [vmem:[%s2569_s1 + $0x4e8] sm:$0xff]  ;;  %v206_v24 = vld [vmem:[%s2569_s1 + $0x560] sm:$0xff]  ;;  %v1648_v26 = vld.sshfl [vmem:[#allocation1 + $0x10] sm:$0xff pattern:$0x73625140] }
  0x35   :  { %632 = vmatpush.msrb.mxu2 %v136_v37  ;;  %651 = vmatpush.msrb.mxu3 %v153_v38  ;;  %v1646_v25 = vld.sshfl [vmem:[#allocation1] sm:$0xff pattern:$0x73625140]  ;;  %v1650_v27 = vld.sshfl [vmem:[#allocation1 + $0x8] sm:$0xff pattern:$0x73625140] }
  0x36   :  { %593 = vmatpush.msrb.mxu0 %v103_v40  ;;  %612 = vmatpush.msrb.mxu1 %v120_v41  ;;  %v223_v28 = vld [vmem:[%s2569_s1 + $0x5e8] sm:$0xff]  ;;  %v31_v29 = vld [vmem:[%s2568_s0 + $0x20] sm:$0xff]  ;;  %v1658_v30 = vld.sshfl [vmem:[#allocation1 + $0x18] sm:$0xff pattern:$0x73625140] }
  0x37   :  { %633 = vmatpush.msrb.mxu2 %v135_v43  ;;  %652 = vmatpush.msrb.mxu3 %v152_v48  ;;  %v173_v31 = vld [vmem:[%s2569_s1 + $0x458] sm:$0xff]  ;;  %v190_v32 = vld [vmem:[%s2569_s1 + $0x4e0] sm:$0xff]  ;;  %466 = vst [vmem:[#allocation1] ss:$4 sm:$0xff] %v31_v29  ;;  %v172_v35 = vld [vmem:[%s2569_s1 + $0x450] sm:$0xff] }
  0x38   :  { %594 = vmatpush.msrb.mxu0 %v102_v49  ;;  %613 = vmatpush.msrb.mxu1 %v119_v50  ;;  %v205_v33 = vld [vmem:[%s2569_s1 + $0x558] sm:$0xff]  ;;  %v222_v34 = vld [vmem:[%s2569_s1 + $0x5e0] sm:$0xff] }
  0x39   :  { %634 = vmatpush.msrb.mxu2 %v134_v51  ;;  %653 = vmatpush.msrb.mxu3 %v151_v52  ;;  %v189_v36 = vld [vmem:[%s2569_s1 + $0x4d8] sm:$0xff] }
  0x3a   :  { %595 = vmatpush.msrb.mxu0 %v101_v53  ;;  %614 = vmatpush.msrb.mxu1 %v118_v54 }
  0x3b   :  { %635 = vmatpush.msrb.mxu2 %v133_v55  ;;  %654 = vmatpush.msrb.mxu3 %v150_v56 }
  0x3c   :  { %596 = vmatpush.msrb.mxu0 %v100_v57  ;;  %615 = vmatpush.msrb.mxu1 %v117_v58 }
  0x3d   :  { %636 = vmatpush.msrb.mxu2 %v132_v0  ;;  %655 = vmatpush.msrb.mxu3 %v149_v1 }
  0x3e   :  { %597 = vmatpush.msrb.mxu0 %v99_v2  ;;  %616 = vmatpush.msrb.mxu1 %v116_v3 }
  0x3f   :  { %637 = vmatpush.msrb.mxu2 %v131_v4  ;;  %656 = vmatpush.msrb.mxu3 %v148_v5 }
  0x40   :  { %559 = vmatmul.f32.vlgmr.msra.gmra.mxu2 %v450_v44  ;;  %598 = vmatpush.msrb.mxu0 %v98_v6 }
  0x41   :  { %617 = vmatpush.msrb.mxu1 %v115_v7  ;;  %638 = vmatpush.msrb.mxu2 %v130_v8 }
  0x42   :  { %657 = vmatpush.msrb.mxu3 %v147_v9  ;;  %519 = vmatmul.f32.vlgmr.msra.gmra.mxu0 %v1518_v45 }
  0x43   :  { %579 = vmatmul.f32.vlgmr.msra.gmra.mxu3 %v1520_v46  ;;  %663 = vmatpush.msra.mxu0 %v177_v10 }
  0x44   :  { %703 = vmatpush.msra.mxu2 %v209_v11  ;;  %618 = vmatpush.msrb.mxu1 %v114_v12 }
  0x45   :  { %658 = vmatpush.msrb.mxu3 %v146_v13  ;;  %539 = vmatmul.f32.vlgmr.msra.gmra.mxu1 %v1522_v47 }
  0x46   :  { %664 = vmatpush.msra.mxu0 %v176_v14  ;;  %683 = vmatpush.msra.mxu1 %v193_v15 }
  0x47   :  { %704 = vmatpush.msra.mxu2 %v208_v16  ;;  %723 = vmatpush.msra.mxu3 %v225_v17 }
  0x48   :  { %665 = vmatpush.msra.mxu0 %v175_v18  ;;  %684 = vmatpush.msra.mxu1 %v192_v19 }
  0x49   :  { %705 = vmatpush.msra.mxu2 %v207_v20  ;;  %724 = vmatpush.msra.mxu3 %v224_v21 }
  0x4a   :  { %639 = vmatmul.f32.vlgmr.msrb.gmra.mxu2 %v1560_v60  ;;  %666 = vmatpush.msra.mxu0 %v174_v22 }
  0x4b   :  { %685 = vmatpush.msra.mxu1 %v191_v23  ;;  %706 = vmatpush.msra.mxu2 %v206_v24 }
  0x4c   :  { %725 = vmatpush.msra.mxu3 %v223_v28  ;;  %599 = vmatmul.f32.vlgmr.msrb.gmra.mxu0 %v1562_v61 }
  0x4d   :  { %659 = vmatmul.f32.vlgmr.msrb.gmra.mxu3 %v1564_v62  ;;  %667 = vmatpush.msra.mxu0 %v173_v31 }
  0x4e   :  { %12 = vsyncpa [#allocation3], 0  ;;  %686 = vmatpush.msra.mxu1 %v190_v32  ;;  %707 = vmatpush.msra.mxu2 %v205_v33  ;;  %v204_v37 = vld [vmem:[%s2569_s1 + $0x550] sm:$0xff]  ;;  %v221_v38 = vld [vmem:[%s2569_s1 + $0x5d8] sm:$0xff]  ;;  %vm1089_vm1 = vcmask 1041408   ;;  %s1110_s22 = sshll.u32 %s2575_s7, 4  ;;  %s1111_s22 = int_to_ptr.hbm [resolvable:$true] %s1110_s22 }
  0x4f   :  { %726 = vmatpush.msra.mxu3 %v222_v34  ;;  %619 = vmatmul.f32.vlgmr.msrb.gmra.mxu1 %v1566_v63  ;;  %v171_v39 = vld [vmem:[%s2569_s1 + $0x448] sm:$0xff]  ;;  %v188_v40 = vld [vmem:[%s2569_s1 + $0x4d0] sm:$0xff]  ;;  %v170_v43 = vld [vmem:[%s2569_s1 + $0x440] sm:$0xff] }
  0x50   :  { %668 = vmatpush.msra.mxu0 %v172_v35  ;;  %687 = vmatpush.msra.mxu1 %v189_v36  ;;  %v203_v41 = vld [vmem:[%s2569_s1 + $0x548] sm:$0xff]  ;;  %v220_v42 = vld [vmem:[%s2569_s1 + $0x5d0] sm:$0xff]  ;;  %v202_v45 = vld [vmem:[%s2569_s1 + $0x540] sm:$0xff] }
  0x51   :  { %708 = vmatpush.msra.mxu2 %v204_v37  ;;  %727 = vmatpush.msra.mxu3 %v221_v38  ;;  %v187_v44 = vld [vmem:[%s2569_s1 + $0x4c8] sm:$0xff]  ;;  %v169_v47 = vld [vmem:[%s2569_s1 + $0x438] sm:$0xff]  ;;  %v186_v48 = vld [vmem:[%s2569_s1 + $0x4c0] sm:$0xff] }
  0x52   :  { %669 = vmatpush.msra.mxu0 %v171_v39  ;;  %688 = vmatpush.msra.mxu1 %v188_v40  ;;  %v219_v46 = vld [vmem:[%s2569_s1 + $0x5c8] sm:$0xff]  ;;  %v201_v49 = vld [vmem:[%s2569_s1 + $0x538] sm:$0xff]  ;;  %v218_v50 = vld [vmem:[%s2569_s1 + $0x5c0] sm:$0xff] }
  0x53   :  { %709 = vmatpush.msra.mxu2 %v203_v41  ;;  %728 = vmatpush.msra.mxu3 %v220_v42  ;;  %v168_v51 = vld [vmem:[%s2569_s1 + $0x430] sm:$0xff]  ;;  %v185_v52 = vld [vmem:[%s2569_s1 + $0x4b8] sm:$0xff]  ;;  %v167_v55 = vld [vmem:[%s2569_s1 + $0x428] sm:$0xff] }
  0x54   :  { %670 = vmatpush.msra.mxu0 %v170_v43  ;;  %689 = vmatpush.msra.mxu1 %v187_v44  ;;  %v200_v53 = vld [vmem:[%s2569_s1 + $0x530] sm:$0xff]  ;;  %v217_v54 = vld [vmem:[%s2569_s1 + $0x5b8] sm:$0xff]  ;;  %v199_v57 = vld [vmem:[%s2569_s1 + $0x528] sm:$0xff] }
  0x55   :  { %710 = vmatpush.msra.mxu2 %v202_v45  ;;  %729 = vmatpush.msra.mxu3 %v219_v46  ;;  %v184_v56 = vld [vmem:[%s2569_s1 + $0x4b0] sm:$0xff]  ;;  %v166_v59 = vld [vmem:[%s2569_s1 + $0x420] sm:$0xff]  ;;  %v183_v60 = vld [vmem:[%s2569_s1 + $0x4a8] sm:$0xff] }
  0x56   :  { %671 = vmatpush.msra.mxu0 %v169_v47  ;;  %690 = vmatpush.msra.mxu1 %v186_v48  ;;  %v216_v58 = vld [vmem:[%s2569_s1 + $0x5b0] sm:$0xff]  ;;  %v198_v61 = vld [vmem:[%s2569_s1 + $0x520] sm:$0xff]  ;;  %v215_v62 = vld [vmem:[%s2569_s1 + $0x5a8] sm:$0xff] }
  0x57   :  { %711 = vmatpush.msra.mxu2 %v201_v49  ;;  %730 = vmatpush.msra.mxu3 %v218_v50  ;;  %v165_v63 = vld [vmem:[%s2569_s1 + $0x418] sm:$0xff]  ;;  %v182_v0 = vld [vmem:[%s2569_s1 + $0x4a0] sm:$0xff]  ;;  %v164_v3 = vld [vmem:[%s2569_s1 + $0x410] sm:$0xff] }
  0x58   :  { %672 = vmatpush.msra.mxu0 %v168_v51  ;;  %691 = vmatpush.msra.mxu1 %v185_v52  ;;  %v197_v1 = vld [vmem:[%s2569_s1 + $0x518] sm:$0xff]  ;;  %v214_v2 = vld [vmem:[%s2569_s1 + $0x5a0] sm:$0xff]  ;;  %v196_v5 = vld [vmem:[%s2569_s1 + $0x510] sm:$0xff] }
  0x59   :  { %712 = vmatpush.msra.mxu2 %v200_v53  ;;  %731 = vmatpush.msra.mxu3 %v217_v54  ;;  %v181_v4 = vld [vmem:[%s2569_s1 + $0x498] sm:$0xff]  ;;  %v163_v7 = vld [vmem:[%s2569_s1 + $0x408] sm:$0xff]  ;;  %v180_v8 = vld [vmem:[%s2569_s1 + $0x490] sm:$0xff] }
  0x5a   :  { %673 = vmatpush.msra.mxu0 %v167_v55  ;;  %692 = vmatpush.msra.mxu1 %v184_v56  ;;  %v213_v6 = vld [vmem:[%s2569_s1 + $0x598] sm:$0xff]  ;;  %v195_v9 = vld [vmem:[%s2569_s1 + $0x508] sm:$0xff]  ;;  %v212_v10 = vld [vmem:[%s2569_s1 + $0x590] sm:$0xff] }
  0x5b   :  { %713 = vmatpush.msra.mxu2 %v199_v57  ;;  %732 = vmatpush.msra.mxu3 %v216_v58  ;;  %v162_v11 = vld [vmem:[%s2569_s1 + $0x400] sm:$0xff]  ;;  %v179_v12 = vld [vmem:[%s2569_s1 + $0x488] sm:$0xff]  ;;  %v241_v15 = vld [vmem:[%s2569_s1 + $0x678] sm:$0xff] }
  0x5c   :  { %674 = vmatpush.msra.mxu0 %v166_v59  ;;  %693 = vmatpush.msra.mxu1 %v183_v60  ;;  %v194_v13 = vld [vmem:[%s2569_s1 + $0x500] sm:$0xff]  ;;  %v211_v14 = vld [vmem:[%s2569_s1 + $0x588] sm:$0xff]  ;;  %v273_v16 = vld [vmem:[%s2569_s1 + $0x778] sm:$0xff] }
  0x5d   :  { %714 = vmatpush.msra.mxu2 %v198_v61  ;;  %733 = vmatpush.msra.mxu3 %v215_v62  ;;  %v178_v17 = vld [vmem:[%s2569_s1 + $0x480] sm:$0xff]  ;;  %v240_v19 = vld [vmem:[%s2569_s1 + $0x670] sm:$0xff]  ;;  %v257_v20 = vld [vmem:[%s2569_s1 + $0x6f8] sm:$0xff] }
  0x5e   :  { %675 = vmatpush.msra.mxu0 %v165_v63  ;;  %694 = vmatpush.msra.mxu1 %v182_v0  ;;  %v210_v18 = vld [vmem:[%s2569_s1 + $0x580] sm:$0xff]  ;;  %v272_v21 = vld [vmem:[%s2569_s1 + $0x770] sm:$0xff]  ;;  %v289_v22 = vld [vmem:[%s2569_s1 + $0x7f8] sm:$0xff] }
  0x5f   :  { %715 = vmatpush.msra.mxu2 %v197_v1  ;;  %734 = vmatpush.msra.mxu3 %v214_v2  ;;  %v239_v23 = vld [vmem:[%s2569_s1 + $0x668] sm:$0xff]  ;;  %v256_v24 = vld [vmem:[%s2569_s1 + $0x6f0] sm:$0xff]  ;;  %v238_v28 = vld [vmem:[%s2569_s1 + $0x660] sm:$0xff] }
  0x60   :  { %676 = vmatpush.msra.mxu0 %v164_v3  ;;  %695 = vmatpush.msra.mxu1 %v181_v4  ;;  %v1851_v29 = vld.sshfl [vmem:[#allocation1 + $0x20] sm:$0xff pattern:$0x73625140]  ;;  %v1853_v31 = vld.sshfl [vmem:[#allocation1 + $0x30] sm:$0xff pattern:$0x73625140] }
  0x61   :  { %716 = vmatpush.msra.mxu2 %v196_v5  ;;  %735 = vmatpush.msra.mxu3 %v213_v6  ;;  %v1855_v32 = vld.sshfl [vmem:[#allocation1 + $0x28] sm:$0xff pattern:$0x73625140]  ;;  %v1863_v33 = vld.sshfl [vmem:[#allocation1 + $0x38] sm:$0xff pattern:$0x73625140] }
  0x62   :  { %677 = vmatpush.msra.mxu0 %v163_v7  ;;  %696 = vmatpush.msra.mxu1 %v180_v8  ;;  %v270_v34 = vld [vmem:[%s2569_s1 + $0x760] sm:$0xff]  ;;  %v287_v35 = vld [vmem:[%s2569_s1 + $0x7e8] sm:$0xff]  ;;  %v237_v36 = vld [vmem:[%s2569_s1 + $0x658] sm:$0xff] }
  0x63   :  { %717 = vmatpush.msra.mxu2 %v195_v9  ;;  %736 = vmatpush.msra.mxu3 %v212_v10  ;;  %v254_v37 = vld [vmem:[%s2569_s1 + $0x6e0] sm:$0xff]  ;;  %v269_v38 = vld [vmem:[%s2569_s1 + $0x758] sm:$0xff]  ;;  %v236_v40 = vld [vmem:[%s2569_s1 + $0x650] sm:$0xff] }
  0x64   :  { %678 = vmatpush.msra.mxu0 %v162_v11  ;;  %697 = vmatpush.msra.mxu1 %v179_v12  ;;  %v286_v39 = vld [vmem:[%s2569_s1 + $0x7e0] sm:$0xff]  ;;  %v253_v41 = vld [vmem:[%s2569_s1 + $0x6d8] sm:$0xff]  ;;  %v268_v42 = vld [vmem:[%s2569_s1 + $0x750] sm:$0xff] }
  0x65   :  { %718 = vmatpush.msra.mxu2 %v194_v13  ;;  %737 = vmatpush.msra.mxu3 %v211_v14  ;;  %v285_v43 = vld [vmem:[%s2569_s1 + $0x7d8] sm:$0xff]  ;;  %v235_v44 = vld [vmem:[%s2569_s1 + $0x648] sm:$0xff]  ;;  %v252_v45 = vld [vmem:[%s2569_s1 + $0x6d0] sm:$0xff] }
  0x66   :  { %679 = vmatmul.f32.vlgmr.msra.gmra.mxu0 %v1646_v25  ;;  %719 = vmatmul.f32.vlgmr.msra.gmra.mxu2 %v1648_v26  ;;  %v271_v25 = vld [vmem:[%s2569_s1 + $0x768] sm:$0xff]  ;;  %v288_v26 = vld [vmem:[%s2569_s1 + $0x7f0] sm:$0xff]  ;;  %v234_v48 = vld [vmem:[%s2569_s1 + $0x640] sm:$0xff] }
  0x67   :  { %743 = vmatpush.msrb.mxu0 %v241_v15  ;;  %783 = vmatpush.msrb.mxu2 %v273_v16  ;;  %v267_v46 = vld [vmem:[%s2569_s1 + $0x748] sm:$0xff]  ;;  %v284_v47 = vld [vmem:[%s2569_s1 + $0x7d0] sm:$0xff]  ;;  %v266_v50 = vld [vmem:[%s2569_s1 + $0x740] sm:$0xff] }
  0x68   :  { %698 = vmatpush.msra.mxu1 %v178_v17  ;;  %738 = vmatpush.msra.mxu3 %v210_v18  ;;  %v251_v49 = vld [vmem:[%s2569_s1 + $0x6c8] sm:$0xff]  ;;  %v233_v52 = vld [vmem:[%s2569_s1 + $0x638] sm:$0xff]  ;;  %v250_v53 = vld [vmem:[%s2569_s1 + $0x6c0] sm:$0xff] }
  0x69   :  { %699 = vmatmul.f32.vlgmr.msra.gmra.mxu1 %v1650_v27  ;;  %739 = vmatmul.f32.vlgmr.msra.gmra.mxu3 %v1658_v30  ;;  %v255_v27 = vld [vmem:[%s2569_s1 + $0x6e8] sm:$0xff]  ;;  %v265_v54 = vld [vmem:[%s2569_s1 + $0x738] sm:$0xff]  ;;  %v282_v55 = vld [vmem:[%s2569_s1 + $0x7c0] sm:$0xff] }
  0x6a   :  { %744 = vmatpush.msrb.mxu0 %v240_v19  ;;  %763 = vmatpush.msrb.mxu1 %v257_v20  ;;  %v32_v30 = vld [vmem:[%s2568_s0 + $0x28] sm:$0xff]  ;;  %v232_v56 = vld [vmem:[%s2569_s1 + $0x630] sm:$0xff]  ;;  %v249_v57 = vld [vmem:[%s2569_s1 + $0x6b8] sm:$0xff] }
  0x6b   :  { %784 = vmatpush.msrb.mxu2 %v272_v21  ;;  %803 = vmatpush.msrb.mxu3 %v289_v22  ;;  %467 = vst [vmem:[#allocation1 + $0x20] ss:$4 sm:$0xff] %v32_v30  ;;  %v283_v51 = vld [vmem:[%s2569_s1 + $0x7c8] sm:$0xff]  ;;  %v264_v58 = vld [vmem:[%s2569_s1 + $0x730] sm:$0xff]  ;;  %v281_v59 = vld [vmem:[%s2569_s1 + $0x7b8] sm:$0xff] }
  0x6c   :  { %745 = vmatpush.msrb.mxu0 %v239_v23  ;;  %764 = vmatpush.msrb.mxu1 %v256_v24  ;;  %v231_v60 = vld [vmem:[%s2569_s1 + $0x628] sm:$0xff]  ;;  %v248_v61 = vld [vmem:[%s2569_s1 + $0x6b0] sm:$0xff]  ;;  %v230_v0 = vld [vmem:[%s2569_s1 + $0x620] sm:$0xff] }
  0x6d   :  { %785 = vmatpush.msrb.mxu2 %v271_v25  ;;  %804 = vmatpush.msrb.mxu3 %v288_v26  ;;  %v263_v62 = vld [vmem:[%s2569_s1 + $0x728] sm:$0xff]  ;;  %v280_v63 = vld [vmem:[%s2569_s1 + $0x7b0] sm:$0xff]  ;;  %v262_v2 = vld [vmem:[%s2569_s1 + $0x720] sm:$0xff] }
  0x6e   :  { %746 = vmatpush.msrb.mxu0 %v238_v28  ;;  %765 = vmatpush.msrb.mxu1 %v255_v27  ;;  %v247_v1 = vld [vmem:[%s2569_s1 + $0x6a8] sm:$0xff]  ;;  %v229_v4 = vld [vmem:[%s2569_s1 + $0x618] sm:$0xff]  ;;  %v246_v5 = vld [vmem:[%s2569_s1 + $0x6a0] sm:$0xff] }
  0x6f   :  { %786 = vmatpush.msrb.mxu2 %v270_v34  ;;  %805 = vmatpush.msrb.mxu3 %v287_v35  ;;  %v279_v3 = vld [vmem:[%s2569_s1 + $0x7a8] sm:$0xff]  ;;  %v261_v6 = vld [vmem:[%s2569_s1 + $0x718] sm:$0xff]  ;;  %v278_v7 = vld [vmem:[%s2569_s1 + $0x7a0] sm:$0xff] }
  0x70   :  { %747 = vmatpush.msrb.mxu0 %v237_v36  ;;  %766 = vmatpush.msrb.mxu1 %v254_v37  ;;  %v228_v8 = vld [vmem:[%s2569_s1 + $0x610] sm:$0xff]  ;;  %v245_v9 = vld [vmem:[%s2569_s1 + $0x698] sm:$0xff]  ;;  %v227_v12 = vld [vmem:[%s2569_s1 + $0x608] sm:$0xff] }
  0x71   :  { %787 = vmatpush.msrb.mxu2 %v269_v38  ;;  %806 = vmatpush.msrb.mxu3 %v286_v39  ;;  %v260_v10 = vld [vmem:[%s2569_s1 + $0x710] sm:$0xff]  ;;  %v277_v11 = vld [vmem:[%s2569_s1 + $0x798] sm:$0xff]  ;;  %v259_v14 = vld [vmem:[%s2569_s1 + $0x708] sm:$0xff] }
  0x72   :  { %748 = vmatpush.msrb.mxu0 %v236_v40  ;;  %767 = vmatpush.msrb.mxu1 %v253_v41  ;;  %v244_v13 = vld [vmem:[%s2569_s1 + $0x690] sm:$0xff]  ;;  %v226_v16 = vld [vmem:[%s2569_s1 + $0x600] sm:$0xff]  ;;  %v243_v17 = vld [vmem:[%s2569_s1 + $0x688] sm:$0xff] }
  0x73   :  { %788 = vmatpush.msrb.mxu2 %v268_v42  ;;  %807 = vmatpush.msrb.mxu3 %v285_v43  ;;  %v276_v15 = vld [vmem:[%s2569_s1 + $0x790] sm:$0xff]  ;;  %v258_v18 = vld [vmem:[%s2569_s1 + $0x700] sm:$0xff]  ;;  %v275_v19 = vld [vmem:[%s2569_s1 + $0x788] sm:$0xff] }
  0x74   :  { %749 = vmatpush.msrb.mxu0 %v235_v44  ;;  %768 = vmatpush.msrb.mxu1 %v252_v45  ;;  %v305_v20 = vld [vmem:[%s2569_s1 + $0x878] sm:$0xff]  ;;  %v242_v22 = vld [vmem:[%s2569_s1 + $0x680] sm:$0xff]  ;;  %v304_v24 = vld [vmem:[%s2569_s1 + $0x870] sm:$0xff] }
  0x75   :  { %789 = vmatpush.msrb.mxu2 %v267_v46  ;;  %808 = vmatpush.msrb.mxu3 %v284_v47  ;;  %v337_v21 = vld [vmem:[%s2569_s1 + $0x978] sm:$0xff]  ;;  %v274_v23 = vld [vmem:[%s2569_s1 + $0x780] sm:$0xff]  ;;  %v336_v26 = vld [vmem:[%s2569_s1 + $0x970] sm:$0xff] }
  0x76   :  { %750 = vmatpush.msrb.mxu0 %v234_v48  ;;  %769 = vmatpush.msrb.mxu1 %v251_v49  ;;  %v321_v25 = vld [vmem:[%s2569_s1 + $0x8f8] sm:$0xff]  ;;  %v335_v27 = vld [vmem:[%s2569_s1 + $0x968] sm:$0xff]  ;;  %v302_v30 = vld [vmem:[%s2569_s1 + $0x860] sm:$0xff] }
  0x77   :  { %790 = vmatpush.msrb.mxu2 %v266_v50  ;;  %809 = vmatpush.msrb.mxu3 %v283_v51  ;;  %v353_v28 = vld [vmem:[%s2569_s1 + $0x9f8] sm:$0xff]  ;;  %v334_v34 = vld [vmem:[%s2569_s1 + $0x960] sm:$0xff]  ;;  %v351_v35 = vld [vmem:[%s2569_s1 + $0x9e8] sm:$0xff] }
  0x78   :  { %751 = vmatpush.msrb.mxu0 %v233_v52  ;;  %770 = vmatpush.msrb.mxu1 %v250_v53  ;;  %v301_v36 = vld [vmem:[%s2569_s1 + $0x858] sm:$0xff]  ;;  %v318_v37 = vld [vmem:[%s2569_s1 + $0x8e0] sm:$0xff]  ;;  %v300_v40 = vld [vmem:[%s2569_s1 + $0x850] sm:$0xff] }
  0x79   :  { %791 = vmatpush.msrb.mxu2 %v265_v54  ;;  %810 = vmatpush.msrb.mxu3 %v282_v55  ;;  %v333_v38 = vld [vmem:[%s2569_s1 + $0x958] sm:$0xff]  ;;  %v350_v39 = vld [vmem:[%s2569_s1 + $0x9e0] sm:$0xff]  ;;  %v332_v42 = vld [vmem:[%s2569_s1 + $0x950] sm:$0xff] }
  0x7a   :  { %752 = vmatpush.msrb.mxu0 %v232_v56  ;;  %771 = vmatpush.msrb.mxu1 %v249_v57  ;;  %v317_v41 = vld [vmem:[%s2569_s1 + $0x8d8] sm:$0xff]  ;;  %v299_v44 = vld [vmem:[%s2569_s1 + $0x848] sm:$0xff]  ;;  %v316_v45 = vld [vmem:[%s2569_s1 + $0x8d0] sm:$0xff] }
  0x7b   :  { %792 = vmatpush.msrb.mxu2 %v264_v58  ;;  %811 = vmatpush.msrb.mxu3 %v281_v59  ;;  %v349_v43 = vld [vmem:[%s2569_s1 + $0x9d8] sm:$0xff]  ;;  %v331_v46 = vld [vmem:[%s2569_s1 + $0x948] sm:$0xff]  ;;  %v348_v47 = vld [vmem:[%s2569_s1 + $0x9d0] sm:$0xff] }
  0x7c   :  { %753 = vmatpush.msrb.mxu0 %v231_v60  ;;  %772 = vmatpush.msrb.mxu1 %v248_v61  ;;  %v298_v48 = vld [vmem:[%s2569_s1 + $0x840] sm:$0xff]  ;;  %v315_v49 = vld [vmem:[%s2569_s1 + $0x8c8] sm:$0xff]  ;;  %v297_v52 = vld [vmem:[%s2569_s1 + $0x838] sm:$0xff] }
  0x7d   :  { %793 = vmatpush.msrb.mxu2 %v263_v62  ;;  %812 = vmatpush.msrb.mxu3 %v280_v63  ;;  %v330_v50 = vld [vmem:[%s2569_s1 + $0x940] sm:$0xff]  ;;  %v347_v51 = vld [vmem:[%s2569_s1 + $0x9c8] sm:$0xff]  ;;  %v329_v54 = vld [vmem:[%s2569_s1 + $0x938] sm:$0xff] }
  0x7e   :  { %754 = vmatpush.msrb.mxu0 %v230_v0  ;;  %773 = vmatpush.msrb.mxu1 %v247_v1  ;;  %v314_v53 = vld [vmem:[%s2569_s1 + $0x8c0] sm:$0xff]  ;;  %v296_v56 = vld [vmem:[%s2569_s1 + $0x830] sm:$0xff]  ;;  %v313_v57 = vld [vmem:[%s2569_s1 + $0x8b8] sm:$0xff] }
  0x7f   :  { %794 = vmatpush.msrb.mxu2 %v262_v2  ;;  %813 = vmatpush.msrb.mxu3 %v279_v3  ;;  %v346_v55 = vld [vmem:[%s2569_s1 + $0x9c0] sm:$0xff]  ;;  %v328_v58 = vld [vmem:[%s2569_s1 + $0x930] sm:$0xff]  ;;  %v345_v59 = vld [vmem:[%s2569_s1 + $0x9b8] sm:$0xff] }
  0x80   :  { %755 = vmatpush.msrb.mxu0 %v229_v4  ;;  %774 = vmatpush.msrb.mxu1 %v246_v5  ;;  %v295_v60 = vld [vmem:[%s2569_s1 + $0x828] sm:$0xff]  ;;  %v312_v61 = vld [vmem:[%s2569_s1 + $0x8b0] sm:$0xff]  ;;  %v294_v0 = vld [vmem:[%s2569_s1 + $0x820] sm:$0xff] }
  0x81   :  { %795 = vmatpush.msrb.mxu2 %v261_v6  ;;  %814 = vmatpush.msrb.mxu3 %v278_v7  ;;  %v327_v62 = vld [vmem:[%s2569_s1 + $0x928] sm:$0xff]  ;;  %v344_v63 = vld [vmem:[%s2569_s1 + $0x9b0] sm:$0xff]  ;;  %v326_v2 = vld [vmem:[%s2569_s1 + $0x920] sm:$0xff] }
  0x82   :  { %756 = vmatpush.msrb.mxu0 %v228_v8  ;;  %775 = vmatpush.msrb.mxu1 %v245_v9  ;;  %v311_v1 = vld [vmem:[%s2569_s1 + $0x8a8] sm:$0xff]  ;;  %v293_v4 = vld [vmem:[%s2569_s1 + $0x818] sm:$0xff]  ;;  %v310_v5 = vld [vmem:[%s2569_s1 + $0x8a0] sm:$0xff] }
  0x83   :  { %796 = vmatpush.msrb.mxu2 %v260_v10  ;;  %815 = vmatpush.msrb.mxu3 %v277_v11  ;;  %v343_v3 = vld [vmem:[%s2569_s1 + $0x9a8] sm:$0xff]  ;;  %v325_v6 = vld [vmem:[%s2569_s1 + $0x918] sm:$0xff]  ;;  %v342_v7 = vld [vmem:[%s2569_s1 + $0x9a0] sm:$0xff] }
  0x84   :  { %757 = vmatpush.msrb.mxu0 %v227_v12  ;;  %776 = vmatpush.msrb.mxu1 %v244_v13  ;;  %v292_v8 = vld [vmem:[%s2569_s1 + $0x810] sm:$0xff]  ;;  %v309_v9 = vld [vmem:[%s2569_s1 + $0x898] sm:$0xff]  ;;  %v291_v12 = vld [vmem:[%s2569_s1 + $0x808] sm:$0xff] }
  0x85   :  { %797 = vmatpush.msrb.mxu2 %v259_v14  ;;  %816 = vmatpush.msrb.mxu3 %v276_v15  ;;  %v324_v10 = vld [vmem:[%s2569_s1 + $0x910] sm:$0xff]  ;;  %v341_v11 = vld [vmem:[%s2569_s1 + $0x998] sm:$0xff]  ;;  %v323_v14 = vld [vmem:[%s2569_s1 + $0x908] sm:$0xff] }
  0x86   :  { %758 = vmatpush.msrb.mxu0 %v226_v16  ;;  %777 = vmatpush.msrb.mxu1 %v243_v17  ;;  %v308_v13 = vld [vmem:[%s2569_s1 + $0x890] sm:$0xff]  ;;  %v290_v16 = vld [vmem:[%s2569_s1 + $0x800] sm:$0xff]  ;;  %v307_v17 = vld [vmem:[%s2569_s1 + $0x888] sm:$0xff] }
  0x87   :  { %798 = vmatpush.msrb.mxu2 %v258_v18  ;;  %817 = vmatpush.msrb.mxu3 %v275_v19  ;;  %v340_v15 = vld [vmem:[%s2569_s1 + $0x990] sm:$0xff]  ;;  %v322_v18 = vld [vmem:[%s2569_s1 + $0x900] sm:$0xff]  ;;  %v339_v19 = vld [vmem:[%s2569_s1 + $0x988] sm:$0xff] }
  0x88   :  { %759 = vmatmul.f32.vlgmr.msrb.gmra.mxu0 %v1851_v29  ;;  %799 = vmatmul.f32.vlgmr.msrb.gmra.mxu2 %v1853_v31  ;;  %v303_v29 = vld [vmem:[%s2569_s1 + $0x868] sm:$0xff]  ;;  %v320_v31 = vld [vmem:[%s2569_s1 + $0x8f0] sm:$0xff] }
  0x89   :  { %823 = vmatpush.msra.mxu0 %v305_v20  ;;  %863 = vmatpush.msra.mxu2 %v337_v21  ;;  %v468_v20 = vld.sshfl [vmem:[#allocation1] sm:$0xff pattern:$0x73625140]  ;;  %v470_v21 = vld.sshfl [vmem:[#allocation1 + $0x10] sm:$0xff pattern:$0x73625140] }
  0x8a   :  { %778 = vmatpush.msrb.mxu1 %v242_v22  ;;  %818 = vmatpush.msrb.mxu3 %v274_v23  ;;  %v369_v22 = vld [vmem:[%s2569_s1 + $0xa78] sm:$0xff] }
  0x8b   :  { %779 = vmatmul.f32.vlgmr.msrb.gmra.mxu1 %v1855_v32  ;;  %819 = vmatmul.f32.vlgmr.msrb.gmra.mxu3 %v1863_v33  ;;  %v352_v32 = vld [vmem:[%s2569_s1 + $0x9f0] sm:$0xff]  ;;  %v319_v33 = vld [vmem:[%s2569_s1 + $0x8e8] sm:$0xff]  ;;  %v401_v23 = vld [vmem:[%s2569_s1 + $0xb78] sm:$0xff] }
  0x8c   :  { %824 = vmatpush.msra.mxu0 %v304_v24  ;;  %843 = vmatpush.msra.mxu1 %v321_v25  ;;  %v306_v24 = vld [vmem:[%s2569_s1 + $0x880] sm:$0xff] }
  0x8d   :  { %864 = vmatpush.msra.mxu2 %v336_v26  ;;  %883 = vmatpush.msra.mxu3 %v353_v28  ;;  %v338_v25 = vld [vmem:[%s2569_s1 + $0x980] sm:$0xff]  ;;  %v469_v26 = vld.sshfl [vmem:[#allocation1 + $0x8] sm:$0xff pattern:$0x73625140] }
  0x8e   :  { %825 = vmatpush.msra.mxu0 %v303_v29  ;;  %844 = vmatpush.msra.mxu1 %v320_v31  ;;  %v471_v28 = vld.sshfl [vmem:[#allocation1 + $0x18] sm:$0xff pattern:$0x73625140]  ;;  %v368_v29 = vld [vmem:[%s2569_s1 + $0xa70] sm:$0xff] }
  0x8f   :  { %865 = vmatpush.msra.mxu2 %v335_v27  ;;  %884 = vmatpush.msra.mxu3 %v352_v32  ;;  %v385_v31 = vld [vmem:[%s2569_s1 + $0xaf8] sm:$0xff]  ;;  %v400_v27 = vld [vmem:[%s2569_s1 + $0xb70] sm:$0xff] }
  0x90   :  { %826 = vmatpush.msra.mxu0 %v302_v30  ;;  %845 = vmatpush.msra.mxu1 %v319_v33  ;;  %v417_v32 = vld [vmem:[%s2569_s1 + $0xbf8] sm:$0xff]  ;;  %v367_v30 = vld [vmem:[%s2569_s1 + $0xa68] sm:$0xff]  ;;  %v384_v33 = vld [vmem:[%s2569_s1 + $0xaf0] sm:$0xff] }
  0x91   :  { %866 = vmatpush.msra.mxu2 %v334_v34  ;;  %885 = vmatpush.msra.mxu3 %v351_v35  ;;  %v399_v34 = vld [vmem:[%s2569_s1 + $0xb68] sm:$0xff]  ;;  %v416_v35 = vld [vmem:[%s2569_s1 + $0xbf0] sm:$0xff] }
  0x92   :  { %827 = vmatpush.msra.mxu0 %v301_v36  ;;  %846 = vmatpush.msra.mxu1 %v318_v37  ;;  %v366_v36 = vld [vmem:[%s2569_s1 + $0xa60] sm:$0xff]  ;;  %v383_v37 = vld [vmem:[%s2569_s1 + $0xae8] sm:$0xff] }
  0x93   :  { %867 = vmatpush.msra.mxu2 %v333_v38  ;;  %886 = vmatpush.msra.mxu3 %v350_v39  ;;  %v398_v38 = vld [vmem:[%s2569_s1 + $0xb60] sm:$0xff]  ;;  %v415_v39 = vld [vmem:[%s2569_s1 + $0xbe8] sm:$0xff] }
  0x94   :  { %828 = vmatpush.msra.mxu0 %v300_v40  ;;  %847 = vmatpush.msra.mxu1 %v317_v41  ;;  %v365_v40 = vld [vmem:[%s2569_s1 + $0xa58] sm:$0xff]  ;;  %v382_v41 = vld [vmem:[%s2569_s1 + $0xae0] sm:$0xff] }
  0x95   :  { %868 = vmatpush.msra.mxu2 %v332_v42  ;;  %887 = vmatpush.msra.mxu3 %v349_v43  ;;  %v397_v42 = vld [vmem:[%s2569_s1 + $0xb58] sm:$0xff]  ;;  %v414_v43 = vld [vmem:[%s2569_s1 + $0xbe0] sm:$0xff] }
  0x96   :  { %829 = vmatpush.msra.mxu0 %v299_v44  ;;  %848 = vmatpush.msra.mxu1 %v316_v45  ;;  %v364_v44 = vld [vmem:[%s2569_s1 + $0xa50] sm:$0xff]  ;;  %v381_v45 = vld [vmem:[%s2569_s1 + $0xad8] sm:$0xff] }
  0x97   :  { %869 = vmatpush.msra.mxu2 %v331_v46  ;;  %888 = vmatpush.msra.mxu3 %v348_v47  ;;  %v396_v46 = vld [vmem:[%s2569_s1 + $0xb50] sm:$0xff]  ;;  %v413_v47 = vld [vmem:[%s2569_s1 + $0xbd8] sm:$0xff] }
  0x98   :  { %830 = vmatpush.msra.mxu0 %v298_v48  ;;  %849 = vmatpush.msra.mxu1 %v315_v49  ;;  %v363_v48 = vld [vmem:[%s2569_s1 + $0xa48] sm:$0xff]  ;;  %v380_v49 = vld [vmem:[%s2569_s1 + $0xad0] sm:$0xff] }
  0x99   :  { %870 = vmatpush.msra.mxu2 %v330_v50  ;;  %889 = vmatpush.msra.mxu3 %v347_v51  ;;  %v395_v50 = vld [vmem:[%s2569_s1 + $0xb48] sm:$0xff]  ;;  %v412_v51 = vld [vmem:[%s2569_s1 + $0xbd0] sm:$0xff] }
  0x9a   :  { %831 = vmatpush.msra.mxu0 %v297_v52  ;;  %850 = vmatpush.msra.mxu1 %v314_v53  ;;  %v362_v52 = vld [vmem:[%s2569_s1 + $0xa40] sm:$0xff]  ;;  %v379_v53 = vld [vmem:[%s2569_s1 + $0xac8] sm:$0xff] }
  0x9b   :  { %871 = vmatpush.msra.mxu2 %v329_v54  ;;  %890 = vmatpush.msra.mxu3 %v346_v55  ;;  %v394_v54 = vld [vmem:[%s2569_s1 + $0xb40] sm:$0xff]  ;;  %v411_v55 = vld [vmem:[%s2569_s1 + $0xbc8] sm:$0xff] }
  0x9c   :  { %832 = vmatpush.msra.mxu0 %v296_v56  ;;  %851 = vmatpush.msra.mxu1 %v313_v57  ;;  %v361_v56 = vld [vmem:[%s2569_s1 + $0xa38] sm:$0xff]  ;;  %v378_v57 = vld [vmem:[%s2569_s1 + $0xac0] sm:$0xff] }
  0x9d   :  { %872 = vmatpush.msra.mxu2 %v328_v58  ;;  %891 = vmatpush.msra.mxu3 %v345_v59  ;;  %v393_v58 = vld [vmem:[%s2569_s1 + $0xb38] sm:$0xff]  ;;  %v410_v59 = vld [vmem:[%s2569_s1 + $0xbc0] sm:$0xff] }
  0x9e   :  { %833 = vmatpush.msra.mxu0 %v295_v60  ;;  %852 = vmatpush.msra.mxu1 %v312_v61  ;;  %v360_v60 = vld [vmem:[%s2569_s1 + $0xa30] sm:$0xff]  ;;  %v377_v61 = vld [vmem:[%s2569_s1 + $0xab8] sm:$0xff] }
  0x9f   :  { %873 = vmatpush.msra.mxu2 %v327_v62  ;;  %892 = vmatpush.msra.mxu3 %v344_v63  ;;  %v392_v62 = vld [vmem:[%s2569_s1 + $0xb30] sm:$0xff]  ;;  %v409_v63 = vld [vmem:[%s2569_s1 + $0xbb8] sm:$0xff] }
  0xa0   :  { %834 = vmatpush.msra.mxu0 %v294_v0  ;;  %853 = vmatpush.msra.mxu1 %v311_v1  ;;  %v359_v0 = vld [vmem:[%s2569_s1 + $0xa28] sm:$0xff]  ;;  %v376_v1 = vld [vmem:[%s2569_s1 + $0xab0] sm:$0xff] }
  0xa1   :  { %874 = vmatpush.msra.mxu2 %v326_v2  ;;  %893 = vmatpush.msra.mxu3 %v343_v3  ;;  %v391_v2 = vld [vmem:[%s2569_s1 + $0xb28] sm:$0xff]  ;;  %v408_v3 = vld [vmem:[%s2569_s1 + $0xbb0] sm:$0xff] }
  0xa2   :  { %835 = vmatpush.msra.mxu0 %v293_v4  ;;  %854 = vmatpush.msra.mxu1 %v310_v5  ;;  %v358_v4 = vld [vmem:[%s2569_s1 + $0xa20] sm:$0xff]  ;;  %v375_v5 = vld [vmem:[%s2569_s1 + $0xaa8] sm:$0xff] }
  0xa3   :  { %875 = vmatpush.msra.mxu2 %v325_v6  ;;  %894 = vmatpush.msra.mxu3 %v342_v7  ;;  %v390_v6 = vld [vmem:[%s2569_s1 + $0xb20] sm:$0xff]  ;;  %v407_v7 = vld [vmem:[%s2569_s1 + $0xba8] sm:$0xff] }
  0xa4   :  { %836 = vmatpush.msra.mxu0 %v292_v8  ;;  %855 = vmatpush.msra.mxu1 %v309_v9  ;;  %v357_v8 = vld [vmem:[%s2569_s1 + $0xa18] sm:$0xff]  ;;  %v374_v9 = vld [vmem:[%s2569_s1 + $0xaa0] sm:$0xff] }
  0xa5   :  { %876 = vmatpush.msra.mxu2 %v324_v10  ;;  %895 = vmatpush.msra.mxu3 %v341_v11  ;;  %v389_v10 = vld [vmem:[%s2569_s1 + $0xb18] sm:$0xff]  ;;  %v406_v11 = vld [vmem:[%s2569_s1 + $0xba0] sm:$0xff] }
  0xa6   :  { %837 = vmatpush.msra.mxu0 %v291_v12  ;;  %856 = vmatpush.msra.mxu1 %v308_v13  ;;  %v356_v12 = vld [vmem:[%s2569_s1 + $0xa10] sm:$0xff]  ;;  %v373_v13 = vld [vmem:[%s2569_s1 + $0xa98] sm:$0xff] }
  0xa7   :  { %877 = vmatpush.msra.mxu2 %v323_v14  ;;  %896 = vmatpush.msra.mxu3 %v340_v15  ;;  %v33_v14 = vld [vmem:[%s2568_s0 + $0x30] sm:$0x3] }
  0xa8   :  { %838 = vmatpush.msra.mxu0 %v290_v16  ;;  %857 = vmatpush.msra.mxu1 %v307_v17  ;;  %v388_v15 = vld [vmem:[%s2569_s1 + $0xb10] sm:$0xff]  ;;  %v405_v16 = vld [vmem:[%s2569_s1 + $0xb98] sm:$0xff]  ;;  %476 = vst [vmem:[#allocation1] ss:$4 sm:$0xff] %v33_v14  ;;  %v355_v17 = vld [vmem:[%s2569_s1 + $0xa08] sm:$0xff] }
  0xa9   :  { %878 = vmatpush.msra.mxu2 %v322_v18  ;;  %897 = vmatpush.msra.mxu3 %v339_v19  ;;  %v372_v18 = vld [vmem:[%s2569_s1 + $0xa90] sm:$0xff]  ;;  %v387_v19 = vld [vmem:[%s2569_s1 + $0xb08] sm:$0xff] }
  0xaa   :  { %839 = vmatmul.f32.vlgmr.msra.gmra.mxu0 %v468_v20  ;;  %879 = vmatmul.f32.vlgmr.msra.gmra.mxu2 %v470_v21  ;;  %v404_v20 = vld [vmem:[%s2569_s1 + $0xb90] sm:$0xff]  ;;  %v354_v21 = vld [vmem:[%s2569_s1 + $0xa00] sm:$0xff] }
  0xab   :  { %903 = vmatpush.msrb.mxu0 %v369_v22  ;;  %943 = vmatpush.msrb.mxu2 %v401_v23  ;;  %v371_v22 = vld [vmem:[%s2569_s1 + $0xa88] sm:$0xff]  ;;  %v386_v23 = vld [vmem:[%s2569_s1 + $0xb00] sm:$0xff] }
  0xac   :  { %858 = vmatpush.msra.mxu1 %v306_v24  ;;  %898 = vmatpush.msra.mxu3 %v338_v25  ;;  %v403_v24 = vld [vmem:[%s2569_s1 + $0xb88] sm:$0xff]  ;;  %v472_v25 = vld.sshfl [vmem:[#allocation1 + $0x20] sm:$0xff pattern:$0x73625140] }
  0xad   :  { %859 = vmatmul.f32.vlgmr.msra.gmra.mxu1 %v469_v26  ;;  %899 = vmatmul.f32.vlgmr.msra.gmra.mxu3 %v471_v28  ;;  %v474_v26 = vld.sshfl [vmem:[#allocation1 + $0x30] sm:$0xff pattern:$0x73625140]  ;;  %v433_v28 = vld [vmem:[%s2569_s1 + $0xc78] sm:$0xff] }
  0xae   :  { %904 = vmatpush.msrb.mxu0 %v368_v29  ;;  %923 = vmatpush.msrb.mxu1 %v385_v31  ;;  %v370_v29 = vld [vmem:[%s2569_s1 + $0xa80] sm:$0xff] }
  0xaf   :  { %944 = vmatpush.msrb.mxu2 %v400_v27  ;;  %963 = vmatpush.msrb.mxu3 %v417_v32  ;;  %v402_v31 = vld [vmem:[%s2569_s1 + $0xb80] sm:$0xff]  ;;  %v473_v27 = vld.sshfl [vmem:[#allocation1 + $0x28] sm:$0xff pattern:$0x73625140] }
  0xb0   :  { %905 = vmatpush.msrb.mxu0 %v367_v30  ;;  %924 = vmatpush.msrb.mxu1 %v384_v33  ;;  %v475_v32 = vld.sshfl [vmem:[#allocation1 + $0x38] sm:$0xff pattern:$0x73625140]  ;;  %v432_v30 = vld [vmem:[%s2569_s1 + $0xc70] sm:$0xff]  ;;  %v431_v33 = vld [vmem:[%s2569_s1 + $0xc68] sm:$0xff] }
  0xb1   :  { %945 = vmatpush.msrb.mxu2 %v399_v34  ;;  %964 = vmatpush.msrb.mxu3 %v416_v35  ;;  %v430_v34 = vld [vmem:[%s2569_s1 + $0xc60] sm:$0xff]  ;;  %v429_v35 = vld [vmem:[%s2569_s1 + $0xc58] sm:$0xff] }
  0xb2   :  { %906 = vmatpush.msrb.mxu0 %v366_v36  ;;  %925 = vmatpush.msrb.mxu1 %v383_v37  ;;  %v428_v36 = vld [vmem:[%s2569_s1 + $0xc50] sm:$0xff]  ;;  %v427_v37 = vld [vmem:[%s2569_s1 + $0xc48] sm:$0xff] }
  0xb3   :  { %946 = vmatpush.msrb.mxu2 %v398_v38  ;;  %965 = vmatpush.msrb.mxu3 %v415_v39  ;;  %v426_v38 = vld [vmem:[%s2569_s1 + $0xc40] sm:$0xff]  ;;  %v425_v39 = vld [vmem:[%s2569_s1 + $0xc38] sm:$0xff] }
  0xb4   :  { %907 = vmatpush.msrb.mxu0 %v365_v40  ;;  %926 = vmatpush.msrb.mxu1 %v382_v41  ;;  %v424_v40 = vld [vmem:[%s2569_s1 + $0xc30] sm:$0xff]  ;;  %v423_v41 = vld [vmem:[%s2569_s1 + $0xc28] sm:$0xff] }
  0xb5   :  { %947 = vmatpush.msrb.mxu2 %v397_v42  ;;  %966 = vmatpush.msrb.mxu3 %v414_v43  ;;  %v422_v42 = vld [vmem:[%s2569_s1 + $0xc20] sm:$0xff]  ;;  %v421_v43 = vld [vmem:[%s2569_s1 + $0xc18] sm:$0xff] }
  0xb6   :  { %908 = vmatpush.msrb.mxu0 %v364_v44  ;;  %927 = vmatpush.msrb.mxu1 %v381_v45  ;;  %v420_v44 = vld [vmem:[%s2569_s1 + $0xc10] sm:$0xff]  ;;  %v419_v45 = vld [vmem:[%s2569_s1 + $0xc08] sm:$0xff] }
  0xb7   :  { %948 = vmatpush.msrb.mxu2 %v396_v46  ;;  %967 = vmatpush.msrb.mxu3 %v413_v47  ;;  %v418_v46 = vld [vmem:[%s2569_s1 + $0xc00] sm:$0xff] }
  0xb8   :  { %909 = vmatpush.msrb.mxu0 %v363_v48  ;;  %928 = vmatpush.msrb.mxu1 %v380_v49  ;;  %v477_v47 = vld.sshfl [vmem:[#allocation1] sm:$0xff pattern:$0x73625140] }
  0xb9   :  { %949 = vmatpush.msrb.mxu2 %v395_v50  ;;  %968 = vmatpush.msrb.mxu3 %v412_v51  ;;  %v1120_v48 = vld [vmem:[%s2570_s2] ss:$0 sm:$0xff] }
  0xba   :  { %910 = vmatpush.msrb.mxu0 %v362_v52  ;;  %929 = vmatpush.msrb.mxu1 %v379_v53 }
  0xbb   :  { %950 = vmatpush.msrb.mxu2 %v394_v54  ;;  %969 = vmatpush.msrb.mxu3 %v411_v55 }
  0xbc   :  { %911 = vmatpush.msrb.mxu0 %v361_v56  ;;  %930 = vmatpush.msrb.mxu1 %v378_v57 }
  0xbd   :  { %951 = vmatpush.msrb.mxu2 %v393_v58  ;;  %970 = vmatpush.msrb.mxu3 %v410_v59  ;;  %v1019_v59 = vld [vmem:[%s2571_s3 + $0x78] sm:$0xff] }
  0xbe   :  { %912 = vmatpush.msrb.mxu0 %v360_v60  ;;  %931 = vmatpush.msrb.mxu1 %v377_v61 }
  0xbf   :  { %952 = vmatpush.msrb.mxu2 %v392_v62  ;;  %971 = vmatpush.msrb.mxu3 %v409_v63  ;;  %v520_v49 = vpop.f32.mrf.mxu0  ;;  %v1018_v62 = vld [vmem:[%s2571_s3 + $0x70] sm:$0xff] }
  0xc0   :  { %913 = vmatpush.msrb.mxu0 %v359_v0  ;;  %932 = vmatpush.msrb.mxu1 %v376_v1  ;;  %v521_v50 = vadd.f32 %v1120_v48, %v520_v49  ;;  %v1017_v0 = vld [vmem:[%s2571_s3 + $0x68] sm:$0xff]  ;;  %v1016_v1 = vld [vmem:[%s2571_s3 + $0x60] sm:$0xff] }
  0xc1   :  { %953 = vmatpush.msrb.mxu2 %v391_v2  ;;  %972 = vmatpush.msrb.mxu3 %v408_v3  ;;  %v1015_v3 = vld [vmem:[%s2571_s3 + $0x58] sm:$0xff] }
  0xc2   :  { %914 = vmatpush.msrb.mxu0 %v358_v4  ;;  %933 = vmatpush.msrb.mxu1 %v375_v5  ;;  %v540_v51 = vpop.f32.mrf.mxu1  ;;  %v1014_v5 = vld [vmem:[%s2571_s3 + $0x50] sm:$0xff] }
  0xc3   :  { %954 = vmatpush.msrb.mxu2 %v390_v6  ;;  %973 = vmatpush.msrb.mxu3 %v407_v7  ;;  %v541_v52 = vadd.f32 %v540_v51, %v521_v50  ;;  %v560_v53 = vpop.f32.mrf.mxu2  ;;  %v1052_v50 = vld [vmem:[%s2573_s5 + $0x38] sm:$0xff] }
  0xc4   :  { %915 = vmatpush.msrb.mxu0 %v357_v8  ;;  %934 = vmatpush.msrb.mxu1 %v374_v9  ;;  %v1013_v8 = vld [vmem:[%s2571_s3 + $0x48] sm:$0xff] }
  0xc5   :  { %955 = vmatpush.msrb.mxu2 %v389_v10  ;;  %974 = vmatpush.msrb.mxu3 %v406_v11  ;;  %v561_v54 = vadd.f32 %v560_v53, %v541_v52  ;;  %v1012_v10 = vld [vmem:[%s2571_s3 + $0x40] sm:$0xff]  ;;  %v1051_v52 = vld [vmem:[%s2573_s5 + $0x30] sm:$0xff] }
  0xc6   :  { %916 = vmatpush.msrb.mxu0 %v356_v12  ;;  %935 = vmatpush.msrb.mxu1 %v373_v13  ;;  %v580_v55 = vpop.f32.mrf.mxu3  ;;  %v1011_v12 = vld [vmem:[%s2571_s3 + $0x38] sm:$0xff] }
  0xc7   :  { %956 = vmatpush.msrb.mxu2 %v388_v15  ;;  %975 = vmatpush.msrb.mxu3 %v405_v16  ;;  %v581_v56 = vadd.f32 %v580_v55, %v561_v54  ;;  %v1010_v15 = vld [vmem:[%s2571_s3 + $0x30] sm:$0xff]  ;;  %v1050_v54 = vld [vmem:[%s2573_s5 + $0x28] sm:$0xff] }
  0xc8   :  { %917 = vmatpush.msrb.mxu0 %v355_v17  ;;  %936 = vmatpush.msrb.mxu1 %v372_v18  ;;  %v1009_v17 = vld [vmem:[%s2571_s3 + $0x28] sm:$0xff] }
  0xc9   :  { %957 = vmatpush.msrb.mxu2 %v387_v19  ;;  %976 = vmatpush.msrb.mxu3 %v404_v20  ;;  %v600_v57 = vpop.f32.mrf.mxu0  ;;  %v1008_v19 = vld [vmem:[%s2571_s3 + $0x20] sm:$0xff] }
  0xca   :  { %918 = vmatpush.msrb.mxu0 %v354_v21  ;;  %937 = vmatpush.msrb.mxu1 %v371_v22  ;;  %v601_v58 = vadd.f32 %v600_v57, %v581_v56  ;;  %v1007_v22 = vld [vmem:[%s2571_s3 + $0x18] sm:$0xff]  ;;  %v1049_v57 = vld [vmem:[%s2573_s5 + $0x20] sm:$0xff] }
  0xcb   :  { %958 = vmatpush.msrb.mxu2 %v386_v23  ;;  %977 = vmatpush.msrb.mxu3 %v403_v24 }
  0xcc   :  { %919 = vmatmul.f32.vlgmr.msrb.gmra.mxu0 %v472_v25  ;;  %959 = vmatmul.f32.vlgmr.msrb.gmra.mxu2 %v474_v26  ;;  %v620_v60 = vpop.f32.mrf.mxu1  ;;  %v1006_v25 = vld [vmem:[%s2571_s3 + $0x10] sm:$0xff] }
  0xcd   :  { %983 = vmatpush.msra.mxu0 %v433_v28  ;;  %938 = vmatpush.msrb.mxu1 %v370_v29  ;;  %v621_v61 = vadd.f32 %v620_v60, %v601_v58  ;;  %v640_v63 = vpop.f32.mrf.mxu2  ;;  %v1005_v29 = vld [vmem:[%s2571_s3 + $0x8] sm:$0xff] }
  0xce   :  { %978 = vmatpush.msrb.mxu3 %v402_v31  ;;  %939 = vmatmul.f32.vlgmr.msrb.gmra.mxu1 %v473_v27  ;;  %v1004_v27 = vld [vmem:[%s2571_s3] sm:$0xff] }
  0xcf   :  { %979 = vmatmul.f32.vlgmr.msrb.gmra.mxu3 %v475_v32  ;;  %984 = vmatpush.msra.mxu0 %v432_v30  ;;  %v641_v2 = vadd.f32 %v640_v63, %v621_v61  ;;  %v1060_v30 = vld [vmem:[%s2573_s5 + $0x78] sm:$0xff] }
  0xd0   :  { %1024 = vmatpush.msra.mxu1 %v1019_v59  ;;  %v660_v4 = vpop.f32.mrf.mxu3  ;;  %1065 = vmatpush.msra.mxu2 %v1060_v30  ;;  %v1048_v59 = vld [vmem:[%s2573_s5 + $0x18] sm:$0xff] }
  0xd1   :  { %985 = vmatpush.msra.mxu0 %v431_v33  ;;  %v661_v7 = vadd.f32 %v660_v4, %v641_v2  ;;  %v1059_v33 = vld [vmem:[%s2573_s5 + $0x70] sm:$0xff]  ;;  %v1046_v2 = vld [vmem:[%s2573_s5 + $0x8] sm:$0xff]  ;;  %v1121_v4 = vld [vmem:[%s2572_s4] ss:$0 sm:$0xff]  ;;  %s1153_s4 = smov [#allocation2]  }
  0xd2   :  { %1025 = vmatpush.msra.mxu1 %v1018_v62  ;;  %1066 = vmatpush.msra.mxu2 %v1059_v33 }
  0xd3   :  { %986 = vmatpush.msra.mxu0 %v430_v34 }
  0xd4   :  { %1026 = vmatpush.msra.mxu1 %v1017_v0 }
  0xd5   :  { %987 = vmatpush.msra.mxu0 %v429_v35 }
  0xd6   :  { %1027 = vmatpush.msra.mxu1 %v1016_v1  ;;  %v1047_v1 = vld [vmem:[%s2573_s5 + $0x10] sm:$0xff] }
  0xd7   :  { %988 = vmatpush.msra.mxu0 %v428_v36  ;;  %v1058_v36 = vld [vmem:[%s2573_s5 + $0x68] sm:$0xff] }
  0xd8   :  { %1028 = vmatpush.msra.mxu1 %v1015_v3  ;;  %1067 = vmatpush.msra.mxu2 %v1058_v36  ;;  %v1045_v3 = vld [vmem:[%s2573_s5] sm:$0xff] }
  0xd9   :  { %989 = vmatpush.msra.mxu0 %v427_v37 }
  0xda   :  { %1029 = vmatpush.msra.mxu1 %v1014_v5 }
  0xdb   :  { %990 = vmatpush.msra.mxu0 %v426_v38  ;;  %v1057_v38 = vld [vmem:[%s2573_s5 + $0x60] sm:$0xff] }
  0xdc   :  { %1030 = vmatpush.msra.mxu1 %v1013_v8  ;;  %1068 = vmatpush.msra.mxu2 %v1057_v38  ;;  %v1085_v8 = vlaneseq }
  0xdd   :  { %991 = vmatpush.msra.mxu0 %v425_v39 }
  0xde   :  { %1031 = vmatpush.msra.mxu1 %v1012_v10  ;;  %v1122_v10 = vld [vmem:[%s2574_s6] ss:$0 sm:$0xff] }
  0xdf   :  { %992 = vmatpush.msra.mxu0 %v424_v40  ;;  %v1056_v40 = vld [vmem:[%s2573_s5 + $0x58] sm:$0xff] }
  0xe0   :  { %1032 = vmatpush.msra.mxu1 %v1011_v12  ;;  %1069 = vmatpush.msra.mxu2 %v1056_v40 }
  0xe1   :  { %993 = vmatpush.msra.mxu0 %v423_v41 }
  0xe2   :  { %1033 = vmatpush.msra.mxu1 %v1010_v15 }
  0xe3   :  { %994 = vmatpush.msra.mxu0 %v422_v42  ;;  %v680_v6 = vpop.f32.mrf.mxu0 }
  0xe4   :  { %v681_v9 = vadd.f32 %v680_v6, %v661_v7  ;;  %1034 = vmatpush.msra.mxu1 %v1009_v17 }
  0xe5   :  { %995 = vmatpush.msra.mxu0 %v421_v43  ;;  %v1055_v43 = vld [vmem:[%s2573_s5 + $0x50] sm:$0xff] }
  0xe6   :  { %v700_v11 = vpop.f32.mrf.mxu1  ;;  %1035 = vmatpush.msra.mxu1 %v1008_v19  ;;  %1070 = vmatpush.msra.mxu2 %v1055_v43 }
  0xe7   :  { %996 = vmatpush.msra.mxu0 %v420_v44  ;;  %v701_v14 = vadd.f32 %v700_v11, %v681_v9  ;;  %v1086_v9 = vand.u32 127, %v1085_v8 }
  0xe8   :  { %1036 = vmatpush.msra.mxu1 %v1007_v22 }
  0xe9   :  { %997 = vmatpush.msra.mxu0 %v419_v45  ;;  %v720_v13 = vpop.f32.mrf.mxu2  ;;  %v1054_v45 = vld [vmem:[%s2573_s5 + $0x48] sm:$0xff]  ;;  %vm1087_vm0 = vcmp.lt.s32.totalorder %v1086_v9, 5 }
  0xea   :  { %v721_v16 = vadd.f32 %v720_v13, %v701_v14  ;;  %1037 = vmatpush.msra.mxu1 %v1006_v25  ;;  %1071 = vmatpush.msra.mxu2 %v1054_v45 }
  0xeb   :  { %998 = vmatpush.msra.mxu0 %v418_v46 }
  0xec   :  { %999 = vmatmul.f32.vlgmr.msra.gmra.mxu0 %v477_v47  ;;  %v740_v18 = vpop.f32.mrf.mxu3  ;;  %1038 = vmatpush.msra.mxu1 %v1005_v29  ;;  %v1053_v47 = vld [vmem:[%s2573_s5 + $0x40] sm:$0xff]  ;;  %s1108_s5 = sshll.u32 %s1153_s4, 4  ;;  %s1109_s5 = int_to_ptr.vmem [resolvable:$true] %s1108_s5 }
  0xed   :  { %v741_v21 = vadd.f32 %v740_v18, %v721_v16  ;;  %1072 = vmatpush.msra.mxu2 %v1053_v47 }
  0xee   :  { %1039 = vmatpush.msra.mxu1 %v1004_v27 }
  0xef   :  { %1073 = vmatpush.msra.mxu2 %v1052_v50 }
  0xf1   :  { %1074 = vmatpush.msra.mxu2 %v1051_v52 }
  0xf3   :  { %1075 = vmatpush.msra.mxu2 %v1050_v54 }
  0xf5   :  { %1076 = vmatpush.msra.mxu2 %v1049_v57 }
  0xf7   :  { %1077 = vmatpush.msra.mxu2 %v1048_v59 }
  0xf9   :  { %1078 = vmatpush.msra.mxu2 %v1047_v1 }
  0xfb   :  { %1079 = vmatpush.msra.mxu2 %v1046_v2 }
  0xfd   :  { %1080 = vmatpush.msra.mxu2 %v1045_v3 }
 0x105   :  { %v760_v20 = vpop.f32.mrf.mxu0 }
 0x106   :  { %v761_v23 = vadd.f32 %v760_v20, %v741_v21 }
 0x108   :  { %v780_v24 = vpop.f32.mrf.mxu1 }
 0x109   :  { %v781_v28 = vadd.f32 %v780_v24, %v761_v23 }
 0x10b   :  { %v800_v26 = vpop.f32.mrf.mxu2 }
 0x10c   :  { %v801_v31 = vadd.f32 %v800_v26, %v781_v28 }
 0x10e   :  { %v820_v32 = vpop.f32.mrf.mxu3 }
 0x10f   :  { %v821_v35 = vadd.f32 %v820_v32, %v801_v31 }
 0x127   :  { %v840_v34 = vpop.f32.mrf.mxu0 }
 0x128   :  { %v841_v37 = vadd.f32 %v840_v34, %v821_v35 }
 0x12a   :  { %v860_v39 = vpop.f32.mrf.mxu1 }
 0x12b   :  { %v861_v42 = vadd.f32 %v860_v39, %v841_v37 }
 0x12d   :  { %v880_v41 = vpop.f32.mrf.mxu2 }
 0x12e   :  { %v881_v44 = vadd.f32 %v880_v41, %v861_v42 }
 0x130   :  { %v900_v46 = vpop.f32.mrf.mxu3 }
 0x131   :  { %v901_v49 = vadd.f32 %v900_v46, %v881_v44 }
 0x149   :  { %v920_v48 = vpop.f32.mrf.mxu0 }
 0x14a   :  { %v921_v51 = vadd.f32 %v920_v48, %v901_v49 }
 0x14b   :  { %v940_v53 = vpop.f32.mrf.mxu1 }
 0x14c   :  { %v941_v56 = vadd.f32 %v940_v53, %v921_v51 }
 0x14f   :  { %v960_v55 = vpop.f32.mrf.mxu2 }
 0x150   :  { %v961_v58 = vadd.f32 %v960_v55, %v941_v56 }
 0x152   :  { %v980_v60 = vpop.f32.mrf.mxu3 }
 0x153   :  { %v981_v61 = vadd.f32 %v980_v60, %v961_v58 }
 0x169   :  { %v1000_v62 = vpop.f32.mrf.mxu0 }
 0x16a   :  { %v1001_v63 = vadd.f32 %v1000_v62, %v981_v61 }
 0x16c   :  { %v1003_v0 = vmax.f32 %v1001_v63, 0.0 }
 0x16e   :  { %1040 = vmatmul.f32.vlgmr.msra.gmra.mxu1 %v1003_v0 }
 0x1eb   :  { %v1041_v5 = vpop.f32.mrf.mxu1 }
 0x1ec   :  { %v1042_v6 = vadd.f32 %v1121_v4, %v1041_v5 }
 0x1ee   :  { %v1044_v7 = vmax.f32 %v1042_v6, 0.0 }
 0x1f0   :  { %1081 = vmatmul.f32.vlgmr.msra.gmra.mxu2 %v1044_v7 }
 0x273   :  { %v1082_v11 = vpop.f32.mrf.mxu2 }
 0x274   :  { %v1083_v12 = vadd.f32 %v1122_v10, %v1082_v11 }
 0x276   :  { %v1088_v13 = vsel %vm1087_vm0, %v1083_v12, -1e+30 }
 0x277   :  { %v1090_v14 = vsel %vm1089_vm1, %v1088_v13, -inf }
 0x278   :  { %1091 = vmax.xlane.f32.xlu0 %v1090_v14 }
 0x2eb   :  { %v1092_v15 = vpop.xlane.xlu0 %1091 }
 0x2ec   :  { %v1093_v16 = vsub.f32 %v1088_v13, %v1092_v15 }
 0x2ee   :  { %v1094_v17 = vmul.f32 1.442695, %v1093_v16 }
 0x2f0   :  { %1123 = vpow2.f32 %v1094_v17 }
 0x2f6   :  { %v1124_v18 = vpop.eup %1123 }
 0x2f7   :  { %v1096_v19 = vsel %vm1089_vm1, %v1124_v18, 0.0 }
 0x2f8   :  { %1097 = vadd.xlane.f32.xlu0 %v1096_v19 }
 0x36b   :  { %v1098_v20 = vpop.xlane.xlu0 %1097 }
 0x36c   :  { %1125 = vlog2.f32 %v1098_v20 }
 0x372   :  { %v1126_v21 = vpop.eup %1125 }
 0x373   :  { %v1100_v22 = vmul.f32 0.6931472, %v1126_v21 }
 0x375   :  { %v1101_v23 = vsub.f32 %v1093_v16, %v1100_v22 }
 0x377   :  { %1102 = vst [vmem:[#allocation2] sm:$0x3] %v1101_v23 }
 0x378   :  { %1113 = dma.vmem_to_hbm [thread:$0]  %s1109_s5, 32, %s1111_s22, [#allocation3]  }
 0x379   :  { %1151 = dma.done.wait [#allocation3], 32  }
 0x37a   :  { %1152 = vsyncadd [#allocation3], 4294967264 }
 0x37b   :  { %1118 = vsyncpa [#allocation3], 1 }

</bundles_post_ra>
